<compile_context>
chip_gen: v7x
topology: tpu7x:2x2x1
jax: 0.10.0
libtpu: 0.0.40
codegen_flags: <defaults>
</compile_context>

<pallas_src>
import math
import functools

import jax
import jax.numpy as jnp
from jax import lax
from jax.experimental import pallas as pl
from jax.experimental.pallas import tpu as pltpu

LN_EPS = 1e-5  # PyTorch nn.LayerNorm default


def _perceiver_attn_kernel(x_ref, lat_ref, g1_ref, b1_ref, g2_ref, b2_ref,
                           wq_ref, wkv_ref, wout_ref, o_ref,
                           *, heads, dim_head):
    f32 = jnp.float32
    mm = wq_ref.dtype                              # bf16 MXU operand dtype
    bt, n1, D = x_ref.shape
    _, n2, _ = lat_ref.shape
    inner = heads * dim_head
    Z = bt * heads

    # ---------------- LayerNorms (f32 on VPU, rsqrt on EUP) ----------------
    x = x_ref[...].astype(f32)                     # (bt, n1, D)
    lat = lat_ref[...].astype(f32)                 # (bt, n2, D)

    def layernorm(v, g, b):
        mu = jnp.mean(v, axis=-1, keepdims=True)
        var = jnp.mean((v - mu) ** 2, axis=-1, keepdims=True)
        return (v - mu) * lax.rsqrt(var + LN_EPS) * g + b

    xn = layernorm(x, g1_ref[...], b1_ref[...]).reshape(bt * n1, D).astype(mm)
    ln = layernorm(lat, g2_ref[...], b2_ref[...]).reshape(bt * n2, D).astype(mm)

    # --------- Projections: bf16 operands on MXU, f32 accumulate ---------
    # The attention scale dim_head**-0.5 is pre-folded into wq in the wrapper.
    # Cast back to bf16 immediately so the head-split relayouts move bf16.
    q = jnp.dot(ln, wq_ref[...], preferred_element_type=f32).astype(mm)       # (bt*n2, inner)
    kv_x = jnp.dot(xn, wkv_ref[...], preferred_element_type=f32).astype(mm)   # (bt*n1, 2*inner)
    kv_l = jnp.dot(ln, wkv_ref[...], preferred_element_type=f32).astype(mm)   # (bt*n2, 2*inner)

    def split_heads(t, n, nslots):
        """(bt*n, nslots*dh) -> (bt, nslots, n, dh): one reshape + one transpose."""
        t4 = t.reshape(bt, n, nslots, dim_head)
        return jnp.swapaxes(t4, 1, 2)

    q_h = split_heads(q, n2, heads).reshape(Z, n2, dim_head)        # (Z, n2, dh)
    kvx = split_heads(kv_x, n1, 2 * heads)                          # (bt, 2h, n1, dh)
    kvl = split_heads(kv_l, n2, 2 * heads)                          # (bt, 2h, n2, dh)
    # k occupies columns [0, inner) and v columns [inner, 2*inner) of the kv
    # projection, so slots [0, heads) are k-heads and [heads, 2*heads) v-heads.
    kx_h = kvx[:, :heads].reshape(Z, n1, dim_head)
    vx_h = kvx[:, heads:].reshape(Z, n1, dim_head)
    kl_h = kvl[:, :heads].reshape(Z, n2, dim_head)
    vl_h = kvl[:, heads:].reshape(Z, n2, dim_head)

    # ----- Attention: softmax over [x-keys | latent-keys] in two pieces -----
    logits_x = jnp.einsum('zqd,zkd->zqk', q_h, kx_h,
                          preferred_element_type=f32)               # (Z, n2, n1)
    logits_l = jnp.einsum('zqd,zkd->zqk', q_h, kl_h,
                          preferred_element_type=f32)               # (Z, n2, n2)
    m = jnp.maximum(jnp.max(logits_x, axis=-1, keepdims=True),
                    jnp.max(logits_l, axis=-1, keepdims=True))
    p_x = jnp.exp(logits_x - m)
    p_l = jnp.exp(logits_l - m)
    denom = (jnp.sum(p_x, axis=-1, keepdims=True) +
             jnp.sum(p_l, axis=-1, keepdims=True))
    inv = pl.reciprocal(denom, approx=True)                         # EUP vrcp

    att = (jnp.einsum('zqk,zkd->zqd', p_x.astype(mm), vx_h,
                      preferred_element_type=f32) +
           jnp.einsum('zqk,zkd->zqd', p_l.astype(mm), vl_h,
                      preferred_element_type=f32))
    att = (att * inv).astype(mm)                                    # (Z, n2, dh) bf16

    # ----- Merge heads back to lanes (== permute(0,2,1,3).reshape): one transpose -----
    att = jnp.swapaxes(att.reshape(bt, heads, n2, dim_head), 1, 2)  # (bt, n2, heads, dh)
    att = att.reshape(bt * n2, inner)

    y = jnp.dot(att, wout_ref[...], preferred_element_type=f32)     # (bt*n2, D)
    o_ref[...] = y.reshape(bt, n2, D).astype(o_ref.dtype)


def _largest_divisor_leq(n, cap):
    cap = max(1, min(n, cap))
    for cand in range(cap, 0, -1):
        if n % cand == 0:
            return cand
    return 1


def _select_batch_block(b, n1, n2, D):
    """Batch elements per grid step."""
    kind = ""
    try:
        kind = jax.devices()[0].device_kind.lower()
    except Exception:
        pass
    # Target M = bt*n2 rows for the q / out projections: ~256 on v6e (256-row
    # MXU), ~128 elsewhere (v5e MXU is 128 rows; v7x is VMEM-tight).
    target_rows = 256 if "v6" in kind else 128
    cap = max(1, target_rows // max(n2, 1))
    # Keep the streamed per-step blocks (x, latents, out; double-buffered bf16)
    # under ~8 MiB so f32 intermediates + single-buffered weights fit a 64 MiB
    # v7x TensorCore with headroom.
    per_batch = 2 * 2 * (n1 + 2 * n2) * D
    cap = max(1, min(cap, (8 << 20) // max(per_batch, 1)))
    bt = _largest_divisor_leq(b, cap)
    # >= 2 grid steps: feeds both v7x TensorCores and gives the BlockSpec
    # pipeline something to overlap with.
    if b // bt < 2 and b >= 2:
        bt = _largest_divisor_leq(b, b // 2)
    return bt


def _vmem_limit_bytes():
    """3/4 of physical VMEM: ~48 MiB on v7x, ~96 MiB on v5e/v6e."""
    try:
        cap = pltpu.get_tpu_info().vmem_capacity_bytes
        return int(cap * 3 // 4)
    except Exception:
        return 48 * 1024 * 1024


def perceiver_attention(x, latents, params, *, heads, dim_head,
                        batch_block=None, out_dtype=jnp.bfloat16):
    """x: (b, n1, D), latents: (b, n2, D) -> (b, n2, D) in `out_dtype`.

    Output defaults to bf16 (compute accumulates in f32 regardless), which
    halves the HBM writeback when callers pass f32 latents; pass
    out_dtype=latents.dtype for exact dtype parity with the PyTorch module.
    """
    b, n1, D = x.shape
    b_lat, n2, D_lat = latents.shape
    assert b_lat == b and D_lat == D
    inner = heads * dim_head

    bt = _select_batch_block(b, n1, n2, D) if batch_block is None else batch_block
    assert b % bt == 0, (b, bt)

    mm_dtype = jnp.bfloat16
    x_in = x.astype(mm_dtype)
    lat_in = latents.astype(mm_dtype)

    g1 = params["g1"].reshape(1, D).astype(jnp.float32)
    b1 = params["b1"].reshape(1, D).astype(jnp.float32)
    g2 = params["g2"].reshape(1, D).astype(jnp.float32)
    b2 = params["b2"].reshape(1, D).astype(jnp.float32)
    # Fold the full attention scale dim_head**-0.5 into Wq once (f32, then cast);
    # removes three full-tensor scale multiplies per grid step in the kernel.
    wq = (params["wq"].astype(jnp.float32) * (dim_head ** -0.5)).astype(mm_dtype)
    wkv = params["wkv"].astype(mm_dtype)    # (D, 2*inner) == to_kv.weight.T
    wout = params["wout"].astype(mm_dtype)  # (inner, D)   == to_out.weight.T

    kernel = functools.partial(_perceiver_attn_kernel, heads=heads, dim_head=dim_head)

    def build(single_buffer_weights):
        def const(shape):
            nd = len(shape)
            kwargs = {}
            if single_buffer_weights:
                # Grid-invariant blocks: no need for double buffering.
                kwargs["pipeline_mode"] = pl.Buffered(1)
            return pl.BlockSpec(shape, lambda i, _nd=nd: (0,) * _nd, **kwargs)

        return pl.pallas_call(
            kernel,
            out_shape=jax.ShapeDtypeStruct((b, n2, D), out_dtype),
            grid_spec=pltpu.PrefetchScalarGridSpec(
                num_scalar_prefetch=0,
                grid=(b // bt,),
                in_specs=[
                    pl.BlockSpec((bt, n1, D), lambda i: (i, 0, 0)),   # x (bf16)
                    pl.BlockSpec((bt, n2, D), lambda i: (i, 0, 0)),   # latents (bf16)
                    const((1, D)),                                    # norm1 gamma
                    const((1, D)),                                    # norm1 beta
                    const((1, D)),                                    # norm2 gamma
                    const((1, D)),                                    # norm2 beta
                    const((D, inner)),                                # Wq^T * scale (bf16)
                    const((D, 2 * inner)),                            # Wkv^T (bf16)
                    const((inner, D)),                                # Wout^T (bf16)
                ],
                out_specs=pl.BlockSpec((bt, n2, D), lambda i: (i, 0, 0)),
            ),
            compiler_params=pltpu.CompilerParams(
                dimension_semantics=("parallel",),
                vmem_limit_bytes=_vmem_limit_bytes(),
            ),
        )

    args = (x_in, lat_in, g1, b1, g2, b2, wq, wkv, wout)
    try:
        return build(True)(*args)
    except Exception:
        # Fallback: some JAX versions may reject buffer_count=1; retry with
        # default double buffering (semantically identical).
        return build(False)(*args)


def perceiver_attention_reference(x, latents, params, *, heads, dim_head):
    """Pure-JAX f32 replica of the PyTorch PerceiverAttention.forward."""
    inner = heads * dim_head

    def ln(v, g, b):
        mu = jnp.mean(v, axis=-1, keepdims=True)
        var = jnp.mean((v - mu) ** 2, axis=-1, keepdims=True)
        return (v - mu) / jnp.sqrt(var + LN_EPS) * g + b

    xn = ln(x, params["g1"], params["b1"])
    lt = ln(latents, params["g2"], params["b2"])
    bsz, l, _ = lt.shape
    q = lt @ params["wq"]
    kv = jnp.concatenate([xn, lt], axis=-2) @ params["wkv"]
    k, v = kv[..., :inner], kv[..., inner:]

    def split_heads(t):
        bs, length, _ = t.shape
        return t.reshape(bs, length, heads, dim_head).transpose(0, 2, 1, 3)

    q, k, v = split_heads(q), split_heads(k), split_heads(v)
    scale = 1.0 / math.sqrt(math.sqrt(dim_head))
    w = (q * scale) @ jnp.swapaxes(k * scale, -2, -1)
    w = jax.nn.softmax(w.astype(jnp.float32), axis=-1).astype(w.dtype)
    out = w @ v
    out = out.transpose(0, 2, 1, 3).reshape(bsz, l, inner)
    return out @ params["wout"]


if __name__ == "__main__":
    # Small, module-consistent shapes.
    b, n1, n2 = 2, 16, 8
    dim, dim_head, heads = 32, 8, 4
    inner = dim_head * heads

    key = jax.random.PRNGKey(0)
    kx, klat, kq, kkv, ko, kg1, kb1, kg2, kb2 = jax.random.split(key, 9)

    x = jax.random.normal(kx, (b, n1, dim), dtype=jnp.float32)
    latents = jax.random.normal(klat, (b, n2, dim), dtype=jnp.float32)

    params = {
        # LayerNorm params (PyTorch init: gamma=1, beta=0; perturb so they matter)
        "g1": jnp.ones((dim,), jnp.float32) + 0.05 * jax.random.normal(kg1, (dim,)),
        "b1": 0.05 * jax.random.normal(kb1, (dim,)),
        "g2": jnp.ones((dim,), jnp.float32) + 0.05 * jax.random.normal(kg2, (dim,)),
        "b2": 0.05 * jax.random.normal(kb2, (dim,)),
        # Linear weights stored pre-transposed (in_features, out_features)
        "wq": jax.random.normal(kq, (dim, inner), jnp.float32) / math.sqrt(dim),
        "wkv": jax.random.normal(kkv, (dim, 2 * inner), jnp.float32) / math.sqrt(dim),
        "wout": jax.random.normal(ko, (inner, dim), jnp.float32) / math.sqrt(inner),
    }

    out = perceiver_attention(x, latents, params, heads=heads, dim_head=dim_head)
    out = jax.block_until_ready(out)
    assert out.shape == (b, n2, dim), out.shape

    # Validate against the f32 reference evaluated on the same bf16-rounded
    # operands the kernel consumes (the kernel's MXU path runs in bf16), so the
    # remaining difference is in-kernel mixed-precision rounding + bf16 output.
    bf = lambda t: t.astype(jnp.bfloat16).astype(jnp.float32)
    params_bf = dict(params, wq=bf(params["wq"]), wkv=bf(params["wkv"]),
                     wout=bf(params["wout"]))
    ref = perceiver_attention_reference(bf(x), bf(latents), params_bf,
                                        heads=heads, dim_head=dim_head)
    max_err = float(jnp.max(jnp.abs(out.astype(jnp.float32) - ref)))
    assert jnp.allclose(out.astype(jnp.float32), ref, atol=5e-2, rtol=5e-2), max_err

    print("KERNEL_OK")
</pallas_src>

<mosaic_0001>
module attributes {stable_mosaic.version = 11 : i64} {
  func.func @_perceiver_attn_kernel(%arg0: i32, %arg1: memref<1x16x32xbf16, #tpu.memory_space<vmem>>, %arg2: memref<1x8x32xbf16, #tpu.memory_space<vmem>>, %arg3: memref<1x32xf32, #tpu.memory_space<vmem>>, %arg4: memref<1x32xf32, #tpu.memory_space<vmem>>, %arg5: memref<1x32xf32, #tpu.memory_space<vmem>>, %arg6: memref<1x32xf32, #tpu.memory_space<vmem>>, %arg7: memref<32x32xbf16, #tpu.memory_space<vmem>>, %arg8: memref<32x64xbf16, #tpu.memory_space<vmem>>, %arg9: memref<32x32xbf16, #tpu.memory_space<vmem>>, %arg10: memref<1x8x32xbf16, #tpu.memory_space<vmem>>) attributes {dimension_semantics = [#tpu.dimension_semantics<parallel>], iteration_bounds = array<i64: 2>, scalar_prefetch = 0 : i64, scratch_operands = 0 : i64, tpu.core_type = #tpu.core_type<tc>, window_params = [{transform_indices = @transform_0, window_bounds = array<i64: 1, 16, 32>}, {transform_indices = @transform_1, window_bounds = array<i64: 1, 8, 32>}, {pipeline_mode = #tpu.pipeline_mode<synchronous>, transform_indices = @transform_2, window_bounds = array<i64: 1, 32>}, {pipeline_mode = #tpu.pipeline_mode<synchronous>, transform_indices = @transform_3, window_bounds = array<i64: 1, 32>}, {pipeline_mode = #tpu.pipeline_mode<synchronous>, transform_indices = @transform_4, window_bounds = array<i64: 1, 32>}, {pipeline_mode = #tpu.pipeline_mode<synchronous>, transform_indices = @transform_5, window_bounds = array<i64: 1, 32>}, {pipeline_mode = #tpu.pipeline_mode<synchronous>, transform_indices = @transform_6, window_bounds = array<i64: 32, 32>}, {pipeline_mode = #tpu.pipeline_mode<synchronous>, transform_indices = @transform_7, window_bounds = array<i64: 32, 64>}, {pipeline_mode = #tpu.pipeline_mode<synchronous>, transform_indices = @transform_8, window_bounds = array<i64: 32, 32>}, {transform_indices = @transform_9, window_bounds = array<i64: 1, 8, 32>}]} {
    %c0 = arith.constant 0 : index
    %c0_0 = arith.constant 0 : index
    %c0_1 = arith.constant 0 : index
    %0 = vector.load %arg1[%c0, %c0_0, %c0_1] : memref<1x16x32xbf16, #tpu.memory_space<vmem>>, vector<1x16x32xbf16>
    %1 = arith.extf %0 : vector<1x16x32xbf16> to vector<1x16x32xf32>
    %c0_2 = arith.constant 0 : index
    %c0_3 = arith.constant 0 : index
    %c0_4 = arith.constant 0 : index
    %2 = vector.load %arg2[%c0_2, %c0_3, %c0_4] : memref<1x8x32xbf16, #tpu.memory_space<vmem>>, vector<1x8x32xbf16>
    %3 = arith.extf %2 : vector<1x8x32xbf16> to vector<1x8x32xf32>
    %c0_5 = arith.constant 0 : index
    %c0_6 = arith.constant 0 : index
    %4 = vector.load %arg3[%c0_5, %c0_6] : memref<1x32xf32, #tpu.memory_space<vmem>>, vector<1x32xf32>
    %c0_7 = arith.constant 0 : index
    %c0_8 = arith.constant 0 : index
    %5 = vector.load %arg4[%c0_7, %c0_8] : memref<1x32xf32, #tpu.memory_space<vmem>>, vector<1x32xf32>
    %cst = arith.constant dense<0.000000e+00> : vector<1x16xf32>
    %6 = vector.multi_reduction <add>, %1, %cst [2] : vector<1x16x32xf32> to vector<1x16xf32>
    %7 = vector.shape_cast %6 : vector<1x16xf32> to vector<1x16x1xf32>
    %cst_9 = arith.constant 3.200000e+01 : f32
    %8 = vector.broadcast %cst_9 : f32 to vector<1x16x1xf32>
    %9 = arith.divf %7, %8 : vector<1x16x1xf32>
    %10 = vector.broadcast %9 : vector<1x16x1xf32> to vector<1x16x32xf32>
    %11 = arith.subf %1, %10 : vector<1x16x32xf32>
    %12 = arith.mulf %11, %11 : vector<1x16x32xf32>
    %cst_10 = arith.constant dense<0.000000e+00> : vector<1x16xf32>
    %13 = vector.multi_reduction <add>, %12, %cst_10 [2] : vector<1x16x32xf32> to vector<1x16xf32>
    %14 = vector.shape_cast %13 : vector<1x16xf32> to vector<1x16x1xf32>
    %cst_11 = arith.constant 3.200000e+01 : f32
    %15 = vector.broadcast %cst_11 : f32 to vector<1x16x1xf32>
    %16 = arith.divf %14, %15 : vector<1x16x1xf32>
    %17 = vector.broadcast %9 : vector<1x16x1xf32> to vector<1x16x32xf32>
    %18 = arith.subf %1, %17 : vector<1x16x32xf32>
    %cst_12 = arith.constant 9.99999974E-6 : f32
    %19 = vector.broadcast %cst_12 : f32 to vector<1x16x1xf32>
    %20 = arith.addf %16, %19 : vector<1x16x1xf32>
    %21 = math.rsqrt %20 : vector<1x16x1xf32>
    %22 = vector.broadcast %21 : vector<1x16x1xf32> to vector<1x16x32xf32>
    %23 = arith.mulf %18, %22 : vector<1x16x32xf32>
    %24 = vector.shape_cast %4 : vector<1x32xf32> to vector<1x1x32xf32>
    %25 = vector.broadcast %24 : vector<1x1x32xf32> to vector<1x16x32xf32>
    %26 = arith.mulf %23, %25 : vector<1x16x32xf32>
    %27 = vector.shape_cast %5 : vector<1x32xf32> to vector<1x1x32xf32>
    %28 = vector.broadcast %27 : vector<1x1x32xf32> to vector<1x16x32xf32>
    %29 = arith.addf %26, %28 : vector<1x16x32xf32>
    %30 = vector.shape_cast %29 : vector<1x16x32xf32> to vector<16x32xf32>
    %31 = arith.truncf %30 : vector<16x32xf32> to vector<16x32xbf16>
    %c0_13 = arith.constant 0 : index
    %c0_14 = arith.constant 0 : index
    %32 = vector.load %arg5[%c0_13, %c0_14] : memref<1x32xf32, #tpu.memory_space<vmem>>, vector<1x32xf32>
    %c0_15 = arith.constant 0 : index
    %c0_16 = arith.constant 0 : index
    %33 = vector.load %arg6[%c0_15, %c0_16] : memref<1x32xf32, #tpu.memory_space<vmem>>, vector<1x32xf32>
    %cst_17 = arith.constant dense<0.000000e+00> : vector<1x8xf32>
    %34 = vector.multi_reduction <add>, %3, %cst_17 [2] : vector<1x8x32xf32> to vector<1x8xf32>
    %35 = vector.shape_cast %34 : vector<1x8xf32> to vector<1x8x1xf32>
    %cst_18 = arith.constant 3.200000e+01 : f32
    %36 = vector.broadcast %cst_18 : f32 to vector<1x8x1xf32>
    %37 = arith.divf %35, %36 : vector<1x8x1xf32>
    %38 = vector.broadcast %37 : vector<1x8x1xf32> to vector<1x8x32xf32>
    %39 = arith.subf %3, %38 : vector<1x8x32xf32>
    %40 = arith.mulf %39, %39 : vector<1x8x32xf32>
    %cst_19 = arith.constant dense<0.000000e+00> : vector<1x8xf32>
    %41 = vector.multi_reduction <add>, %40, %cst_19 [2] : vector<1x8x32xf32> to vector<1x8xf32>
    %42 = vector.shape_cast %41 : vector<1x8xf32> to vector<1x8x1xf32>
    %cst_20 = arith.constant 3.200000e+01 : f32
    %43 = vector.broadcast %cst_20 : f32 to vector<1x8x1xf32>
    %44 = arith.divf %42, %43 : vector<1x8x1xf32>
    %45 = vector.broadcast %37 : vector<1x8x1xf32> to vector<1x8x32xf32>
    %46 = arith.subf %3, %45 : vector<1x8x32xf32>
    %cst_21 = arith.constant 9.99999974E-6 : f32
    %47 = vector.broadcast %cst_21 : f32 to vector<1x8x1xf32>
    %48 = arith.addf %44, %47 : vector<1x8x1xf32>
    %49 = math.rsqrt %48 : vector<1x8x1xf32>
    %50 = vector.broadcast %49 : vector<1x8x1xf32> to vector<1x8x32xf32>
    %51 = arith.mulf %46, %50 : vector<1x8x32xf32>
    %52 = vector.shape_cast %32 : vector<1x32xf32> to vector<1x1x32xf32>
    %53 = vector.broadcast %52 : vector<1x1x32xf32> to vector<1x8x32xf32>
    %54 = arith.mulf %51, %53 : vector<1x8x32xf32>
    %55 = vector.shape_cast %33 : vector<1x32xf32> to vector<1x1x32xf32>
    %56 = vector.broadcast %55 : vector<1x1x32xf32> to vector<1x8x32xf32>
    %57 = arith.addf %54, %56 : vector<1x8x32xf32>
    %58 = vector.shape_cast %57 : vector<1x8x32xf32> to vector<8x32xf32>
    %59 = arith.truncf %58 : vector<8x32xf32> to vector<8x32xbf16>
    %c0_22 = arith.constant 0 : index
    %c0_23 = arith.constant 0 : index
    %60 = vector.load %arg7[%c0_22, %c0_23] : memref<32x32xbf16, #tpu.memory_space<vmem>>, vector<32x32xbf16>
    %cst_24 = arith.constant dense<0.000000e+00> : vector<8x32xf32>
    %61 = tpu.matmul %59, %60, %cst_24 {dimension_numbers = #tpu.dot_dimension_numbers<[1], [0], [0], [1], [0, 0, 1, 1], [], []>} : vector<8x32xbf16>, vector<32x32xbf16>, vector<8x32xf32> -> vector<8x32xf32>
    %62 = arith.truncf %61 : vector<8x32xf32> to vector<8x32xbf16>
    %c0_25 = arith.constant 0 : index
    %c0_26 = arith.constant 0 : index
    %63 = vector.load %arg8[%c0_25, %c0_26] : memref<32x64xbf16, #tpu.memory_space<vmem>>, vector<32x64xbf16>
    %cst_27 = arith.constant dense<0.000000e+00> : vector<16x64xf32>
    %64 = tpu.matmul %31, %63, %cst_27 {dimension_numbers = #tpu.dot_dimension_numbers<[1], [0], [0], [1], [0, 0, 1, 1], [], []>} : vector<16x32xbf16>, vector<32x64xbf16>, vector<16x64xf32> -> vector<16x64xf32>
    %65 = arith.truncf %64 : vector<16x64xf32> to vector<16x64xbf16>
    %c0_28 = arith.constant 0 : index
    %c0_29 = arith.constant 0 : index
    %66 = vector.load %arg8[%c0_28, %c0_29] : memref<32x64xbf16, #tpu.memory_space<vmem>>, vector<32x64xbf16>
    %cst_30 = arith.constant dense<0.000000e+00> : vector<8x64xf32>
    %67 = tpu.matmul %59, %66, %cst_30 {dimension_numbers = #tpu.dot_dimension_numbers<[1], [0], [0], [1], [0, 0, 1, 1], [], []>} : vector<8x32xbf16>, vector<32x64xbf16>, vector<8x64xf32> -> vector<8x64xf32>
    %68 = arith.truncf %67 : vector<8x64xf32> to vector<8x64xbf16>
    %69 = vector.shape_cast %62 : vector<8x32xbf16> to vector<1x8x4x8xbf16>
    %70 = tpu.transpose %69, [0, 2, 1, 3] : vector<1x8x4x8xbf16> -> vector<1x4x8x8xbf16>
    %71 = vector.shape_cast %70 : vector<1x4x8x8xbf16> to vector<4x8x8xbf16>
    %72 = vector.shape_cast %65 : vector<16x64xbf16> to vector<1x16x8x8xbf16>
    %73 = tpu.transpose %72, [0, 2, 1, 3] : vector<1x16x8x8xbf16> -> vector<1x8x16x8xbf16>
    %74 = vector.shape_cast %68 : vector<8x64xbf16> to vector<1x8x8x8xbf16>
    %75 = tpu.transpose %74, [0, 2, 1, 3] : vector<1x8x8x8xbf16> -> vector<1x8x8x8xbf16>
    %76 = vector.extract_strided_slice %73 {offsets = [0, 0, 0, 0], sizes = [1, 4, 16, 8], strides = [1, 1, 1, 1]} : vector<1x8x16x8xbf16> to vector<1x4x16x8xbf16>
    %77 = vector.shape_cast %76 : vector<1x4x16x8xbf16> to vector<4x16x8xbf16>
    %78 = vector.extract_strided_slice %73 {offsets = [0, 4, 0, 0], sizes = [1, 4, 16, 8], strides = [1, 1, 1, 1]} : vector<1x8x16x8xbf16> to vector<1x4x16x8xbf16>
    %79 = vector.shape_cast %78 : vector<1x4x16x8xbf16> to vector<4x16x8xbf16>
    %80 = vector.extract_strided_slice %75 {offsets = [0, 0, 0, 0], sizes = [1, 4, 8, 8], strides = [1, 1, 1, 1]} : vector<1x8x8x8xbf16> to vector<1x4x8x8xbf16>
    %81 = vector.shape_cast %80 : vector<1x4x8x8xbf16> to vector<4x8x8xbf16>
    %82 = vector.extract_strided_slice %75 {offsets = [0, 4, 0, 0], sizes = [1, 4, 8, 8], strides = [1, 1, 1, 1]} : vector<1x8x8x8xbf16> to vector<1x4x8x8xbf16>
    %83 = vector.shape_cast %82 : vector<1x4x8x8xbf16> to vector<4x8x8xbf16>
    "tpu.trace_start"() <{level = 10 : i32, message = "zqd,zkd->zqk"}> : () -> ()
    %cst_31 = arith.constant dense<0.000000e+00> : vector<4x8x16xf32>
    %84 = tpu.matmul %71, %77, %cst_31 {dimension_numbers = #tpu.dot_dimension_numbers<[2], [2], [1], [1], [0, 0, 0, 1, 1, 1], [0], [0]>} : vector<4x8x8xbf16>, vector<4x16x8xbf16>, vector<4x8x16xf32> -> vector<4x8x16xf32>
    %cst_32 = arith.constant dense<0.000000e+00> : vector<4x8x8xf32>
    %85 = tpu.matmul %71, %81, %cst_32 {dimension_numbers = #tpu.dot_dimension_numbers<[2], [2], [1], [1], [0, 0, 0, 1, 1, 1], [0], [0]>} : vector<4x8x8xbf16>, vector<4x8x8xbf16>, vector<4x8x8xf32> -> vector<4x8x8xf32>
    "tpu.trace_stop"() : () -> ()
    %cst_33 = arith.constant dense<0xFF800000> : vector<4x8xf32>
    %86 = vector.multi_reduction <maximumf>, %84, %cst_33 [2] : vector<4x8x16xf32> to vector<4x8xf32>
    %87 = vector.shape_cast %86 : vector<4x8xf32> to vector<4x8x1xf32>
    %cst_34 = arith.constant dense<0xFF800000> : vector<4x8xf32>
    %88 = vector.multi_reduction <maximumf>, %85, %cst_34 [2] : vector<4x8x8xf32> to vector<4x8xf32>
    %89 = vector.shape_cast %88 : vector<4x8xf32> to vector<4x8x1xf32>
    %90 = arith.maximumf %87, %89 : vector<4x8x1xf32>
    %91 = vector.broadcast %90 : vector<4x8x1xf32> to vector<4x8x16xf32>
    %92 = arith.subf %84, %91 : vector<4x8x16xf32>
    %93 = math.exp %92 : vector<4x8x16xf32>
    %94 = vector.broadcast %90 : vector<4x8x1xf32> to vector<4x8x8xf32>
    %95 = arith.subf %85, %94 : vector<4x8x8xf32>
    %96 = math.exp %95 : vector<4x8x8xf32>
    %cst_35 = arith.constant dense<0.000000e+00> : vector<4x8xf32>
    %97 = vector.multi_reduction <add>, %93, %cst_35 [2] : vector<4x8x16xf32> to vector<4x8xf32>
    %98 = vector.shape_cast %97 : vector<4x8xf32> to vector<4x8x1xf32>
    %cst_36 = arith.constant dense<0.000000e+00> : vector<4x8xf32>
    %99 = vector.multi_reduction <add>, %96, %cst_36 [2] : vector<4x8x8xf32> to vector<4x8xf32>
    %100 = vector.shape_cast %99 : vector<4x8xf32> to vector<4x8x1xf32>
    %101 = arith.addf %98, %100 : vector<4x8x1xf32>
    %102 = tpu.reciprocal %101 {approx = true} : vector<4x8x1xf32> -> vector<4x8x1xf32>
    %103 = arith.truncf %93 : vector<4x8x16xf32> to vector<4x8x16xbf16>
    "tpu.trace_start"() <{level = 10 : i32, message = "zqk,zkd->zqd"}> : () -> ()
    %cst_37 = arith.constant dense<0.000000e+00> : vector<4x8x8xf32>
    %104 = tpu.matmul %103, %79, %cst_37 {dimension_numbers = #tpu.dot_dimension_numbers<[2], [1], [1], [2], [0, 0, 0, 1, 1, 2], [0], [0]>} : vector<4x8x16xbf16>, vector<4x16x8xbf16>, vector<4x8x8xf32> -> vector<4x8x8xf32>
    "tpu.trace_stop"() : () -> ()
    %105 = arith.truncf %96 : vector<4x8x8xf32> to vector<4x8x8xbf16>
    "tpu.trace_start"() <{level = 10 : i32, message = "zqk,zkd->zqd"}> : () -> ()
    %cst_38 = arith.constant dense<0.000000e+00> : vector<4x8x8xf32>
    %106 = tpu.matmul %105, %83, %cst_38 {dimension_numbers = #tpu.dot_dimension_numbers<[2], [1], [1], [2], [0, 0, 0, 1, 1, 2], [0], [0]>} : vector<4x8x8xbf16>, vector<4x8x8xbf16>, vector<4x8x8xf32> -> vector<4x8x8xf32>
    "tpu.trace_stop"() : () -> ()
    %107 = arith.addf %104, %106 : vector<4x8x8xf32>
    %108 = vector.broadcast %102 : vector<4x8x1xf32> to vector<4x8x8xf32>
    %109 = arith.mulf %107, %108 : vector<4x8x8xf32>
    %110 = arith.truncf %109 : vector<4x8x8xf32> to vector<4x8x8xbf16>
    %111 = vector.shape_cast %110 : vector<4x8x8xbf16> to vector<1x4x8x8xbf16>
    %112 = tpu.transpose %111, [0, 2, 1, 3] : vector<1x4x8x8xbf16> -> vector<1x8x4x8xbf16>
    %113 = vector.shape_cast %112 : vector<1x8x4x8xbf16> to vector<8x32xbf16>
    %c0_39 = arith.constant 0 : index
    %c0_40 = arith.constant 0 : index
    %114 = vector.load %arg9[%c0_39, %c0_40] : memref<32x32xbf16, #tpu.memory_space<vmem>>, vector<32x32xbf16>
    %cst_41 = arith.constant dense<0.000000e+00> : vector<8x32xf32>
    %115 = tpu.matmul %113, %114, %cst_41 {dimension_numbers = #tpu.dot_dimension_numbers<[1], [0], [0], [1], [0, 0, 1, 1], [], []>} : vector<8x32xbf16>, vector<32x32xbf16>, vector<8x32xf32> -> vector<8x32xf32>
    %116 = vector.shape_cast %115 : vector<8x32xf32> to vector<1x8x32xf32>
    %117 = arith.truncf %116 : vector<1x8x32xf32> to vector<1x8x32xbf16>
    %c0_42 = arith.constant 0 : index
    %c0_43 = arith.constant 0 : index
    %c0_44 = arith.constant 0 : index
    %118 = vector.load %arg10[%c0_42, %c0_43, %c0_44] : memref<1x8x32xbf16, #tpu.memory_space<vmem>>, vector<1x8x32xbf16>
    tpu.vector_store %arg10[%c0_42, %c0_43, %c0_44], %117 {strides = array<i32>} : memref<1x8x32xbf16, #tpu.memory_space<vmem>>, vector<1x8x32xbf16>,
    return
  }
  func.func @transform_0(%arg0: i32) -> (i32, i32, i32) {
    %c0_i32 = arith.constant 0 : i32
    %c0_i32_0 = arith.constant 0 : i32
    %c0_i32_1 = arith.constant 0 : i32
    return %arg0, %c0_i32, %c0_i32_0 : i32, i32, i32
  }
  func.func @transform_1(%arg0: i32) -> (i32, i32, i32) {
    %c0_i32 = arith.constant 0 : i32
    %c0_i32_0 = arith.constant 0 : i32
    %c0_i32_1 = arith.constant 0 : i32
    return %arg0, %c0_i32, %c0_i32_0 : i32, i32, i32
  }
  func.func @transform_2(%arg0: i32) -> (i32, i32) {
    %c0_i32 = arith.constant 0 : i32
    %c0_i32_0 = arith.constant 0 : i32
    %c0_i32_1 = arith.constant 0 : i32
    return %c0_i32, %c0_i32_0 : i32, i32
  }
  func.func @transform_3(%arg0: i32) -> (i32, i32) {
    %c0_i32 = arith.constant 0 : i32
    %c0_i32_0 = arith.constant 0 : i32
    %c0_i32_1 = arith.constant 0 : i32
    return %c0_i32, %c0_i32_0 : i32, i32
  }
  func.func @transform_4(%arg0: i32) -> (i32, i32) {
    %c0_i32 = arith.constant 0 : i32
    %c0_i32_0 = arith.constant 0 : i32
    %c0_i32_1 = arith.constant 0 : i32
    return %c0_i32, %c0_i32_0 : i32, i32
  }
  func.func @transform_5(%arg0: i32) -> (i32, i32) {
    %c0_i32 = arith.constant 0 : i32
    %c0_i32_0 = arith.constant 0 : i32
    %c0_i32_1 = arith.constant 0 : i32
    return %c0_i32, %c0_i32_0 : i32, i32
  }
  func.func @transform_6(%arg0: i32) -> (i32, i32) {
    %c0_i32 = arith.constant 0 : i32
    %c0_i32_0 = arith.constant 0 : i32
    %c0_i32_1 = arith.constant 0 : i32
    return %c0_i32, %c0_i32_0 : i32, i32
  }
  func.func @transform_7(%arg0: i32) -> (i32, i32) {
    %c0_i32 = arith.constant 0 : i32
    %c0_i32_0 = arith.constant 0 : i32
    %c0_i32_1 = arith.constant 0 : i32
    return %c0_i32, %c0_i32_0 : i32, i32
  }
  func.func @transform_8(%arg0: i32) -> (i32, i32) {
    %c0_i32 = arith.constant 0 : i32
    %c0_i32_0 = arith.constant 0 : i32
    %c0_i32_1 = arith.constant 0 : i32
    return %c0_i32, %c0_i32_0 : i32, i32
  }
  func.func @transform_9(%arg0: i32) -> (i32, i32, i32) {
    %c0_i32 = arith.constant 0 : i32
    %c0_i32_0 = arith.constant 0 : i32
    %c0_i32_1 = arith.constant 0 : i32
    return %arg0, %c0_i32, %c0_i32_0 : i32, i32, i32
  }
}

module attributes {stable_mosaic.version = 11 : i64} {
  func.func @_perceiver_attn_kernel(%arg0: i32, %arg1: memref<1x16x32xbf16, #tpu.memory_space<vmem>>, %arg2: memref<1x8x32xbf16, #tpu.memory_space<vmem>>, %arg3: memref<1x32xf32, #tpu.memory_space<vmem>>, %arg4: memref<1x32xf32, #tpu.memory_space<vmem>>, %arg5: memref<1x32xf32, #tpu.memory_space<vmem>>, %arg6: memref<1x32xf32, #tpu.memory_space<vmem>>, %arg7: memref<32x32xbf16, #tpu.memory_space<vmem>>, %arg8: memref<32x64xbf16, #tpu.memory_space<vmem>>, %arg9: memref<32x32xbf16, #tpu.memory_space<vmem>>, %arg10: memref<1x8x32xbf16, #tpu.memory_space<vmem>>) attributes {dimension_semantics = [#tpu.dimension_semantics<parallel>], iteration_bounds = array<i64: 2>, scalar_prefetch = 0 : i64, scratch_operands = 0 : i64, tpu.core_type = #tpu.core_type<tc>, window_params = [{transform_indices = @transform_0, window_bounds = array<i64: 1, 16, 32>}, {transform_indices = @transform_1, window_bounds = array<i64: 1, 8, 32>}, {pipeline_mode = #tpu.pipeline_mode<synchronous>, transform_indices = @transform_2, window_bounds = array<i64: 1, 32>}, {pipeline_mode = #tpu.pipeline_mode<synchronous>, transform_indices = @transform_3, window_bounds = array<i64: 1, 32>}, {pipeline_mode = #tpu.pipeline_mode<synchronous>, transform_indices = @transform_4, window_bounds = array<i64: 1, 32>}, {pipeline_mode = #tpu.pipeline_mode<synchronous>, transform_indices = @transform_5, window_bounds = array<i64: 1, 32>}, {pipeline_mode = #tpu.pipeline_mode<synchronous>, transform_indices = @transform_6, window_bounds = array<i64: 32, 32>}, {pipeline_mode = #tpu.pipeline_mode<synchronous>, transform_indices = @transform_7, window_bounds = array<i64: 32, 64>}, {pipeline_mode = #tpu.pipeline_mode<synchronous>, transform_indices = @transform_8, window_bounds = array<i64: 32, 32>}, {transform_indices = @transform_9, window_bounds = array<i64: 1, 8, 32>}]} {
    %c0 = arith.constant 0 : index
    %c0_0 = arith.constant 0 : index
    %c0_1 = arith.constant 0 : index
    %0 = vector.load %arg1[%c0, %c0_0, %c0_1] : memref<1x16x32xbf16, #tpu.memory_space<vmem>>, vector<1x16x32xbf16>
    %1 = arith.extf %0 : vector<1x16x32xbf16> to vector<1x16x32xf32>
    %c0_2 = arith.constant 0 : index
    %c0_3 = arith.constant 0 : index
    %c0_4 = arith.constant 0 : index
    %2 = vector.load %arg2[%c0_2, %c0_3, %c0_4] : memref<1x8x32xbf16, #tpu.memory_space<vmem>>, vector<1x8x32xbf16>
    %3 = arith.extf %2 : vector<1x8x32xbf16> to vector<1x8x32xf32>
    %c0_5 = arith.constant 0 : index
    %c0_6 = arith.constant 0 : index
    %4 = vector.load %arg3[%c0_5, %c0_6] : memref<1x32xf32, #tpu.memory_space<vmem>>, vector<1x32xf32>
    %c0_7 = arith.constant 0 : index
    %c0_8 = arith.constant 0 : index
    %5 = vector.load %arg4[%c0_7, %c0_8] : memref<1x32xf32, #tpu.memory_space<vmem>>, vector<1x32xf32>
    %cst = arith.constant dense<0.000000e+00> : vector<1x16xf32>
    %6 = vector.multi_reduction <add>, %1, %cst [2] : vector<1x16x32xf32> to vector<1x16xf32>
    %7 = vector.shape_cast %6 : vector<1x16xf32> to vector<1x16x1xf32>
    %cst_9 = arith.constant 3.200000e+01 : f32
    %8 = vector.broadcast %cst_9 : f32 to vector<1x16x1xf32>
    %9 = arith.divf %7, %8 : vector<1x16x1xf32>
    %10 = vector.broadcast %9 : vector<1x16x1xf32> to vector<1x16x32xf32>
    %11 = arith.subf %1, %10 : vector<1x16x32xf32>
    %12 = arith.mulf %11, %11 : vector<1x16x32xf32>
    %cst_10 = arith.constant dense<0.000000e+00> : vector<1x16xf32>
    %13 = vector.multi_reduction <add>, %12, %cst_10 [2] : vector<1x16x32xf32> to vector<1x16xf32>
    %14 = vector.shape_cast %13 : vector<1x16xf32> to vector<1x16x1xf32>
    %cst_11 = arith.constant 3.200000e+01 : f32
    %15 = vector.broadcast %cst_11 : f32 to vector<1x16x1xf32>
    %16 = arith.divf %14, %15 : vector<1x16x1xf32>
    %17 = vector.broadcast %9 : vector<1x16x1xf32> to vector<1x16x32xf32>
    %18 = arith.subf %1, %17 : vector<1x16x32xf32>
    %cst_12 = arith.constant 9.99999974E-6 : f32
    %19 = vector.broadcast %cst_12 : f32 to vector<1x16x1xf32>
    %20 = arith.addf %16, %19 : vector<1x16x1xf32>
    %21 = math.rsqrt %20 : vector<1x16x1xf32>
    %22 = vector.broadcast %21 : vector<1x16x1xf32> to vector<1x16x32xf32>
    %23 = arith.mulf %18, %22 : vector<1x16x32xf32>
    %24 = vector.shape_cast %4 : vector<1x32xf32> to vector<1x1x32xf32>
    %25 = vector.broadcast %24 : vector<1x1x32xf32> to vector<1x16x32xf32>
    %26 = arith.mulf %23, %25 : vector<1x16x32xf32>
    %27 = vector.shape_cast %5 : vector<1x32xf32> to vector<1x1x32xf32>
    %28 = vector.broadcast %27 : vector<1x1x32xf32> to vector<1x16x32xf32>
    %29 = arith.addf %26, %28 : vector<1x16x32xf32>
    %30 = vector.shape_cast %29 : vector<1x16x32xf32> to vector<16x32xf32>
    %31 = arith.truncf %30 : vector<16x32xf32> to vector<16x32xbf16>
    %c0_13 = arith.constant 0 : index
    %c0_14 = arith.constant 0 : index
    %32 = vector.load %arg5[%c0_13, %c0_14] : memref<1x32xf32, #tpu.memory_space<vmem>>, vector<1x32xf32>
    %c0_15 = arith.constant 0 : index
    %c0_16 = arith.constant 0 : index
    %33 = vector.load %arg6[%c0_15, %c0_16] : memref<1x32xf32, #tpu.memory_space<vmem>>, vector<1x32xf32>
    %cst_17 = arith.constant dense<0.000000e+00> : vector<1x8xf32>
    %34 = vector.multi_reduction <add>, %3, %cst_17 [2] : vector<1x8x32xf32> to vector<1x8xf32>
    %35 = vector.shape_cast %34 : vector<1x8xf32> to vector<1x8x1xf32>
    %cst_18 = arith.constant 3.200000e+01 : f32
    %36 = vector.broadcast %cst_18 : f32 to vector<1x8x1xf32>
    %37 = arith.divf %35, %36 : vector<1x8x1xf32>
    %38 = vector.broadcast %37 : vector<1x8x1xf32> to vector<1x8x32xf32>
    %39 = arith.subf %3, %38 : vector<1x8x32xf32>
    %40 = arith.mulf %39, %39 : vector<1x8x32xf32>
    %cst_19 = arith.constant dense<0.000000e+00> : vector<1x8xf32>
    %41 = vector.multi_reduction <add>, %40, %cst_19 [2] : vector<1x8x32xf32> to vector<1x8xf32>
    %42 = vector.shape_cast %41 : vector<1x8xf32> to vector<1x8x1xf32>
    %cst_20 = arith.constant 3.200000e+01 : f32
    %43 = vector.broadcast %cst_20 : f32 to vector<1x8x1xf32>
    %44 = arith.divf %42, %43 : vector<1x8x1xf32>
    %45 = vector.broadcast %37 : vector<1x8x1xf32> to vector<1x8x32xf32>
    %46 = arith.subf %3, %45 : vector<1x8x32xf32>
    %cst_21 = arith.constant 9.99999974E-6 : f32
    %47 = vector.broadcast %cst_21 : f32 to vector<1x8x1xf32>
    %48 = arith.addf %44, %47 : vector<1x8x1xf32>
    %49 = math.rsqrt %48 : vector<1x8x1xf32>
    %50 = vector.broadcast %49 : vector<1x8x1xf32> to vector<1x8x32xf32>
    %51 = arith.mulf %46, %50 : vector<1x8x32xf32>
    %52 = vector.shape_cast %32 : vector<1x32xf32> to vector<1x1x32xf32>
    %53 = vector.broadcast %52 : vector<1x1x32xf32> to vector<1x8x32xf32>
    %54 = arith.mulf %51, %53 : vector<1x8x32xf32>
    %55 = vector.shape_cast %33 : vector<1x32xf32> to vector<1x1x32xf32>
    %56 = vector.broadcast %55 : vector<1x1x32xf32> to vector<1x8x32xf32>
    %57 = arith.addf %54, %56 : vector<1x8x32xf32>
    %58 = vector.shape_cast %57 : vector<1x8x32xf32> to vector<8x32xf32>
    %59 = arith.truncf %58 : vector<8x32xf32> to vector<8x32xbf16>
    %c0_22 = arith.constant 0 : index
    %c0_23 = arith.constant 0 : index
    %60 = vector.load %arg7[%c0_22, %c0_23] : memref<32x32xbf16, #tpu.memory_space<vmem>>, vector<32x32xbf16>
    %cst_24 = arith.constant dense<0.000000e+00> : vector<8x32xf32>
    %61 = tpu.matmul %59, %60, %cst_24 {dimension_numbers = #tpu.dot_dimension_numbers<[1], [0], [0], [1], [0, 0, 1, 1], [], []>} : vector<8x32xbf16>, vector<32x32xbf16>, vector<8x32xf32> -> vector<8x32xf32>
    %62 = arith.truncf %61 : vector<8x32xf32> to vector<8x32xbf16>
    %c0_25 = arith.constant 0 : index
    %c0_26 = arith.constant 0 : index
    %63 = vector.load %arg8[%c0_25, %c0_26] : memref<32x64xbf16, #tpu.memory_space<vmem>>, vector<32x64xbf16>
    %cst_27 = arith.constant dense<0.000000e+00> : vector<16x64xf32>
    %64 = tpu.matmul %31, %63, %cst_27 {dimension_numbers = #tpu.dot_dimension_numbers<[1], [0], [0], [1], [0, 0, 1, 1], [], []>} : vector<16x32xbf16>, vector<32x64xbf16>, vector<16x64xf32> -> vector<16x64xf32>
    %65 = arith.truncf %64 : vector<16x64xf32> to vector<16x64xbf16>
    %c0_28 = arith.constant 0 : index
    %c0_29 = arith.constant 0 : index
    %66 = vector.load %arg8[%c0_28, %c0_29] : memref<32x64xbf16, #tpu.memory_space<vmem>>, vector<32x64xbf16>
    %cst_30 = arith.constant dense<0.000000e+00> : vector<8x64xf32>
    %67 = tpu.matmul %59, %66, %cst_30 {dimension_numbers = #tpu.dot_dimension_numbers<[1], [0], [0], [1], [0, 0, 1, 1], [], []>} : vector<8x32xbf16>, vector<32x64xbf16>, vector<8x64xf32> -> vector<8x64xf32>
    %68 = arith.truncf %67 : vector<8x64xf32> to vector<8x64xbf16>
    %69 = vector.shape_cast %62 : vector<8x32xbf16> to vector<1x8x4x8xbf16>
    %70 = tpu.transpose %69, [0, 2, 1, 3] : vector<1x8x4x8xbf16> -> vector<1x4x8x8xbf16>
    %71 = vector.shape_cast %70 : vector<1x4x8x8xbf16> to vector<4x8x8xbf16>
    %72 = vector.shape_cast %65 : vector<16x64xbf16> to vector<1x16x8x8xbf16>
    %73 = tpu.transpose %72, [0, 2, 1, 3] : vector<1x16x8x8xbf16> -> vector<1x8x16x8xbf16>
    %74 = vector.shape_cast %68 : vector<8x64xbf16> to vector<1x8x8x8xbf16>
    %75 = tpu.transpose %74, [0, 2, 1, 3] : vector<1x8x8x8xbf16> -> vector<1x8x8x8xbf16>
    %76 = vector.extract_strided_slice %73 {offsets = [0, 0, 0, 0], sizes = [1, 4, 16, 8], strides = [1, 1, 1, 1]} : vector<1x8x16x8xbf16> to vector<1x4x16x8xbf16>
    %77 = vector.shape_cast %76 : vector<1x4x16x8xbf16> to vector<4x16x8xbf16>
    %78 = vector.extract_strided_slice %73 {offsets = [0, 4, 0, 0], sizes = [1, 4, 16, 8], strides = [1, 1, 1, 1]} : vector<1x8x16x8xbf16> to vector<1x4x16x8xbf16>
    %79 = vector.shape_cast %78 : vector<1x4x16x8xbf16> to vector<4x16x8xbf16>
    %80 = vector.extract_strided_slice %75 {offsets = [0, 0, 0, 0], sizes = [1, 4, 8, 8], strides = [1, 1, 1, 1]} : vector<1x8x8x8xbf16> to vector<1x4x8x8xbf16>
    %81 = vector.shape_cast %80 : vector<1x4x8x8xbf16> to vector<4x8x8xbf16>
    %82 = vector.extract_strided_slice %75 {offsets = [0, 4, 0, 0], sizes = [1, 4, 8, 8], strides = [1, 1, 1, 1]} : vector<1x8x8x8xbf16> to vector<1x4x8x8xbf16>
    %83 = vector.shape_cast %82 : vector<1x4x8x8xbf16> to vector<4x8x8xbf16>
    "tpu.trace_start"() <{level = 10 : i32, message = "zqd,zkd->zqk"}> : () -> ()
    %cst_31 = arith.constant dense<0.000000e+00> : vector<4x8x16xf32>
    %84 = tpu.matmul %71, %77, %cst_31 {dimension_numbers = #tpu.dot_dimension_numbers<[2], [2], [1], [1], [0, 0, 0, 1, 1, 1], [0], [0]>} : vector<4x8x8xbf16>, vector<4x16x8xbf16>, vector<4x8x16xf32> -> vector<4x8x16xf32>
    %cst_32 = arith.constant dense<0.000000e+00> : vector<4x8x8xf32>
    %85 = tpu.matmul %71, %81, %cst_32 {dimension_numbers = #tpu.dot_dimension_numbers<[2], [2], [1], [1], [0, 0, 0, 1, 1, 1], [0], [0]>} : vector<4x8x8xbf16>, vector<4x8x8xbf16>, vector<4x8x8xf32> -> vector<4x8x8xf32>
    "tpu.trace_stop"() : () -> ()
    %cst_33 = arith.constant dense<0xFF800000> : vector<4x8xf32>
    %86 = vector.multi_reduction <maximumf>, %84, %cst_33 [2] : vector<4x8x16xf32> to vector<4x8xf32>
    %87 = vector.shape_cast %86 : vector<4x8xf32> to vector<4x8x1xf32>
    %cst_34 = arith.constant dense<0xFF800000> : vector<4x8xf32>
    %88 = vector.multi_reduction <maximumf>, %85, %cst_34 [2] : vector<4x8x8xf32> to vector<4x8xf32>
    %89 = vector.shape_cast %88 : vector<4x8xf32> to vector<4x8x1xf32>
    %90 = arith.maximumf %87, %89 : vector<4x8x1xf32>
    %91 = vector.broadcast %90 : vector<4x8x1xf32> to vector<4x8x16xf32>
    %92 = arith.subf %84, %91 : vector<4x8x16xf32>
    %93 = math.exp %92 : vector<4x8x16xf32>
    %94 = vector.broadcast %90 : vector<4x8x1xf32> to vector<4x8x8xf32>
    %95 = arith.subf %85, %94 : vector<4x8x8xf32>
    %96 = math.exp %95 : vector<4x8x8xf32>
    %cst_35 = arith.constant dense<0.000000e+00> : vector<4x8xf32>
    %97 = vector.multi_reduction <add>, %93, %cst_35 [2] : vector<4x8x16xf32> to vector<4x8xf32>
    %98 = vector.shape_cast %97 : vector<4x8xf32> to vector<4x8x1xf32>
    %cst_36 = arith.constant dense<0.000000e+00> : vector<4x8xf32>
    %99 = vector.multi_reduction <add>, %96, %cst_36 [2] : vector<4x8x8xf32> to vector<4x8xf32>
    %100 = vector.shape_cast %99 : vector<4x8xf32> to vector<4x8x1xf32>
    %101 = arith.addf %98, %100 : vector<4x8x1xf32>
    %102 = tpu.reciprocal %101 {approx = true} : vector<4x8x1xf32> -> vector<4x8x1xf32>
    %103 = arith.truncf %93 : vector<4x8x16xf32> to vector<4x8x16xbf16>
    "tpu.trace_start"() <{level = 10 : i32, message = "zqk,zkd->zqd"}> : () -> ()
    %cst_37 = arith.constant dense<0.000000e+00> : vector<4x8x8xf32>
    %104 = tpu.matmul %103, %79, %cst_37 {dimension_numbers = #tpu.dot_dimension_numbers<[2], [1], [1], [2], [0, 0, 0, 1, 1, 2], [0], [0]>} : vector<4x8x16xbf16>, vector<4x16x8xbf16>, vector<4x8x8xf32> -> vector<4x8x8xf32>
    "tpu.trace_stop"() : () -> ()
    %105 = arith.truncf %96 : vector<4x8x8xf32> to vector<4x8x8xbf16>
    "tpu.trace_start"() <{level = 10 : i32, message = "zqk,zkd->zqd"}> : () -> ()
    %cst_38 = arith.constant dense<0.000000e+00> : vector<4x8x8xf32>
    %106 = tpu.matmul %105, %83, %cst_38 {dimension_numbers = #tpu.dot_dimension_numbers<[2], [1], [1], [2], [0, 0, 0, 1, 1, 2], [0], [0]>} : vector<4x8x8xbf16>, vector<4x8x8xbf16>, vector<4x8x8xf32> -> vector<4x8x8xf32>
    "tpu.trace_stop"() : () -> ()
    %107 = arith.addf %104, %106 : vector<4x8x8xf32>
    %108 = vector.broadcast %102 : vector<4x8x1xf32> to vector<4x8x8xf32>
    %109 = arith.mulf %107, %108 : vector<4x8x8xf32>
    %110 = arith.truncf %109 : vector<4x8x8xf32> to vector<4x8x8xbf16>
    %111 = vector.shape_cast %110 : vector<4x8x8xbf16> to vector<1x4x8x8xbf16>
    %112 = tpu.transpose %111, [0, 2, 1, 3] : vector<1x4x8x8xbf16> -> vector<1x8x4x8xbf16>
    %113 = vector.shape_cast %112 : vector<1x8x4x8xbf16> to vector<8x32xbf16>
    %c0_39 = arith.constant 0 : index
    %c0_40 = arith.constant 0 : index
    %114 = vector.load %arg9[%c0_39, %c0_40] : memref<32x32xbf16, #tpu.memory_space<vmem>>, vector<32x32xbf16>
    %cst_41 = arith.constant dense<0.000000e+00> : vector<8x32xf32>
    %115 = tpu.matmul %113, %114, %cst_41 {dimension_numbers = #tpu.dot_dimension_numbers<[1], [0], [0], [1], [0, 0, 1, 1], [], []>} : vector<8x32xbf16>, vector<32x32xbf16>, vector<8x32xf32> -> vector<8x32xf32>
    %116 = vector.shape_cast %115 : vector<8x32xf32> to vector<1x8x32xf32>
    %117 = arith.truncf %116 : vector<1x8x32xf32> to vector<1x8x32xbf16>
    %c0_42 = arith.constant 0 : index
    %c0_43 = arith.constant 0 : index
    %c0_44 = arith.constant 0 : index
    %118 = vector.load %arg10[%c0_42, %c0_43, %c0_44] : memref<1x8x32xbf16, #tpu.memory_space<vmem>>, vector<1x8x32xbf16>
    tpu.vector_store %arg10[%c0_42, %c0_43, %c0_44], %117 {strides = array<i32>} : memref<1x8x32xbf16, #tpu.memory_space<vmem>>, vector<1x8x32xbf16>,
    return
  }
  func.func @transform_0(%arg0: i32) -> (i32, i32, i32) {
    %c0_i32 = arith.constant 0 : i32
    %c0_i32_0 = arith.constant 0 : i32
    %c0_i32_1 = arith.constant 0 : i32
    return %arg0, %c0_i32, %c0_i32_0 : i32, i32, i32
  }
  func.func @transform_1(%arg0: i32) -> (i32, i32, i32) {
    %c0_i32 = arith.constant 0 : i32
    %c0_i32_0 = arith.constant 0 : i32
    %c0_i32_1 = arith.constant 0 : i32
    return %arg0, %c0_i32, %c0_i32_0 : i32, i32, i32
  }
  func.func @transform_2(%arg0: i32) -> (i32, i32) {
    %c0_i32 = arith.constant 0 : i32
    %c0_i32_0 = arith.constant 0 : i32
    %c0_i32_1 = arith.constant 0 : i32
    return %c0_i32, %c0_i32_0 : i32, i32
  }
  func.func @transform_3(%arg0: i32) -> (i32, i32) {
    %c0_i32 = arith.constant 0 : i32
    %c0_i32_0 = arith.constant 0 : i32
    %c0_i32_1 = arith.constant 0 : i32
    return %c0_i32, %c0_i32_0 : i32, i32
  }
  func.func @transform_4(%arg0: i32) -> (i32, i32) {
    %c0_i32 = arith.constant 0 : i32
    %c0_i32_0 = arith.constant 0 : i32
    %c0_i32_1 = arith.constant 0 : i32
    return %c0_i32, %c0_i32_0 : i32, i32
  }
  func.func @transform_5(%arg0: i32) -> (i32, i32) {
    %c0_i32 = arith.constant 0 : i32
    %c0_i32_0 = arith.constant 0 : i32
    %c0_i32_1 = arith.constant 0 : i32
    return %c0_i32, %c0_i32_0 : i32, i32
  }
  func.func @transform_6(%arg0: i32) -> (i32, i32) {
    %c0_i32 = arith.constant 0 : i32
    %c0_i32_0 = arith.constant 0 : i32
    %c0_i32_1 = arith.constant 0 : i32
    return %c0_i32, %c0_i32_0 : i32, i32
  }
  func.func @transform_7(%arg0: i32) -> (i32, i32) {
    %c0_i32 = arith.constant 0 : i32
    %c0_i32_0 = arith.constant 0 : i32
    %c0_i32_1 = arith.constant 0 : i32
    return %c0_i32, %c0_i32_0 : i32, i32
  }
  func.func @transform_8(%arg0: i32) -> (i32, i32) {
    %c0_i32 = arith.constant 0 : i32
    %c0_i32_0 = arith.constant 0 : i32
    %c0_i32_1 = arith.constant 0 : i32
    return %c0_i32, %c0_i32_0 : i32, i32
  }
  func.func @transform_9(%arg0: i32) -> (i32, i32, i32) {
    %c0_i32 = arith.constant 0 : i32
    %c0_i32_0 = arith.constant 0 : i32
    %c0_i32_1 = arith.constant 0 : i32
    return %arg0, %c0_i32, %c0_i32_0 : i32, i32, i32
  }
}

</mosaic_0001>

<bundles_post_ra>
// kernel: tpu_custom_call.1
= control target key start
LH: loop header
LB: loop body
LE: loop exit
PB: predicated region body
PF: predicated region fallthrough
CT: control target
= control target key end

     0   :  { %s3875_s0 = inlined_call_operand.hbm [shape: bf16[2,16,32], index: 0, kind: input, shape index: {}]   ;;  %s3876_s1 = inlined_call_operand.hbm [shape: bf16[2,8,32], index: 1, kind: input, shape index: {}]   ;;  %s3877_s2 = inlined_call_operand.vmem [shape: f32[1,32], index: 2, kind: input, shape index: {}]   ;;  %s3878_s3 = inlined_call_operand.vmem [shape: f32[1,32], index: 3, kind: input, shape index: {}]   ;;  %s3879_s4 = inlined_call_operand.vmem [shape: f32[1,32], index: 4, kind: input, shape index: {}]   ;;  %s3880_s5 = inlined_call_operand.vmem [shape: f32[1,32], index: 5, kind: input, shape index: {}]   ;;  %s3881_s6 = inlined_call_operand.vmem [shape: bf16[32,32], index: 6, kind: input, shape index: {}]   ;;  %s3882_s7 = inlined_call_operand.hbm [shape: bf16[32,64], index: 7, kind: input, shape index: {}]   ;;  %s3883_s8 = inlined_call_operand.hbm [shape: bf16[32,32], index: 8, kind: input, shape index: {}]   ;;  %s3884_s9 = inlined_call_operand.hbm [shape: bf16[2,8,32], index: 9, kind: output, shape index: {}]  }
   0x1   :  { %3895 = sst [smem:[#allocation20_spill]] %s3875_s0 }
   0x2   :  { %3896 = sst [smem:[#allocation21_spill]] %s3882_s7 }
   0x3   :  { %3897 = sst [smem:[#allocation22_spill]] %s3883_s8 }
   0x4   :  { %14 = vsyncpa [#allocation3], 0 }
   0x5   :  { %16 = vsyncpa [#allocation3 + $0x1], 0 }
   0x6   :  { %17 = vsyncpa [#allocation6], 0 }
   0x7   :  { %19 = vsyncpa [#allocation6 + $0x1], 0 }
   0x8   :  { %20 = vsyncpa [#allocation9], 0 }
   0x9   :  { %21 = vsyncpa [#allocation4], 0 }
   0xa   :  { %23 = vsyncpa [#allocation4 + $0x1], 0  ;;  %s3206_s30 = smov 0   ;;  %s3208_s10 = smov 0  }
   0xb   :  { %s3210_s11 = smov 0   ;;  %s3212_s12 = smov 0  }
   0xc LB: > { %3898 = sst [smem:[#allocation16_spill]] %s3128_s11  ;;  %s3227_s13 = sadd.s32 4294967295, %s3132_s12   ;;  %s3132_s12 = sphi %s3212_s12, %s3925_s12   ;;  %s3128_s11 = sphi %s3210_s11, %s3927_s11   ;;  %s3124_s10 = sphi %s3208_s10, %s3929_s10   ;;  %s3120_s30 = sphi %s3206_s30, %s3928_s30  }
   0xd   : > { %s2566_s14 = sadd.s32 4294967294, %s3132_s12   ;;  %p49_p0 = scmp.ne.s32.totalorder %s3124_s10, %s3120_s30 }
   0xe   : > { %p3885_p1 = scmp.eq.s32.totalorder %s3227_s13, 0  ;;  %p252_p3 = scmp.eq.s32.totalorder %s2566_s14, 1 }
   0xf   : > { %p2567_p5 = scmp.ge.s32.totalorder %s3132_s12, 1  ;;  %p259_p7 = scmp.lt.s32.totalorder %s3132_s12, 3 }
  0x10   : > { %p3236_p4 = por %p3885_p1, %p49_p0  ;;  %p3241_p6 = por %p252_p3, %p49_p0 }
  0x11   : > { %p3246_p8 = pnand %p2567_p5, %p259_p7  ;;  %s3134_s18 = smov [#allocation7]  }
  0x12   : > { %s3899_s15 = scalar_select %p3236_p4, 1, 0 }
  0x13   : > { %s3900_s16 = scalar_select %p3241_p6, 1, 0 }
  0x14   : > { %s3902_s17 = scalar_select %p3246_p8, 1, 0 }
  0x15   : > { %3901 = sst [smem:[#allocation17_spill]] %s3900_s16  ;;  %s286_s19 = sshll.u32 %s3134_s18, 4  ;;  %s3250_s19 = int_to_ptr.vmem [resolvable:$true] %s286_s19 }
  0x16   : > { %p2827_p9 = pneg %p3246_p8  ;;  %s3135_s21 = smov [#allocation8]  }
  0x17   : > { %s299_s22 = sshll.u32 %s3135_s21, 4  ;;  %s3904_s7 = sld [smem:[#allocation21_spill]]  ;;  %s3261_s22 = int_to_ptr.vmem [resolvable:$true] %s299_s22 }
  0x18   : > { %p3257_p11 = pnand %p2827_p9, %p3885_p1 }
  0x1a   : > { %p2940_p13 = pneg %p3257_p11 }
  0x1d   : > { %s2938_s25 = scalar_lea.hbm %s3904_s7, 256 }
  0x1e   : > { %p2939_p12 = scmp.ne.s32.totalorder %s3904_s7, %s2938_s25  ;;  %p2945_p5 = scmp.lt.u32.totalorder %s2938_s25, %s3904_s7 }
  0x20   : > { %p2941_p0 = pnand %p2940_p13, %p2939_p12 }
  0x22   : > { %p2942_p3 = pneg %p2941_p0 }
  0x24   : > { %p2947_p7 = pnand %p2945_p5, %p2942_p3 }
  0x26   : > { %2950 = shalt.err (!%p2947_p7)
}
  0x27   : > { %s2951_s14 = scalar_lea.vmem %s3250_s19, 256  ;;  %p2959_p2 = scmp.lt.s32.totalorder %s3250_s19, %s3250_s19 }
  0x28   : > { %p2952_p9 = scmp.ne.s32.totalorder %s3250_s19, %s2951_s14  ;;  %p2960_p12 = scmp.lt.s32.totalorder %s2951_s14, %s2951_s14 }
  0x2a   : > { %p2954_p10 = pnand %p2952_p9, %p2940_p13  ;;  %p2961_p0 = por %p2960_p12, %p2959_p2 }
  0x2c   : > { %p2955_p1 = pneg %p2954_p10 }
  0x2e   : > { %p2962_p6 = pnand %p2961_p0, %p2955_p1 }
  0x30   : > { %2965 = shalt.err (!%p2962_p6)
}
  0x31   : > { %s3887_s18 = smov 64   ;;  %s3888_s21 = smov 4  }
  0x32   : > { %2830 = dma.hbm_to_vmem [thread:$0]  (!%p3257_p11), %s3904_s7, 256, %s3250_s19, [#allocation6], %s3887_s18, %s3887_s18, %s3888_s21  }
  0x33   : > { %s3905_s8 = sld [smem:[#allocation22_spill]] }
  0x39   : > { %s2966_s27 = scalar_lea.hbm %s3905_s8, 256 }
  0x3a   : > { %p2967_p1 = scmp.ne.s32.totalorder %s3905_s8, %s2966_s27  ;;  %p2973_p10 = scmp.lt.u32.totalorder %s2966_s27, %s3905_s8 }
  0x3c   : > { %p2969_p2 = pnand %p2967_p1, %p2940_p13 }
  0x3e   : > { %p2970_p6 = pneg %p2969_p2 }
  0x40   : > { %p2975_p3 = pnand %p2973_p10, %p2970_p6 }
  0x42   : > { %2978 = shalt.err (!%p2975_p3)
}
  0x43   : > { %s2979_s19 = scalar_lea.vmem %s3261_s22, 256  ;;  %p2987_p12 = scmp.lt.s32.totalorder %s3261_s22, %s3261_s22 }
  0x44   : > { %p2980_p5 = scmp.ne.s32.totalorder %s3261_s22, %s2979_s19  ;;  %p2988_p0 = scmp.lt.s32.totalorder %s2979_s19, %s2979_s19 }
  0x46   : > { %p2982_p7 = pnand %p2980_p5, %p2940_p13  ;;  %p2989_p1 = por %p2988_p0, %p2987_p12 }
  0x48   : > { %p2983_p9 = pneg %p2982_p7 }
  0x4a   : > { %p2990_p2 = pnand %p2989_p1, %p2983_p9 }
  0x4c   : > { %2993 = shalt.err (!%p2990_p2)
}
  0x4d   : > { %2833 = dma.hbm_to_vmem [thread:$0]  (!%p3257_p11), %s3905_s8, 256, %s3261_s22, [#allocation9], %s3887_s18, %s3887_s18, %s3888_s21  }
  0x4e   : > { %s3322_s20 = sadd.s32 1, %s3132_s12   ;;  %s36_s24 = sadd.s32 1, %s3128_s11 }
  0x4f   : > { %3906 = sst [smem:[#allocation18_spill]] %s3322_s20  ;;  %s33_s25 = ssub.s32 %s3132_s12, %s3322_s20 }
  0x50   : > { %p43_p13 = scmp.ne.s32.totalorder %s3128_s11, %s3124_s10  ;;  %p34_p6 = scmp.eq.s32.totalorder %s33_s25, 0 }
  0x51   : > { %p44_p10 = scmp.eq.s32.totalorder %s3132_s12, 0  ;;  %p3907_p3 = scmp.eq.s32.totalorder %s3227_s13, 1 }
  0x52   : > { %p2847_p7 = scmp.lt.s32.totalorder %s3132_s12, 2  ;;  %s3341_s28 = sand.u32 1, %s3128_s11  }
  0x53   : > { %p3332_p5 = por %p3907_p3, %p43_p13  ;;  %p45_p9 = por %p44_p10, %p43_p13 }
  0x54   : > { %s3338_s27 = scalar_select %p34_p6, %s3128_s11, %s36_s24  }
  0x55   : > { %s3908_s26 = scalar_select %p3332_p5, 1, 0 }
  0x56   : > { %3909 = sst [smem:[#allocation19_spill]] %s3338_s27  ;;  %s2571_s22 = sshll.u32 %s3341_s28, 3 }
  0x57   : > { %s2620_s29 = sshll.u32 %s3132_s12, 7  ;;  %s3910_s0 = sld [smem:[#allocation20_spill]] }
  0x58   : > { %s317_s23 = scalar_lea.vmem [#allocation2], %s2571_s22  ;;  %p3352_p11 = pnand %p2847_p7, %p45_p9 }
  0x59   : > { %s324_s24 = sshll.u32 %s317_s23, 4  ;;  %s2574_s21 = sshll.u32 %s3341_s28, 2  ;;  %s3350_s24 = int_to_ptr.vmem [resolvable:$true] %s324_s24 }
  0x5a   : > { %s314_s7 = scalar_lea.sflag [#allocation3], %s3341_s28  ;;  %p2996_p0 = pneg %p3352_p11 }
  0x5d   : > { %s3348_s16 = scalar_lea.hbm %s3910_s0, %s2620_s29  ;;  %s2999_s19 = scalar_lea.hbm %s3910_s0, 256 }
  0x5e   : > { %s2994_s14 = scalar_lea.hbm %s3348_s16, 128  ;;  %p3000_p13 = scmp.lt.u32.totalorder %s3348_s16, %s3910_s0 }
  0x5f   : > { %p2995_p12 = scmp.ne.s32.totalorder %s3348_s16, %s2994_s14  ;;  %p3001_p6 = scmp.lt.u32.totalorder %s2999_s19, %s2994_s14 }
  0x60   : > { %p3003_p3 = scmp.lt.u32.totalorder %s2994_s14, %s3348_s16 }
  0x61   : > { %p2997_p1 = pnand %p2996_p0, %p2995_p12  ;;  %p3002_p10 = por %p3001_p6, %p3000_p13 }
  0x63   : > { %p2998_p2 = pneg %p2997_p1  ;;  %p3004_p7 = por %p3003_p3, %p3002_p10 }
  0x65   : > { %p3005_p9 = pnand %p3004_p7, %p2998_p2 }
  0x67   : > { %3008 = shalt.err (!%p3005_p9)
}
  0x68   : > { %s3009_s18 = scalar_lea.vmem %s3350_s24, 128  ;;  %s3138_s22 = smov [#allocation2]  }
  0x69   : > { %p3010_p12 = scmp.ne.s32.totalorder %s3350_s24, %s3009_s18  ;;  %s3014_s29 = sshll.u32 %s3138_s22, 4  ;;  %s3015_s29 = int_to_ptr.vmem [resolvable:$false] %s3014_s29 }
  0x6a   : > { %s3016_s8 = scalar_lea.vmem %s3015_s29, 256  ;;  %p3017_p4 = scmp.lt.s32.totalorder %s3350_s24, %s3015_s29 }
  0x6b   : > { %p3012_p1 = pnand %p3010_p12, %p2996_p0  ;;  %p3018_p13 = scmp.lt.s32.totalorder %s3016_s8, %s3009_s18 }
  0x6d   : > { %p3013_p5 = pneg %p3012_p1  ;;  %p3019_p6 = por %p3018_p13, %p3017_p4 }
  0x6f   : > { %p3020_p10 = pnand %p3019_p6, %p3013_p5 }
  0x71   : > { %3023 = shalt.err (!%p3020_p10)
}
  0x72   : > { %s3912_s14 = smov 4   ;;  %s3913_s19 = smov 64  }
  0x73   : > { %2837 = dma.hbm_to_vmem [thread:$0]  (!%p3352_p11), %s3348_s16, 128, %s3350_s24, %s314_s7, %s3913_s19, %s3913_s19, %s3912_s14  }
  0x74   : > { %s2575_s23 = sshll.u32 %s3132_s12, 6  ;;  %s338_s8 = scalar_lea.vmem [#allocation5], %s2574_s21 }
  0x75   : > { %s3393_s29 = scalar_lea.hbm %s3876_s1, %s2575_s23  ;;  %s345_s0 = sshll.u32 %s338_s8, 4  ;;  %s346_s0 = int_to_ptr.vmem [resolvable:$true] %s345_s0 }
  0x76   : > { %s3914_s27 = sand.u32 1, %s3132_s12   ;;  %s3024_s20 = scalar_lea.hbm %s3393_s29, 64 }
  0x77   : > { %s335_s11 = scalar_lea.sflag [#allocation6], %s3914_s27  ;;  %p3025_p4 = scmp.ne.s32.totalorder %s3393_s29, %s3024_s20 }
  0x78   : > { %s3029_s24 = scalar_lea.hbm %s3876_s1, 128  ;;  %p3030_p3 = scmp.lt.u32.totalorder %s3393_s29, %s3876_s1 }
  0x79   : > { %p3027_p5 = pnand %p3025_p4, %p2996_p0  ;;  %p3031_p7 = scmp.lt.u32.totalorder %s3029_s24, %s3024_s20 }
  0x7a   : > { %p3033_p12 = scmp.lt.u32.totalorder %s3024_s20, %s3393_s29 }
  0x7b   : > { %p3028_p2 = pneg %p3027_p5  ;;  %p3032_p9 = por %p3031_p7, %p3030_p3 }
  0x7d   : > { %p3034_p1 = por %p3033_p12, %p3032_p9 }
  0x7f   : > { %p3035_p13 = pnand %p3034_p1, %p3028_p2 }
  0x81   : > { %3038 = shalt.err (!%p3035_p13)
}
  0x82   : > { %s3039_s21 = scalar_lea.vmem %s346_s0, 64  ;;  %s3139_s27 = smov [#allocation5]  }
  0x83   : > { %p3040_p6 = scmp.ne.s32.totalorder %s346_s0, %s3039_s21  ;;  %s3044_s19 = sshll.u32 %s3139_s27, 4  ;;  %s3045_s19 = int_to_ptr.vmem [resolvable:$false] %s3044_s19 }
  0x84   : > { %s3046_s23 = scalar_lea.vmem %s3045_s19, 128  ;;  %p3047_p5 = scmp.lt.s32.totalorder %s346_s0, %s3045_s19 }
  0x85   : > { %p3042_p10 = pnand %p3040_p6, %p2996_p0  ;;  %p3048_p8 = scmp.lt.s32.totalorder %s3046_s23, %s3039_s21 }
  0x87   : > { %p3043_p4 = pneg %p3042_p10  ;;  %p3049_p3 = por %p3048_p8, %p3047_p5 }
  0x89   : > { %p3050_p7 = pnand %p3049_p3, %p3043_p4 }
  0x8b   : > { %3053 = shalt.err (!%p3050_p7)
}
  0x8c   : > { %2840 = dma.hbm_to_vmem [thread:$0]  (!%p3352_p11), %s3393_s29, 64, %s346_s0, %s335_s11  }
  0x8d   : > { %p3915_p2 = scmp.ne.s32.totalorder %s3902_s17, 0 }
  0x8e   : > { %s3421_s20 = sand.u32 (!%p3915_p2), 1, %s3124_s10   ;;  %p3916_p0 = scmp.ne.s32.totalorder (!%p3915_p2), %s3899_s15, 0 }
  0x8f   : > { %354 = sbr.rel (%p3915_p2) target bundleno = 1881 (0x759), region = 56  ;;  %s2577_s22 = sshll.u32 (!%p3915_p2), %s3421_s20, 3 }
  0x90   : > { %s357_s18 = scalar_lea.sflag (!%p3915_p2), [#allocation3], %s3421_s20  ;;  %s360_s8 = scalar_lea.vmem (!%p3915_p2), [#allocation2], %s2577_s22 }
  0x96   : > { %3099 = dma.done.wait (%p3916_p0), %s357_s18, 128  }
  0x97   : > { %3101 = vsyncadd (%p3916_p0), %s357_s18, 4294967168  ;;  %s365_s0 = sand.u32 1, %s3227_s13   ;;  %s2578_s11 = sshll.u32 %s3421_s20, 2 }
  0x98   : > { %s366_s17 = scalar_lea.sflag [#allocation6], %s365_s0  ;;  %s369_s25 = scalar_lea.vmem [#allocation5], %s2578_s11 }
  0x99   : > { %3103 = dma.done.wait (%p3916_p0), %s366_s17, 64  }
  0x9a   : > { %3105 = vsyncadd (%p3916_p0), %s366_s17, 4294967232  ;;  %p3917_p8 = scmp.eq.s32.totalorder %s3227_s13, 0 }
  0x9c   : > { %3107 = dma.done.wait (%p3917_p8), [#allocation6], 256   ;;  %p3918_p11 = pmov %p3917_p8 }
  0x9d   : > { %p3919_p9 = pmov %p3917_p8 }
  0x9e   : > { %3109 = vsyncadd (%p3918_p11), [#allocation6], 4294967040 }
  0x9f   : > { %3111 = dma.done.wait (%p3919_p9), [#allocation9], 256   ;;  %p3920_p12 = pmov %p3917_p8 }
  0xa0   : > { %v2622_v0 = vld [vmem:[%s360_s8] sm:$0xff]   ;;  %vm426_vm0 = vcmask 261120   ;;  %v422_v1 = vld [vmem:[%s369_s25] sm:$0xf]  ;;  %v2903_v24 = vld [vmem:[#allocation7] sm:$0xff]   ;;  %v3140_v25 = vmov 0.0  }
  0xa1   : > { %3113 = vsyncadd (%p3920_p12), [#allocation9], 4294967040  ;;  %v2623_v2 = vunpack.c.l.bf16 %v2622_v0  ;;  %v423_v3 = vunpack.c.l.bf16 %v422_v1  ;;  %v2624_v4 = vunpack.c.h.bf16 %v2622_v0  ;;  %v2902_v23 = vld [vmem:[%s3881_s6] sm:$0xff]   ;;  %2669 = vmatprep.subr.bf16.mxu0 %v3140_v25  ;;  %2677 = vmatprep.subr.bf16.mxu1 %v3140_v25  ;;  %v2904_v26 = vld [vmem:[%s3881_s6 + $0x8] sm:$0xff]   ;;  %vm3141_vm1 = vmmov 0   ;;  %s3142_s18 = smov 120  }
  0xa2   : > { %2670 = vmatpush3.bf16.msra.mxu0 %v2902_v23  ;;  %2678 = vmatpush3.bf16.msra.mxu1 %v2903_v24  ;;  %v2905_v27 = vld [vmem:[#allocation7 + $0x8] sm:$0xff]   ;;  %s3143_s8 = smov 112   ;;  %s3144_s0 = smov 104   ;;  %vm1392_vm2 = vcmask 64512   ;;  %vm1845_vm3 = vcmask 1043456   ;;  %vm1749_vm4 = vcmask 130048  }
  0xa3   : > { %v427_v5 = vsel %vm426_vm0, %v2623_v2, 0.0  ;;  %v473_v6 = vsel %vm426_vm0, %v423_v3, 0.0  ;;  %v430_v7 = vsel %vm426_vm0, %v2624_v4, 0.0  ;;  %2671 = vmatprep.subr.bf16.mxu0 %v3140_v25  ;;  %2679 = vmatprep.subr.bf16.mxu1 %v3140_v25  ;;  %v2582_v39 = vld [vmem:[%s3877_s2] ss:$0 sm:$0xff]  ;;  %s3145_s17 = smov 88  }
  0xa4   : > { %428 = vadd.xlane.f32.xlu0 %v427_v5  ;;  %474 = vadd.xlane.f32.xlu1 %v473_v6  ;;  %v2584_v41 = vld [vmem:[%s3879_s4] ss:$0 sm:$0xff]  ;;  %s3146_s25 = smov 96   ;;  %s3147_s15 = smov 72   ;;  %v3149_v6 = vmov 1983009808  }
  0xa5   : > { %2673 = vmatprep.mubr.msk.bf16.mxu0 %vm3141_vm1, %v3140_v25  ;;  %2681 = vmatprep.mubr.msk.bf16.mxu1 %vm3141_vm1, %v3140_v25  ;;  %v2585_v45 = vld [vmem:[%s3880_s5] ss:$0 sm:$0xff]  ;;  %s3148_s29 = smov 80   ;;  %s3152_s7 = smov 8   ;;  %vm2376_vm5 = vcmask 195584   ;;  %vm2438_vm6 = vcmask 257024  }
  0xa6   : > { %2672 = vmatpush3.bf16.msra.mxu0 %v2904_v26  ;;  %2680 = vmatpush3.bf16.msra.mxu1 %v2905_v27  ;;  %v2583_v48 = vld [vmem:[%s3878_s3] ss:$0 sm:$0xff]  ;;  %s3153_s16 = smov 16   ;;  %s3154_s24 = smov 24  }
  0xa7   : > { %2685 = vmatprep.subr.bf16.mxu0 %v3140_v25  ;;  %2693 = vmatprep.subr.bf16.mxu1 %v3140_v25  ;;  %s2617_s28 = sshll.u32 %s3227_s13, 6  ;;  %s416_s14 = scalar_lea.vmem [#allocation10], %s2578_s11 }
  0xa8   : > { %431 = vadd.xlane.f32.xlu0 %v430_v7  ;;  %v671_v7 = vunpack.c.l.s4 %v3149_v6  ;;  %s2454_s21 = sshll.u32 %s416_s14, 4  ;;  %s3831_s23 = scalar_lea.hbm %s3884_s9, %s2617_s28  ;;  %s3833_s21 = int_to_ptr.vmem [resolvable:$true] %s2454_s21 }
  0xa9   : > { %s2441_s13 = scalar_lea.sflag [#allocation4], %s3421_s20  ;;  %s3054_s11 = scalar_lea.vmem %s3833_s21, 64 }
  0xaa   : > { %p3055_p1 = scmp.ne.s32.totalorder %s3833_s21, %s3054_s11  ;;  %p3921_p13 = scmp.ne.s32.totalorder %s3908_s26, 0 }
  0xab   : > { %s3155_s22 = smov [#allocation10]  }
  0xac   : > { %p3056_p6 = pnand %p3055_p1, %p3921_p13 }
  0xae   : > { %p3057_p10 = pneg %p3056_p6 }
 0x131   : > { %v429_v8 = vpop.xlane.xlu0 %428  ;;  %v475_v9 = vpop.xlane.xlu1 %474 }
 0x132   : > { %v434_v10 = vmul.f32 0.03125, %v429_v8  ;;  %v476_v11 = vmul.f32 0.03125, %v475_v9  ;;  %v673_v8 = vlaneseq }
 0x134   : > { %v436_v12 = vsub.f32 %v2623_v2, %v434_v10  ;;  %v477_v13 = vsub.f32 %v423_v3, %v476_v11  ;;  %v672_v11 = vunpack.c.0.s8 %v671_v7 }
 0x135   : > { %v432_v14 = vpop.xlane.xlu0 %431 }
 0x136   : > { %v435_v15 = vmul.f32 0.03125, %v432_v14  ;;  %v438_v16 = vmul.f32 %v436_v12, %v436_v12  ;;  %v478_v17 = vmul.f32 %v477_v13, %v477_v13 }
 0x138   : > { %v437_v18 = vsub.f32 %v2624_v4, %v435_v15  ;;  %v440_v19 = vsel %vm426_vm0, %v438_v16, 0.0  ;;  %v479_v20 = vsel %vm426_vm0, %v478_v17, 0.0 }
 0x139   : > { %441 = vadd.xlane.f32.xlu1 %v440_v19 }
 0x13a   : > { %v439_v21 = vmul.f32 %v437_v18, %v437_v18 }
 0x13c   : > { %v443_v22 = vsel %vm426_vm0, %v439_v21, 0.0 }
 0x13d   : > { %480 = vadd.xlane.f32.xlu1 %v479_v20  ;;  %444 = vadd.xlane.f32.xlu0 %v443_v22 }
 0x1c6   : > { %v442_v28 = vpop.xlane.xlu1 %441 }
 0x1c7   : > { %v446_v29 = vmul.f32 0.03125, %v442_v28 }
 0x1c9   : > { %v448_v30 = vadd.f32 1e-05, %v446_v29 }
 0x1ca   : > { %v481_v31 = vpop.xlane.xlu1 %480  ;;  %v445_v32 = vpop.xlane.xlu0 %444 }
 0x1cb   : > { %2908 = vrsqrt.f32 %v448_v30  ;;  %v482_v33 = vmul.f32 0.03125, %v481_v31  ;;  %v447_v34 = vmul.f32 0.03125, %v445_v32 }
 0x1cd   : > { %v483_v35 = vadd.f32 1e-05, %v482_v33  ;;  %v449_v36 = vadd.f32 1e-05, %v447_v34 }
 0x1cf   : > { %2910 = vrsqrt.f32 %v483_v35 }
 0x1d0   : > { %2912 = vrsqrt.f32 %v449_v36 }
 0x1d5   : > { %v2909_v37 = vpop.eup %2908 }
 0x1d6   : > { %v452_v38 = vmul.f32 %v2909_v37, %v436_v12  ;;  %v674_v12 = vshrl.u32 %v673_v8, 7 }
 0x1d8   : > { %v460_v46 = vmul.f32 %v2582_v39, %v452_v38  ;;  %v3508_v17 = vsub.s32 %v672_v11, %v674_v12 }
 0x1d9   : > { %v2911_v40 = vpop.eup %2910 }
 0x1da   : > { %v2913_v42 = vpop.eup %2912  ;;  %v485_v43 = vmul.f32 %v2911_v40, %v477_v13  ;;  %v468_v51 = vadd.f32 %v2583_v48, %v460_v46  ;;  %v3150_v13 = vmov 1934713408  }
 0x1db   : > { %v453_v44 = vmul.f32 %v2913_v42, %v437_v18  ;;  %v688_v14 = vunpack.c.l.s4 %v3150_v13 }
 0x1dc   : > { %v492_v47 = vmul.f32 %v2584_v41, %v485_v43 }
 0x1dd   : > { %v461_v49 = vmul.f32 %v2582_v39, %v453_v44  ;;  %v689_v18 = vunpack.c.0.s8 %v688_v14 }
 0x1de   : > { %v499_v50 = vadd.f32 %v2585_v45, %v492_v47 }
 0x1df   : > { %v469_v52 = vadd.f32 %v2583_v48, %v461_v49  ;;  %v3512_v23 = vsub.s32 %v689_v18, %v674_v12 }
 0x1e0   : > { %v500_v53 = vpack.c.bf16 %v499_v50, %v499_v50  ;;  %v3151_v50 = vmov 0  }
 0x1e1   : > { %v470_v54 = vpack.c.bf16 %v469_v52, %v468_v51 }
 0x1e2   : > { %2674 = vmatmul.mubr.msk.bf16.vlgmr.msra.gmra.mrb[0].mxu0 %vm426_vm0, %v500_v53 }
 0x1e3   : > { %2682 = vmatmul.mubr.msk.bf16.vlgmr.msra.gmra.mrb[0].mxu1 %vm426_vm0, %v470_v54  ;;  %2686 = vmatpush3.bf16.msra.mxu0 %v2903_v24 }
 0x1e4   : > { %2687 = vmatprep.subr.bf16.mxu0 %v3140_v25  ;;  %2689 = vmatprep.mubr.msk.bf16.mxu0 %vm3141_vm1, %v3140_v25 }
 0x1e5   : > { %2695 = vmatprep.mubr.msk.bf16.mxu1 %vm3141_vm1, %v3140_v25 }
 0x1e7   : > { %2688 = vmatpush3.bf16.msra.mxu0 %v2905_v27 }
 0x1e8   : > { %2699 = vmatprep.subr.bf16.mxu0 %v3140_v25 }
 0x1ea   : > { %2690 = vmatmul.mubr.msk.bf16.vlgmr.msra.gmra.mrb[4].mxu0 %vm426_vm0, %v500_v53 }
 0x1eb   : > { %2701 = vmatprep.mubr.msk.bf16.mxu0 %vm3141_vm1, %v3140_v25 }
 0x2b5   : > { %v554_v55 = vpop.f32.mrb[0].mxu0 }
 0x2b6   : > { %v560_v56 = vpack.c.bf16 %v554_v55, %v554_v55  ;;  %v614_v57 = vpop.f32.mrb[0].mxu1  ;;  %v2675_v58 = vpop.f32.mrb[1].mxu0 }
 0x2b7   : > { %v2683_v59 = vpop.f32.mrb[1].mxu1  ;;  %v557_v60 = vpop.f32.mrb[2].mxu0 }
 0x2b8   : > { %v617_v61 = vpop.f32.mrb[2].mxu1  ;;  %664 = vrot.lane.b32.xlu1 %v560_v56, %s3142_s18  ;;  %v2676_v62 = vpop.f32.mrb[3].mxu0  ;;  %666 = vrot.lane.b32.xlu0 %v560_v56, %s3143_s8  ;;  %v676_v22 = vrot.slane %v560_v56, %v3508_v17 }
 0x2b9   : > { %v3490_v63 = vpack.c.bf16 %v617_v61, %v614_v57  ;;  %v2684_v0 = vpop.f32.mrb[3].mxu1 }
 0x2bb   : > { %v850_v34 = vshrl.u32 %v3490_v63, 16 }
 0x2bc   : > { %834 = vrot.lane.b32.xlu1 %v3490_v63, %s3143_s8  ;;  %832 = vrot.lane.b32.xlu0 %v3490_v63, %s3142_s18 }
 0x2bd   : > { %v656_v1 = vpop.f32.mrb[4].mxu0 }
 0x2be   : > { %v2691_v2 = vpop.f32.mrb[5].mxu0  ;;  %v3498_v5 = vpack.c.bf16 %v656_v1, %v656_v1 }
 0x2bf   : > { %v659_v3 = vpop.f32.mrb[6].mxu0 }
 0x2c0   : > { %v2692_v4 = vpop.f32.mrb[7].mxu0  ;;  %836 = vrot.lane.b32.xlu1 %v3490_v63, %s3144_s0  ;;  %840 = vrot.lane.b32.xlu0 %v3490_v63, %s3145_s17 }
 0x2c4   : > { %838 = vrot.lane.b32.xlu1 %v3490_v63, %s3146_s25  ;;  %844 = vrot.lane.b32.xlu0 %v3490_v63, %s3147_s15 }
 0x2c8   : > { %842 = vrot.lane.b32.xlu1 %v3490_v63, %s3148_s29  ;;  %1179 = vrot.lane.b32.xlu0 %v3498_v5, %s3142_s18  ;;  %s3058_s18 = sshll.u32 %s3155_s22, 4  ;;  %s3059_s18 = int_to_ptr.vmem [resolvable:$false] %s3058_s18 }
 0x2c9   : > { %p3061_p4 = scmp.lt.s32.totalorder %s3833_s21, %s3059_s18 }
 0x2cc   : > { %668 = vrot.lane.b32.xlu1 %v560_v56, %s3144_s0  ;;  %1185 = vrot.lane.b32.xlu0 %v3498_v5, %s3144_s0 }
 0x2d0   : > { %1182 = vrot.lane.b32.xlu1 %v3498_v5, %s3143_s8  ;;  %1191 = vrot.lane.b32.xlu0 %v3498_v5, %s3145_s17  ;;  %s3060_s8 = scalar_lea.vmem %s3059_s18, 128 }
 0x2d1   : > { %p3062_p5 = scmp.lt.s32.totalorder %s3060_s8, %s3054_s11 }
 0x2d3   : > { %p3063_p3 = por %p3062_p5, %p3061_p4 }
 0x2d4   : > { %1188 = vrot.lane.b32.xlu1 %v3498_v5, %s3146_s25  ;;  %1197 = vrot.lane.b32.xlu0 %v3498_v5, %s3147_s15 }
 0x2d5   : > { %p3064_p7 = pnand %p3063_p3, %p3057_p10 }
 0x2d8   : > { %1194 = vrot.lane.b32.xlu1 %v3498_v5, %s3148_s29 }
 0x32a   : > { %v665_v9 = vpop.permute.xlu1 %664  ;;  %v667_v10 = vpop.permute.xlu0 %666 }
 0x32b   : > { %v684_v19 = vrot.slane %v667_v10, %v3508_v17  ;;  %v710_v49 = vrot.slane %v665_v9, %v3508_v17 }
 0x32d   : > { %v685_v24 = vcombine.low %v676_v22, %v684_v19  ;;  %v686_v26 = vcombine.high %v676_v22, %v684_v19 }
 0x32e   : > { %v835_v15 = vpop.permute.xlu1 %834  ;;  %v833_v16 = vpop.permute.xlu0 %832 }
 0x32f   : > { %v851_v29 = vshrl.u32 %v833_v16, 16  ;;  %v3515_v33 = vrot.slane %v685_v24, %v3512_v23  ;;  %v848_v35 = vpack.i.b16 %v833_v16, %v3490_v63  ;;  %v3520_v37 = vrot.slane %v686_v26, %v3512_v23 }
 0x330   : > { %v858_v41 = vshrl.u32 %v835_v15, 16 }
 0x331   : > { %v852_v42 = vpack.i.b16 %v851_v29, %v850_v34  ;;  %v3527_v51 = vcombine.high %v3515_v33, %v3151_v50  ;;  %v3533_v60 = vcombine.high %v3520_v37, %v3151_v50  ;;  %v741_v29 = vshrl.u32 %v3515_v33, 16 }
 0x332   : > { %v837_v20 = vpop.permute.xlu1 %836  ;;  %v841_v21 = vpop.permute.xlu0 %840 }
 0x333   : > { %v867_v30 = vshrl.u32 %v841_v21, 16  ;;  %v859_v38 = vshrl.u32 %v837_v20, 16  ;;  %v856_v45 = vpack.i.b16 %v837_v20, %v835_v15  ;;  %v749_v34 = vshrl.u32 %v3527_v51, 16 }
 0x335   : > { %v860_v54 = vpack.i.b16 %v859_v38, %v858_v41 }
 0x336   : > { %v839_v27 = vpop.permute.xlu1 %838  ;;  %v845_v28 = vpop.permute.xlu0 %844 }
 0x337   : > { %v864_v31 = vpack.i.b16 %v841_v21, %v839_v27  ;;  %v866_v32 = vshrl.u32 %v839_v27, 16  ;;  %v875_v46 = vshrl.u32 %v845_v28, 16 }
 0x339   : > { %v868_v36 = vpack.i.b16 %v867_v30, %v866_v32  ;;  %v878_v43 = vcombine.low %v848_v35, %v864_v31  ;;  %v879_v44 = vcombine.high %v848_v35, %v864_v31  ;;  %v757_v30 = vshrl.u32 %v3520_v37, 16 }
 0x33a   : > { %v843_v39 = vpop.permute.xlu1 %842  ;;  %v3522_v40 = vpop.permute.xlu0 %1179  ;;  %v765_v35 = vshrl.u32 %v3533_v60, 16 }
 0x33b   : > { %v872_v47 = vpack.i.b16 %v845_v28, %v843_v39  ;;  %v874_v48 = vshrl.u32 %v843_v39, 16  ;;  %v946_v52 = vcombine.low %v852_v42, %v868_v36  ;;  %v947_v53 = vcombine.high %v852_v42, %v868_v36 }
 0x33c   : > { %v886_v61 = vrot.slane %v878_v43, %v3508_v17  ;;  %v893_v62 = vrot.slane %v879_v44, %v3508_v17 }
 0x33d   : > { %v876_v55 = vpack.i.b16 %v875_v46, %v874_v48  ;;  %v894_v56 = vcombine.low %v856_v45, %v872_v47  ;;  %v895_v57 = vcombine.high %v856_v45, %v872_v47  ;;  %v954_v4 = vrot.slane %v946_v52, %v3508_v17 }
 0x33e   : > { %v669_v58 = vpop.permute.xlu1 %668  ;;  %v3529_v59 = vpop.permute.xlu0 %1185  ;;  %v961_v6 = vrot.slane %v947_v53, %v3508_v17 }
 0x33f   : > { %v718_v63 = vrot.slane %v669_v58, %v3508_v17  ;;  %v902_v0 = vrot.slane %v894_v56, %v3508_v17  ;;  %v909_v1 = vrot.slane %v895_v57, %v3508_v17  ;;  %v962_v2 = vcombine.low %v860_v54, %v876_v55 }
 0x340   : > { %v963_v3 = vcombine.high %v860_v54, %v876_v55 }
 0x341   : > { %v719_v7 = vcombine.low %v710_v49, %v718_v63  ;;  %v720_v8 = vcombine.high %v710_v49, %v718_v63  ;;  %v910_v9 = vcombine.low %v886_v61, %v902_v0  ;;  %v911_v10 = vcombine.high %v886_v61, %v902_v0 }
 0x342   : > { %v926_v11 = vcombine.low %v893_v62, %v909_v1  ;;  %v927_v12 = vcombine.high %v893_v62, %v909_v1  ;;  %v1183_v13 = vpop.permute.xlu1 %1182  ;;  %v970_v14 = vrot.slane %v962_v2, %v3508_v17  ;;  %v977_v15 = vrot.slane %v963_v3, %v3508_v17  ;;  %v1192_v19 = vpop.permute.xlu0 %1191 }
 0x343   : > { %v3545_v16 = vrot.slane %v719_v7, %v3512_v23  ;;  %v3548_v18 = vrot.slane %v720_v8, %v3512_v23  ;;  %v918_v20 = vrot.slane %v910_v9, %v3512_v23  ;;  %v925_v21 = vrot.slane %v911_v10, %v3512_v23 }
 0x344   : > { %v934_v22 = vrot.slane %v926_v11, %v3512_v23  ;;  %v941_v24 = vrot.slane %v927_v12, %v3512_v23  ;;  %v978_v26 = vcombine.low %v954_v4, %v970_v14  ;;  %v979_v27 = vcombine.high %v954_v4, %v970_v14 }
 0x345   : > { %v994_v28 = vcombine.low %v961_v6, %v977_v15  ;;  %v995_v31 = vcombine.high %v961_v6, %v977_v15  ;;  %v1014_v36 = vcombine.low %v918_v20, %v925_v21  ;;  %v2593_v38 = vcombine.high %v918_v20, %v925_v21 }
 0x346   : > { %v1189_v32 = vpop.permute.xlu1 %1188  ;;  %v1030_v39 = vcombine.low %v934_v22, %v941_v24  ;;  %v735_v41 = vcombine.high %v3545_v16, %v3151_v50  ;;  %v736_v42 = vcombine.high %v3548_v18, %v3151_v50  ;;  %v742_v43 = vshrl.u32 %v3545_v16, 16  ;;  %v1198_v48 = vpop.permute.xlu0 %1197 }
 0x347   : > { %v986_v44 = vrot.slane %v978_v26, %v3512_v23  ;;  %v993_v45 = vrot.slane %v979_v27, %v3512_v23  ;;  %v1002_v46 = vrot.slane %v994_v28, %v3512_v23  ;;  %v2594_v47 = vcombine.high %v934_v22, %v941_v24 }
 0x348   : > { %v1009_v49 = vrot.slane %v995_v31, %v3512_v23  ;;  %v743_v52 = vpack.i.b16 %v742_v43, %v741_v29  ;;  %v747_v53 = vpack.i.b16 %v735_v41, %v3527_v51  ;;  %v750_v54 = vshrl.u32 %v735_v41, 16 }
 0x349   : > { %v758_v55 = vshrl.u32 %v3548_v18, 16  ;;  %v763_v56 = vpack.i.b16 %v736_v42, %v3533_v60  ;;  %v766_v57 = vshrl.u32 %v736_v42, 16  ;;  %v1234_v58 = vcombine.low %v3522_v40, %v1192_v19 }
 0x34a   : > { %v1195_v61 = vpop.permute.xlu1 %1194  ;;  %v739_v62 = vpack.i.b16 %v3545_v16, %v3515_v33  ;;  %v751_v63 = vpack.i.b16 %v750_v54, %v749_v34  ;;  %v1200_v0 = vcombine.low %v3498_v5, %v1189_v32  ;;  %v1242_v1 = vcombine.low %v3529_v59, %v1198_v48 }
 0x34b   : > { %v1082_v2 = vcombine.low %v986_v44, %v993_v45  ;;  %v2595_v3 = vcombine.high %v986_v44, %v993_v45  ;;  %v759_v51 = vpack.i.b16 %v758_v55, %v757_v30  ;;  %v767_v4 = vpack.i.b16 %v766_v57, %v765_v35 }
 0x34c   : > { %v755_v6 = vpack.i.b16 %v3548_v18, %v3520_v37  ;;  %v1241_v60 = vrot.slane %v1234_v58, %v3508_v17  ;;  %v1249_v40 = vrot.slane %v1242_v1, %v3508_v17  ;;  %v1208_v7 = vcombine.low %v1183_v13, %v1195_v61 }
 0x34d   : > { %v3579_v8 = vcombine.low %v747_v53, %v763_v56  ;;  %v794_v33 = vcombine.low %v743_v52, %v759_v51  ;;  %v802_v9 = vcombine.low %v751_v63, %v767_v4  ;;  %v1207_v5 = vrot.slane %v1200_v0, %v3508_v17 }
 0x34e   : > { %v1250_v10 = vcombine.low %v1241_v60, %v1249_v40  ;;  %v1251_v59 = vcombine.high %v1241_v60, %v1249_v40  ;;  %v1215_v11 = vrot.slane %v1208_v7, %v3508_v17  ;;  %v3584_v12 = vrot.slane %v1014_v36, %v3508_v17 }
 0x34f   : > { %v801_v37 = vrot.slane %v794_v33, %v3508_v17  ;;  %v809_v14 = vrot.slane %v802_v9, %v3508_v17  ;;  %v3589_v15 = vrot.slane %v2593_v38, %v3508_v17  ;;  %v3592_v13 = vrot.slane %v1030_v39, %v3508_v17 }
 0x350   : > { %v1258_v16 = vrot.slane %v1250_v10, %v3512_v23  ;;  %v1265_v18 = vrot.slane %v1251_v59, %v3512_v23  ;;  %v1216_v19 = vcombine.low %v1207_v5, %v1215_v11  ;;  %v1217_v20 = vcombine.high %v1207_v5, %v1215_v11 }
 0x351   : > { %v1098_v21 = vcombine.low %v1002_v46, %v1009_v49  ;;  %v3597_v22 = vrot.slane %v2594_v47, %v3508_v17  ;;  %v2596_v24 = vcombine.high %v1002_v46, %v1009_v49  ;;  %v769_v26 = vcombine.low %v739_v62, %v755_v6 }
 0x352   : > { %v784_v27 = vrot.slane %v3579_v8, %v3508_v17  ;;  %v810_v28 = vcombine.low %v801_v37, %v809_v14  ;;  %v1224_v29 = vrot.slane %v1216_v19, %v3512_v23  ;;  %v1231_v30 = vrot.slane %v1217_v20, %v3512_v23 }
 0x353   : > { %v1046_v31 = vcombine.low %v3584_v12, %v3589_v15  ;;  %v1062_v32 = vcombine.low %v3592_v13, %v3597_v22  ;;  %v1266_v34 = vcombine.high %v1258_v16, %v3151_v50  ;;  %v1267_v35 = vcombine.high %v1265_v18, %v3151_v50 }
 0x354   : > { %v3610_v36 = vrot.slane %v1082_v2, %v3508_v17  ;;  %v3613_v38 = vrot.slane %v2595_v3, %v3508_v17  ;;  %v1232_v39 = vcombine.high %v1224_v29, %v3151_v50  ;;  %v1233_v41 = vcombine.high %v1231_v30, %v3151_v50 }
 0x355   : > { %v1270_v42 = vpack.i.b16 %v1258_v16, %v1224_v29  ;;  %v3618_v43 = vrot.slane %v1098_v21, %v3508_v17  ;;  %v1272_v44 = vshrl.u32 %v1224_v29, 16  ;;  %v1286_v45 = vpack.i.b16 %v1265_v18, %v1231_v30 }
 0x356   : > { %v1288_v46 = vshrl.u32 %v1231_v30, 16  ;;  %v3621_v47 = vrot.slane %v2596_v24, %v3508_v17  ;;  %v1278_v48 = vpack.i.b16 %v1266_v34, %v1232_v39  ;;  %v1294_v49 = vpack.i.b16 %v1267_v35, %v1233_v41 }
 0x357   : > { %v1054_v52 = vrot.slane %v1046_v31, %v3512_v23  ;;  %v1070_v53 = vrot.slane %v1062_v32, %v3512_v23  ;;  %v1273_v54 = vshrl.u32 %v1258_v16, 16  ;;  %v1289_v55 = vshrl.u32 %v1265_v18, 16 }
 0x358   : > { %v1280_v56 = vshrl.u32 %v1232_v39, 16  ;;  %v1296_v57 = vshrl.u32 %v1233_v41, 16  ;;  %v1281_v58 = vshrl.u32 %v1266_v34, 16  ;;  %v1308_v61 = vcombine.low %v1278_v48, %v1294_v49 }
 0x359   : > { %v1114_v62 = vcombine.low %v3610_v36, %v3613_v38  ;;  %v1130_v63 = vcombine.low %v3618_v43, %v3621_v47  ;;  %v1297_v0 = vshrl.u32 %v1267_v35, 16  ;;  %v1274_v1 = vpack.i.b16 %v1273_v54, %v1272_v44 }
 0x35a   : > { %v1290_v2 = vpack.i.b16 %v1289_v55, %v1288_v46  ;;  %v1300_v3 = vcombine.low %v1270_v42, %v1286_v45  ;;  %v1078_v51 = vcombine.low %v1054_v52, %v1070_v53  ;;  %v776_v60 = vrot.slane %v769_v26, %v3508_v17 }
 0x35b   : > { %v1122_v4 = vrot.slane %v1114_v62, %v3512_v23  ;;  %v1138_v6 = vrot.slane %v1130_v63, %v3512_v23  ;;  %v1282_v40 = vpack.i.b16 %v1281_v58, %v1280_v56  ;;  %v1298_v7 = vpack.i.b16 %v1297_v0, %v1296_v57 }
 0x35c   : > { %v1315_v8 = vrot.slane %v1308_v61, %v3508_v17  ;;  %v785_v5 = vcombine.low %v776_v60, %v784_v27  ;;  %v1334_v10 = vcombine.low %v1274_v1, %v1290_v2  ;;  %v817_v59 = vrot.slane %v810_v28, %v3512_v23 }
 0x35d   : > { %v1146_v33 = vcombine.low %v1122_v4, %v1138_v6  ;;  %v1147_v9 = vcombine.high %v1122_v4, %v1138_v6  ;;  %v1307_v11 = vrot.slane %v1300_v3, %v3508_v17  ;;  %v1153_v14 = vshrl.u32 %v1078_v51, 16 }
 0x35e   : > { %v1079_v18 = vcombine.high %v1054_v52, %v1070_v53  ;;  %v1342_v20 = vcombine.low %v1282_v40, %v1298_v7  ;;  %v792_v29 = vrot.slane %v785_v5, %v3512_v23  ;;  %v823_v30 = vshrl.u32 %v817_v59, 16 }
 0x35f   : > { %v1152_v37 = vpack.i.b16 %v1146_v33, %v1078_v51  ;;  %v1154_v16 = vshrl.u32 %v1146_v33, 16  ;;  %v1316_v19 = vcombine.low %v1307_v11, %v1315_v8  ;;  %v1160_v26 = vshrl.u32 %v1147_v9, 16 }
 0x360   : > { %v1341_v27 = vrot.slane %v1334_v10, %v3508_v17  ;;  %v1349_v28 = vrot.slane %v1342_v20, %v3508_v17  ;;  %v1159_v32 = vshrl.u32 %v1079_v18, 16  ;;  %v1317_v34 = vcombine.high %v1307_v11, %v1315_v8 }
 0x361   : > { %v1397_v21 = vsel %vm1392_vm2, %v1152_v37, 0  ;;  %v1155_v24 = vpack.i.b16 %v1154_v16, %v1153_v14  ;;  %v1047_v35 = vcombine.high %v3584_v12, %v3589_v15  ;;  %v1158_v39 = vpack.i.b16 %v1147_v9, %v1079_v18 }
 0x362   : > { %2694 = vmatpush3.bf16.xpose.msra.mxu1 %v1397_v21  ;;  %v1324_v41 = vrot.slane %v1316_v19, %v3512_v23  ;;  %v1350_v42 = vcombine.low %v1341_v27, %v1349_v28  ;;  %v1351_v44 = vcombine.high %v1341_v27, %v1349_v28  ;;  %v1161_v45 = vpack.i.b16 %v1160_v26, %v1159_v32 }
 0x363   : > { %v1443_v31 = vsel %vm1392_vm2, %v1155_v24, 0  ;;  %2705 = vmatprep.subr.bf16.mxu1 %v3140_v25  ;;  %v3646_v46 = vrot.slane %v1317_v34, %v3512_v23  ;;  %v1061_v48 = vrot.slane %v1047_v35, %v3512_v23  ;;  %v1063_v49 = vcombine.high %v3592_v13, %v3597_v22 }
 0x364   : > { %2700 = vmatpush3.bf16.xpose.msra.mxu0 %v1443_v31  ;;  %v1358_v52 = vrot.slane %v1350_v42, %v3512_v23  ;;  %v3653_v12 = vrot.slane %v1351_v44, %v3512_v23  ;;  %v1115_v15 = vcombine.high %v3610_v36, %v3613_v38  ;;  %v1131_v53 = vcombine.high %v3618_v43, %v3621_v47 }
 0x365   : > { %2711 = vmatprep.subr.bf16.mxu0 %v3140_v25  ;;  %v3659_v54 = vpack.i.b16 %v817_v59, %v792_v29  ;;  %v822_v55 = vshrl.u32 %v792_v29, 16  ;;  %v1333_v56 = vcombine.high %v3646_v46, %v3151_v50  ;;  %v1077_v57 = vrot.slane %v1063_v49, %v3512_v23 }
 0x366   : > { %v818_v13 = vcombine.high %v817_v59, %v3151_v50  ;;  %v1372_v22 = vshrl.u32 %v1358_v52, 16  ;;  %v1489_v58 = vsel %vm1392_vm2, %v1158_v39, 0  ;;  %v1367_v38 = vcombine.high %v3653_v12, %v3151_v50 }
 0x367   : > { %v824_v36 = vpack.i.b16 %v823_v30, %v822_v55  ;;  %v3670_v43 = vcombine.low %v1061_v48, %v1077_v57  ;;  %v1535_v47 = vsel %vm1392_vm2, %v1161_v45, 0  ;;  %v793_v61 = vcombine.high %v792_v29, %v3151_v50 }
 0x368   : > { %v1371_v62 = vshrl.u32 %v1324_v41, 16  ;;  %v1370_v63 = vpack.i.b16 %v1358_v52, %v1324_v41  ;;  %v1388_v0 = vpack.i.b16 %v1367_v38, %v1333_v56  ;;  %v1389_v1 = vshrl.u32 %v1333_v56, 16 }
 0x369   : > { %2696 = vmatmul.mubr.msk.bf16.vlgmr.msra.gmra.mrb[4].mxu1 %vm1392_vm2, %v3659_v54  ;;  %v1390_v2 = vshrl.u32 %v1367_v38, 16  ;;  %v829_v3 = vshrl.u32 %v818_v13, 16  ;;  %v1129_v4 = vrot.slane %v1115_v15, %v3512_v23  ;;  %v827_v6 = vpack.i.b16 %v818_v13, %v793_v61 }
 0x36a   : > { %2706 = vmatpush3.bf16.xpose.msra.mxu1 %v1489_v58  ;;  %2707 = vmatprep.mubr.msk.bf16.mxu1 %vm3141_vm1, %v3140_v25  ;;  %v1373_v51 = vpack.i.b16 %v1372_v22, %v1371_v62  ;;  %v3683_v60 = vsel %vm1845_vm3, %v1388_v0, 0  ;;  %v1145_v7 = vrot.slane %v1131_v53, %v3512_v23  ;;  %v828_v8 = vshrl.u32 %v793_v61, 16 }
 0x36b   : > { %2702 = vmatmul.mubr.msk.bf16.vlgmr.msra.gmra.mrb[8].mxu0 %vm1392_vm2, %v824_v36  ;;  %2717 = vmatprep.subr.bf16.mxu1 %v3140_v25  ;;  %v1391_v40 = vpack.i.b16 %v1390_v2, %v1389_v1  ;;  %v1332_v33 = vcombine.high %v1324_v41, %v3151_v50  ;;  %v1366_v9 = vcombine.high %v1358_v52, %v3151_v50  ;;  %v1578_v10 = vsel %vm1392_vm2, %v1370_v63, 0 }
 0x36c   : > { %2712 = vmatpush3.bf16.xpose.msra.mxu0 %v1535_v47  ;;  %2713 = vmatprep.mubr.msk.bf16.mxu0 %vm3141_vm1, %v3140_v25  ;;  %v3688_v5 = vcombine.high %v1061_v48, %v1077_v57  ;;  %v3694_v11 = vcombine.low %v1129_v4, %v1145_v7  ;;  %v3696_v37 = vcombine.high %v1129_v4, %v1145_v7  ;;  %v1621_v16 = vsel %vm1392_vm2, %v1373_v51, 0 }
 0x36d   : > { %2723 = vmatprep.subr.bf16.mxu0 %v3140_v25  ;;  %v3692_v59 = vsel %vm1845_vm3, %v1391_v40, 0  ;;  %v830_v14 = vpack.i.b16 %v829_v3, %v828_v8  ;;  %v1166_v18 = vshrl.u32 %v3670_v43, 16  ;;  %v1378_v29 = vshrl.u32 %v1366_v9, 16 }
 0x36e   : > { %v1174_v19 = vshrl.u32 %v3688_v5, 16  ;;  %v1164_v20 = vpack.i.b16 %v3694_v11, %v3670_v43  ;;  %v1167_v21 = vshrl.u32 %v3694_v11, 16  ;;  %v1172_v24 = vpack.i.b16 %v3696_v37, %v3688_v5 }
 0x36f   : > { %v1175_v26 = vshrl.u32 %v3696_v37, 16  ;;  %v1376_v28 = vpack.i.b16 %v1366_v9, %v1332_v33  ;;  %v1377_v31 = vshrl.u32 %v1332_v33, 16  ;;  %v1384_v39 = vshrl.u32 %v3653_v12, 16  ;;  %v2906_v37 = vld [vmem:[#allocation8] sm:$0xff]  }
 0x370   : > { %v3712_v30 = vpack.i.b16 %v1167_v21, %v1166_v18  ;;  %v1382_v41 = vpack.i.b16 %v3653_v12, %v3646_v46  ;;  %v1383_v42 = vshrl.u32 %v3646_v46, 16 }
 0x371   : > { %2708 = vmatmul.mubr.msk.bf16.vlgmr.msra.gmra.mrb[8].mxu1 %vm1392_vm2, %v827_v6  ;;  %v3714_v27 = vpack.i.b16 %v1175_v26, %v1174_v19  ;;  %v1379_v32 = vpack.i.b16 %v1378_v29, %v1377_v31  ;;  %v1664_v34 = vsel %vm1392_vm2, %v1376_v28, 0 }
 0x372   : > { %2718 = vmatpush3.bf16.xpose.msra.mxu1 %v1578_v10  ;;  %2719 = vmatprep.mubr.msk.bf16.mxu1 %vm3141_vm1, %v3140_v25  ;;  %v1385_v44 = vpack.i.b16 %v1384_v39, %v1383_v42  ;;  %v1847_v45 = vsel %vm1845_vm3, %v1382_v41, 0 }
 0x373   : > { %2714 = vmatmul.mubr.msk.bf16.vlgmr.msra.gmra.mrb[12].mxu0 %vm1392_vm2, %v830_v14  ;;  %2729 = vmatprep.subr.bf16.mxu1 %v3140_v25  ;;  %v1707_v35 = vsel %vm1392_vm2, %v1379_v32, 0 }
 0x374   : > { %2724 = vmatpush3.bf16.xpose.msra.mxu0 %v1621_v16  ;;  %2725 = vmatprep.mubr.msk.bf16.mxu0 %vm3141_vm1, %v3140_v25  ;;  %v1893_v48 = vsel %vm1845_vm3, %v1385_v44, 0 }
 0x375   : > { %2735 = vmatprep.subr.bf16.mxu0 %v3140_v25 }
 0x379   : > { %2720 = vmatmul.mubr.msk.bf16.vlgmr.msra.gmra.mrb[12].mxu1 %vm1392_vm2, %v3659_v54 }
 0x37a   : > { %2730 = vmatpush3.bf16.xpose.msra.mxu1 %v1664_v34  ;;  %2731 = vmatprep.mubr.msk.bf16.mxu1 %vm3141_vm1, %v3140_v25 }
 0x37b   : > { %2726 = vmatmul.mubr.msk.bf16.vlgmr.msra.gmra.mrb[16].mxu0 %vm1392_vm2, %v824_v36  ;;  %2741 = vmatprep.subr.bf16.mxu1 %v3140_v25 }
 0x37c   : > { %2736 = vmatpush3.bf16.xpose.msra.mxu0 %v1707_v35  ;;  %2737 = vmatprep.mubr.msk.bf16.mxu0 %vm3141_vm1, %v3140_v25 }
 0x37d   : > { %2747 = vmatprep.subr.bf16.mxu0 %v3140_v25 }
 0x381   : > { %2732 = vmatmul.mubr.msk.bf16.vlgmr.msra.gmra.mrb[16].mxu1 %vm1392_vm2, %v827_v6 }
 0x382   : > { %2742 = vmatpush3.bf16.msra.mxu1 %v1847_v45  ;;  %2743 = vmatprep.mubr.msk.bf16.mxu1 %vm3141_vm1, %v3140_v25 }
 0x383   : > { %2738 = vmatmul.mubr.msk.bf16.vlgmr.msra.gmra.mrb[20].mxu0 %vm1392_vm2, %v830_v14  ;;  %2753 = vmatprep.subr.bf16.mxu1 %v3140_v25 }
 0x384   : > { %2748 = vmatpush3.bf16.msra.mxu0 %v1893_v48  ;;  %2749 = vmatprep.mubr.msk.bf16.mxu0 %vm3141_vm1, %v3140_v25 }
 0x385   : > { %2759 = vmatprep.subr.bf16.mxu0 %v3140_v25 }
 0x43c   : > { %v1433_v46 = vpop.f32.mrb[4].mxu1 }
 0x43d   : > { %v2697_v49 = vpop.f32.mrb[5].mxu1  ;;  %v1750_v52 = vsel %vm1749_vm4, %v1433_v46, -inf }
 0x43e   : > { %v1479_v12 = vpop.f32.mrb[8].mxu0  ;;  %1751 = vmax.xlane.f32.xlu1 %v1750_v52  ;;  %v1436_v15 = vpop.f32.mrb[6].mxu1 }
 0x43f   : > { %v2698_v53 = vpop.f32.mrb[7].mxu1  ;;  %v2703_v54 = vpop.f32.mrb[9].mxu0  ;;  %v1753_v55 = vsel %vm1749_vm4, %v1479_v12, -inf }
 0x440   : > { %1754 = vmax.xlane.f32.xlu0 %v1753_v55  ;;  %v1482_v56 = vpop.f32.mrb[10].mxu0 }
 0x441   : > { %v2704_v57 = vpop.f32.mrb[11].mxu0 }
 0x444   : > { %v1525_v13 = vpop.f32.mrb[8].mxu1 }
 0x445   : > { %v2709_v22 = vpop.f32.mrb[9].mxu1  ;;  %v1756_v58 = vsel %vm1749_vm4, %v1525_v13, -inf }
 0x446   : > { %v3747_v36 = vpop.f32.mrb[12].mxu0  ;;  %1757 = vmax.xlane.f32.xlu1 %v1756_v58  ;;  %v1528_v38 = vpop.f32.mrb[10].mxu1 }
 0x447   : > { %v2710_v47 = vpop.f32.mrb[11].mxu1  ;;  %v2715_v61 = vpop.f32.mrb[13].mxu0  ;;  %v1759_v10 = vsel %vm1749_vm4, %v3747_v36, -inf }
 0x448   : > { %v1574_v62 = vpop.f32.mrb[14].mxu0 }
 0x449   : > { %v2716_v63 = vpop.f32.mrb[15].mxu0 }
 0x44c   : > { %v1614_v0 = vpop.f32.mrb[12].mxu1 }
 0x44d   : > { %v2721_v1 = vpop.f32.mrb[13].mxu1  ;;  %v1762_v2 = vsel %vm1392_vm2, %v1614_v0, -inf }
 0x44e   : > { %v1657_v3 = vpop.f32.mrb[16].mxu0  ;;  %1763 = vmax.xlane.f32.xlu0 %v1762_v2  ;;  %v1617_v51 = vpop.f32.mrb[14].mxu1 }
 0x44f   : > { %v2722_v4 = vpop.f32.mrb[15].mxu1  ;;  %v2727_v6 = vpop.f32.mrb[17].mxu0  ;;  %v1765_v8 = vsel %vm1392_vm2, %v1657_v3, -inf }
 0x450   : > { %v1660_v40 = vpop.f32.mrb[18].mxu0 }
 0x451   : > { %v2728_v7 = vpop.f32.mrb[19].mxu0 }
 0x452   : > { %1766 = vmax.xlane.f32.xlu0 %v1765_v8 }
 0x454   : > { %v1700_v33 = vpop.f32.mrb[16].mxu1 }
 0x455   : > { %v2733_v9 = vpop.f32.mrb[17].mxu1  ;;  %v1768_v14 = vsel %vm1392_vm2, %v1700_v33, -inf }
 0x456   : > { %1760 = vmax.xlane.f32.xlu0 %v1759_v10  ;;  %v1743_v16 = vpop.f32.mrb[20].mxu0  ;;  %1769 = vmax.xlane.f32.xlu1 %v1768_v14  ;;  %v1703_v18 = vpop.f32.mrb[18].mxu1 }
 0x457   : > { %v2734_v19 = vpop.f32.mrb[19].mxu1  ;;  %v2739_v21 = vpop.f32.mrb[21].mxu0  ;;  %v1771_v28 = vsel %vm1392_vm2, %v1743_v16, -inf }
 0x458   : > { %v1746_v26 = vpop.f32.mrb[22].mxu0 }
 0x459   : > { %v2740_v29 = vpop.f32.mrb[23].mxu0 }
 0x45a   : > { %1772 = vmax.xlane.f32.xlu0 %v1771_v28 }
 0x4cb   : > { %v1752_v32 = vpop.xlane.xlu1 %1751 }
 0x4cd   : > { %v1755_v31 = vpop.xlane.xlu0 %1754 }
 0x4d3   : > { %v1758_v42 = vpop.xlane.xlu1 %1757 }
 0x4db   : > { %v1764_v34 = vpop.xlane.xlu0 %1763 }
 0x4dc   : > { %v1774_v35 = vmax.f32 %v1752_v32, %v1764_v34 }
 0x4de   : > { %v1778_v39 = vsub.f32 %v1433_v46, %v1774_v35  ;;  %v1790_v41 = vsub.f32 %v1614_v0, %v1774_v35 }
 0x4df   : > { %v1767_v44 = vpop.xlane.xlu0 %1766 }
 0x4e0   : > { %v1782_v45 = vmul.f32 1.442695, %v1778_v39  ;;  %v1794_v48 = vmul.f32 1.442695, %v1790_v41  ;;  %v1775_v49 = vmax.f32 %v1755_v31, %v1767_v44 }
 0x4e2   : > { %2914 = vpow2.f32 %v1782_v45  ;;  %v1779_v52 = vsub.f32 %v1479_v12, %v1775_v49  ;;  %v1791_v15 = vsub.f32 %v1657_v3, %v1775_v49 }
 0x4e3   : > { %2916 = vpow2.f32 %v1794_v48  ;;  %v1770_v53 = vpop.xlane.xlu1 %1769  ;;  %v1761_v54 = vpop.xlane.xlu0 %1760 }
 0x4e4   : > { %v1784_v55 = vmul.f32 1.442695, %v1779_v52  ;;  %v1796_v56 = vmul.f32 1.442695, %v1791_v15  ;;  %v1776_v57 = vmax.f32 %v1758_v42, %v1770_v53 }
 0x4e6   : > { %2918 = vpow2.f32 %v1784_v55  ;;  %v1780_v22 = vsub.f32 %v1525_v13, %v1776_v57  ;;  %v1792_v58 = vsub.f32 %v1700_v33, %v1776_v57 }
 0x4e7   : > { %2920 = vpow2.f32 %v1796_v56  ;;  %v1773_v46 = vpop.xlane.xlu0 %1772 }
 0x4e8   : > { %v1786_v38 = vmul.f32 1.442695, %v1780_v22  ;;  %v1798_v47 = vmul.f32 1.442695, %v1792_v58  ;;  %v1777_v61 = vmax.f32 %v1761_v54, %v1773_v46 }
 0x4ea   : > { %2922 = vpow2.f32 %v1786_v38  ;;  %v1781_v62 = vsub.f32 %v3747_v36, %v1777_v61  ;;  %v1793_v63 = vsub.f32 %v1743_v16, %v1777_v61 }
 0x4eb   : > { %2924 = vpow2.f32 %v1798_v47 }
 0x4ec   : > { %v2915_v12 = vpop.eup %2914  ;;  %v1788_v0 = vmul.f32 1.442695, %v1781_v62  ;;  %v1800_v1 = vmul.f32 1.442695, %v1793_v63 }
 0x4ed   : > { %v2917_v2 = vpop.eup %2916  ;;  %v1802_v3 = vsel %vm1749_vm4, %v2915_v12, 0.0  ;;  %v1834_v43 = vpack.c.bf16 %v2915_v12, %v2915_v12 }
 0x4ee   : > { %2926 = vpow2.f32 %v1788_v0  ;;  %1803 = vadd.xlane.f32.xlu1 %v1802_v3  ;;  %v1838_v13 = vpack.c.bf16 %v2917_v2, %v2917_v2  ;;  %v1814_v36 = vsel %vm1392_vm2, %v2917_v2, 0.0 }
 0x4ef   : > { %2928 = vpow2.f32 %v1800_v1 }
 0x4f0   : > { %v2919_v51 = vpop.eup %2918  ;;  %2744 = vmatmul.mubr.msk.bf16.vlgmr.msra.gmra.mrb[20].mxu1 %vm1392_vm2, %v1838_v13 }
 0x4f1   : > { %v2921_v4 = vpop.eup %2920  ;;  %2754 = vmatpush3.bf16.msra.mxu1 %v3683_v60  ;;  %v1805_v6 = vsel %vm1749_vm4, %v2919_v51, 0.0  ;;  %2755 = vmatprep.mubr.msk.bf16.mxu1 %vm3141_vm1, %v3140_v25  ;;  %v1835_v11 = vpack.c.bf16 %v2919_v51, %v2919_v51 }
 0x4f2   : > { %1815 = vadd.xlane.f32.xlu1 %v1814_v36  ;;  %1806 = vadd.xlane.f32.xlu0 %v1805_v6  ;;  %v1839_v40 = vpack.c.bf16 %v2921_v4, %v2921_v4  ;;  %v1817_v33 = vsel %vm1392_vm2, %v2921_v4, 0.0 }
 0x4f3   : > { %2765 = vmatprep.subr.bf16.mxu1 %v3140_v25 }
 0x4f4   : > { %v2923_v7 = vpop.eup %2922  ;;  %2750 = vmatmul.mubr.msk.bf16.vlgmr.msra.gmra.mrb[24].mxu0 %vm1392_vm2, %v1839_v40 }
 0x4f5   : > { %v2925_v8 = vpop.eup %2924  ;;  %2760 = vmatpush3.bf16.msra.mxu0 %v3692_v59  ;;  %v1808_v60 = vsel %vm1749_vm4, %v2923_v7, 0.0  ;;  %2761 = vmatprep.mubr.msk.bf16.mxu0 %vm3141_vm1, %v3140_v25 }
 0x4f6   : > { %1809 = vadd.xlane.f32.xlu1 %v1808_v60  ;;  %1818 = vadd.xlane.f32.xlu0 %v1817_v33  ;;  %v1840_v9 = vpack.c.bf16 %v2925_v8, %v2925_v8  ;;  %v1820_v59 = vsel %vm1392_vm2, %v2925_v8, 0.0 }
 0x4f7   : > { %2771 = vmatprep.subr.bf16.mxu0 %v3140_v25 }
 0x4f8   : > { %v2927_v10 = vpop.eup %2926  ;;  %2756 = vmatmul.mubr.msk.bf16.vlgmr.msra.gmra.mrb[24].mxu1 %vm1392_vm2, %v1840_v9 }
 0x4f9   : > { %v2929_v14 = vpop.eup %2928  ;;  %2766 = vmatpush3.bf16.msra.mxu1 %v1164_v20  ;;  %v1811_v16 = vsel %vm1749_vm4, %v2927_v10, 0.0  ;;  %2767 = vmatprep.mubr.msk.bf16.mxu1 %vm3141_vm1, %v3140_v25  ;;  %v1836_v20 = vpack.c.bf16 %v2923_v7, %v2923_v7  ;;  %v1837_v5 = vpack.c.bf16 %v2927_v10, %v2927_v10 }
 0x4fa   : > { %1821 = vadd.xlane.f32.xlu1 %v1820_v59  ;;  %1812 = vadd.xlane.f32.xlu0 %v1811_v16  ;;  %v1841_v18 = vpack.c.bf16 %v2929_v14, %v2929_v14  ;;  %v1823_v19 = vsel %vm1392_vm2, %v2929_v14, 0.0 }
 0x4fb   : > { %2777 = vmatprep.subr.bf16.mxu1 %v3140_v25 }
 0x4fc   : > { %2762 = vmatmul.mubr.msk.bf16.vlgmr.msra.gmra.mrb[28].mxu0 %vm1392_vm2, %v1841_v18 }
 0x4fd   : > { %2772 = vmatpush3.bf16.msra.mxu0 %v3712_v30  ;;  %2773 = vmatprep.mubr.msk.bf16.mxu0 %vm3141_vm1, %v3140_v25 }
 0x4fe   : > { %1824 = vadd.xlane.f32.xlu0 %v1823_v19  ;;  %2783 = vmatprep.subr.bf16.mxu0 %v3140_v25 }
 0x500   : > { %2768 = vmatmul.mubr.msk.bf16.vlgmr.msra.gmra.mrb[20].mxu1 %vm1749_vm4, %v1834_v43 }
 0x501   : > { %2778 = vmatpush3.bf16.msra.mxu1 %v1172_v24  ;;  %2779 = vmatprep.mubr.msk.bf16.mxu1 %vm3141_vm1, %v3140_v25 }
 0x502   : > { %2789 = vmatprep.subr.bf16.mxu1 %v3140_v25 }
 0x504   : > { %2774 = vmatmul.mubr.msk.bf16.vlgmr.msra.gmra.mrb[24].mxu0 %vm1749_vm4, %v1835_v11 }
 0x505   : > { %2784 = vmatpush3.bf16.msra.mxu0 %v3714_v27  ;;  %2785 = vmatprep.mubr.msk.bf16.mxu0 %vm3141_vm1, %v3140_v25 }
 0x508   : > { %2780 = vmatmul.mubr.msk.bf16.vlgmr.msra.gmra.mrb[24].mxu1 %vm1749_vm4, %v1836_v20 }
 0x509   : > { %2793 = vmatprep.mubr.msk.bf16.mxu1 %vm3141_vm1, %v3140_v25  ;;  %2790 = vmatpush3.bf16.msra.mxu1 %v2906_v37 }
 0x50a   : > { %2791 = vmatprep.subr.bf16.mxu1 %v3140_v25 }
 0x50c   : > { %2786 = vmatmul.mubr.msk.bf16.vlgmr.msra.gmra.mrb[28].mxu0 %vm1749_vm4, %v1837_v5 }
 0x57b   : > { %v1804_v24 = vpop.xlane.xlu1 %1803 }
 0x57f   : > { %v1807_v30 = vpop.xlane.xlu0 %1806  ;;  %v1816_v21 = vpop.xlane.xlu1 %1815 }
 0x580   : > { %v1826_v28 = vadd.f32 %v1816_v21, %v1804_v24 }
 0x582   : > { %2930 = vrcp.f32 %v1826_v28 }
 0x583   : > { %v1819_v27 = vpop.xlane.xlu0 %1818  ;;  %v1810_v26 = vpop.xlane.xlu1 %1809 }
 0x584   : > { %v1827_v34 = vadd.f32 %v1819_v27, %v1807_v30 }
 0x587   : > { %v1813_v29 = vpop.xlane.xlu0 %1812  ;;  %v1822_v31 = vpop.xlane.xlu1 %1821 }
 0x588   : > { %v1828_v32 = vadd.f32 %v1822_v31, %v1810_v26 }
 0x58a   : > { %2932 = vrcp.f32 %v1828_v32 }
 0x58b   : > { %v1825_v35 = vpop.xlane.xlu0 %1824  ;;  %2934 = vrcp.f32 %v1827_v34 }
 0x58c   : > { %v1829_v39 = vadd.f32 %v1825_v35, %v1813_v29  ;;  %v2931_v45 = vpop.eup %2930 }
 0x58e   : > { %2936 = vrcp.f32 %v1829_v39 }
 0x594   : > { %v2933_v54 = vpop.eup %2932 }
 0x595   : > { %v2935_v56 = vpop.eup %2934 }
 0x598   : > { %v2937_v62 = vpop.eup %2936 }
 0x5d3   : > { %v2064_v41 = vpop.f32.mrb[20].mxu1 }
 0x5d4   : > { %v2769_v42 = vpop.f32.mrb[21].mxu1  ;;  %v2199_v49 = vmul.f32 %v2931_v45, %v2064_v41 }
 0x5d5   : > { %v2067_v44 = vpop.f32.mrb[22].mxu1 }
 0x5d6   : > { %v2770_v25 = vpop.f32.mrb[23].mxu1  ;;  %v2203_v57 = vpack.c.bf16 %v2199_v49, %v2199_v49 }
 0x5d7   : > { %v2107_v48 = vpop.f32.mrb[24].mxu0 }
 0x5d8   : > { %v2775_v52 = vpop.f32.mrb[25].mxu0  ;;  %v2200_v46 = vmul.f32 %v2935_v56, %v2107_v48  ;;  %v2210_v12 = vrot.slane %v2203_v57, %v3508_v17  ;;  %v2907_v48 = vld [vmem:[#allocation8 + $0x8] sm:$0xff]  }
 0x5d9   : > { %v2110_v15 = vpop.f32.mrb[26].mxu0  ;;  %2792 = vmatpush3.bf16.msra.mxu1 %v2907_v48 }
 0x5da   : > { %v2776_v53 = vpop.f32.mrb[27].mxu0  ;;  %v2237_v3 = vpack.c.bf16 %v2200_v46, %v2200_v46 }
 0x5db   : > { %v2150_v55 = vpop.f32.mrb[24].mxu1 }
 0x5dc   : > { %v2201_v22 = vmul.f32 %v2933_v54, %v2150_v55  ;;  %v2781_v58 = vpop.f32.mrb[25].mxu1  ;;  %v2244_v8 = vrot.slane %v2237_v3, %v3508_v17 }
 0x5dd   : > { %v2153_v38 = vpop.f32.mrb[26].mxu1 }
 0x5de   : > { %v2211_v47 = vpack.c.bf16 %v2201_v22, %v2201_v22  ;;  %v2782_v61 = vpop.f32.mrb[27].mxu1 }
 0x5df   : > { %v2193_v63 = vpop.f32.mrb[28].mxu0 }
 0x5e0   : > { %v2218_v0 = vrot.slane %v2211_v47, %v3508_v17  ;;  %v2202_v1 = vmul.f32 %v2937_v62, %v2193_v63  ;;  %v2787_v2 = vpop.f32.mrb[29].mxu0 }
 0x5e1   : > { %v2196_v13 = vpop.f32.mrb[30].mxu0 }
 0x5e2   : > { %v2219_v51 = vcombine.low %v2210_v12, %v2218_v0  ;;  %v2220_v4 = vcombine.high %v2210_v12, %v2218_v0  ;;  %v2245_v36 = vpack.c.bf16 %v2202_v1, %v2202_v1  ;;  %v2788_v6 = vpop.f32.mrb[31].mxu0 }
 0x5e4   : > { %v2227_v40 = vrot.slane %v2219_v51, %v3512_v23  ;;  %v2252_v7 = vrot.slane %v2245_v36, %v3508_v17  ;;  %v2234_v60 = vrot.slane %v2220_v4, %v3512_v23 }
 0x5e6   : > { %v2253_v33 = vcombine.low %v2244_v8, %v2252_v7  ;;  %v2254_v9 = vcombine.high %v2244_v8, %v2252_v7  ;;  %v2235_v10 = vcombine.high %v2227_v40, %v3151_v50  ;;  %v2236_v16 = vcombine.high %v2234_v60, %v3151_v50 }
 0x5e7   : > { %v2275_v18 = vshrl.u32 %v2227_v40, 16  ;;  %v2291_v37 = vshrl.u32 %v2234_v60, 16 }
 0x5e8   : > { %v2261_v14 = vrot.slane %v2253_v33, %v3512_v23  ;;  %v2268_v59 = vrot.slane %v2254_v9, %v3512_v23  ;;  %v2283_v5 = vshrl.u32 %v2235_v10, 16  ;;  %v2299_v28 = vshrl.u32 %v2236_v16, 16 }
 0x5ea   : > { %v2269_v19 = vcombine.high %v2261_v14, %v3151_v50  ;;  %v2270_v43 = vcombine.high %v2268_v59, %v3151_v50  ;;  %v2273_v11 = vpack.i.b16 %v2261_v14, %v2227_v40  ;;  %v2276_v20 = vshrl.u32 %v2261_v14, 16 }
 0x5eb   : > { %v2289_v24 = vpack.i.b16 %v2268_v59, %v2234_v60  ;;  %v2292_v30 = vshrl.u32 %v2268_v59, 16 }
 0x5ec   : > { %v2277_v21 = vpack.i.b16 %v2276_v20, %v2275_v18  ;;  %v2281_v27 = vpack.i.b16 %v2269_v19, %v2235_v10  ;;  %v2284_v26 = vshrl.u32 %v2269_v19, 16  ;;  %v2297_v29 = vpack.i.b16 %v2270_v43, %v2236_v16 }
 0x5ed   : > { %v2293_v31 = vpack.i.b16 %v2292_v30, %v2291_v37  ;;  %v2300_v32 = vshrl.u32 %v2270_v43, 16  ;;  %v2303_v34 = vcombine.low %v2273_v11, %v2289_v24 }
 0x5ee   : > { %v2285_v35 = vpack.i.b16 %v2284_v26, %v2283_v5  ;;  %v2311_v39 = vcombine.low %v2281_v27, %v2297_v29 }
 0x5ef   : > { %v2301_v41 = vpack.i.b16 %v2300_v32, %v2299_v28  ;;  %v2328_v42 = vcombine.low %v2277_v21, %v2293_v31  ;;  %v2310_v44 = vrot.slane %v2303_v34, %v3508_v17 }
 0x5f0   : > { %v2318_v25 = vrot.slane %v2311_v39, %v3508_v17 }
 0x5f1   : > { %v2336_v45 = vcombine.low %v2285_v35, %v2301_v41  ;;  %v2335_v52 = vrot.slane %v2328_v42, %v3508_v17 }
 0x5f2   : > { %v2319_v49 = vcombine.low %v2310_v44, %v2318_v25 }
 0x5f3   : > { %v2343_v15 = vrot.slane %v2336_v45, %v3508_v17 }
 0x5f4   : > { %v2326_v53 = vrot.slane %v2319_v49, %v3512_v23 }
 0x5f5   : > { %v2344_v54 = vcombine.low %v2335_v52, %v2343_v15 }
 0x5f6   : > { %v2327_v56 = vcombine.high %v2326_v53, %v3151_v50  ;;  %v2356_v57 = vshrl.u32 %v2326_v53, 16 }
 0x5f7   : > { %v2351_v55 = vrot.slane %v2344_v54, %v3512_v23 }
 0x5f8   : > { %v2362_v61 = vshrl.u32 %v2327_v56, 16 }
 0x5f9   : > { %v2357_v22 = vshrl.u32 %v2351_v55, 16  ;;  %v2352_v58 = vcombine.high %v2351_v55, %v3151_v50  ;;  %v2355_v46 = vpack.i.b16 %v2351_v55, %v2326_v53 }
 0x5fb   : > { %v2358_v38 = vpack.i.b16 %v2357_v22, %v2356_v57  ;;  %v2361_v47 = vpack.i.b16 %v2352_v58, %v2327_v56  ;;  %v2363_v62 = vshrl.u32 %v2352_v58, 16 }
 0x5fd   : > { %2365 = vrot.lane.b32.xlu1 %v2358_v38, %s3152_s7  ;;  %2367 = vrot.lane.b32.xlu0 %v2361_v47, %s3153_s16  ;;  %v2364_v17 = vpack.i.b16 %v2363_v62, %v2362_v61 }
 0x601   : > { %2369 = vrot.lane.b32.xlu1 %v2364_v17, %s3154_s24 }
 0x66f   : > { %v2366_v23 = vpop.permute.xlu1 %2365  ;;  %v2368_v12 = vpop.permute.xlu0 %2367 }
 0x670   : > { %v2373_v63 = vsel %vm1392_vm2, %v2355_v46, %v2366_v23 }
 0x671   : > { %v2375_v50 = vsel %vm1749_vm4, %v2373_v63, %v2368_v12 }
 0x673   : > { %v2370_v0 = vpop.permute.xlu1 %2369 }
 0x674   : > { %v2378_v1 = vsel %vm2376_vm5, %v2375_v50, %v2370_v0 }
 0x675   : > { %2794 = vmatmul.mubr.msk.bf16.vlgmr.msra.gmra.mrb[28].mxu1 %vm426_vm0, %v2378_v1 }
 0x748   : > { %v2431_v2 = vpop.f32.mrb[28].mxu1 }
 0x749   : > { %v2437_v3 = vpack.c.bf16 %v2431_v2, %v2431_v2  ;;  %v2795_v13 = vpop.f32.mrb[29].mxu1 }
 0x74a   : > { %v2434_v51 = vpop.f32.mrb[30].mxu1 }
 0x74b   : > { %v2796_v4 = vpop.f32.mrb[31].mxu1  ;;  %2439 = vst.msk [vmem:[%s416_s14] sm:$0xf] %vm2438_vm6, %v2437_v3 }
 0x74c   : > { %3067 = shalt.err (!%p3064_p7)
}
 0x74d   : > { %s3068_s20 = scalar_lea.hbm %s3831_s23, 64  ;;  %s3072_s25 = scalar_lea.hbm %s3884_s9, 128 }
 0x74e   : > { %p3069_p2 = scmp.ne.s32.totalorder %s3831_s23, %s3068_s20  ;;  %p3073_p11 = scmp.lt.u32.totalorder %s3831_s23, %s3884_s9 }
 0x74f   : > { %p3074_p9 = scmp.lt.u32.totalorder %s3072_s25, %s3068_s20  ;;  %p3076_p1 = scmp.lt.u32.totalorder %s3068_s20, %s3831_s23 }
 0x750   : > { %p3070_p0 = pnand %p3069_p2, %p3921_p13 }
 0x751   : > { %p3075_p12 = por %p3074_p9, %p3073_p11 }
 0x752   : > { %p3071_p8 = pneg %p3070_p0 }
 0x753   : > { %p3077_p6 = por %p3076_p1, %p3075_p12 }
 0x755   : > { %p3078_p10 = pnand %p3077_p6, %p3071_p8 }
 0x757   : > { %3081 = shalt.err (!%p3078_p10)
}
 0x758   : > { %2825 = dma.vmem_to_hbm [thread:$0]  (%p3921_p13), %s3833_s21, 64, %s3831_s23, %s2441_s13  }
 0x759 PF: > { %s3922_s7 = sld [smem:[#allocation17_spill]]  ;;  %s2466_s16 = sand.u32 1, %s3120_s30  }
 0x75a   : > { %p3924_p5 = scmp.ge.s32.totalorder %s3132_s12, 2  ;;  %s2467_s24 = scalar_lea.sflag [#allocation4], %s2466_s16 }
 0x75f   : > { %p3923_p4 = scmp.ne.s32.totalorder %s3922_s7, 0 }
 0x761   : > { %p2842_p3 = pnand %p3924_p5, %p3923_p4 }
 0x763   : > { %3115 = dma.done.wait (!%p2842_p3), %s2467_s24, 64  }
 0x764   : > { %3117 = vsyncadd (!%p2842_p3), %s2467_s24, 4294967232  ;;  %s3925_s12 = sld [smem:[#allocation18_spill]]  ;;  %s3926_s28 = sld [smem:[#allocation16_spill]] }
 0x765   : > { %s3927_s11 = sld [smem:[#allocation19_spill]]  ;;  %s3928_s30 = smov %s3124_s10 }
 0x76a   : > { %p26_p7 = scmp.ge.s32.totalorder %s3925_s12, 4   ;;  %s3929_s10 = smov %s3926_s28 }
 0x76c   :  { %28 = sbr.rel (!%p26_p7) target bundleno = 12 (0xc), region = 122 }
 0x773   :  { %2472 = vsyncpa [#allocation3], 1 }
 0x774   :  { %2474 = vsyncpa [#allocation3 + $0x1], 1 }
 0x775   :  { %2475 = vsyncpa [#allocation6], 1 }
 0x776   :  { %2477 = vsyncpa [#allocation6 + $0x1], 1 }
 0x777   :  { %2478 = vsyncpa [#allocation9], 1 }
 0x778   :  { %2479 = vsyncpa [#allocation4], 1 }
 0x779   :  { %2481 = vsyncpa [#allocation4 + $0x1], 1 }

// kernel: tpu_custom_call.1
= control target key start
LH: loop header
LB: loop body
LE: loop exit
PB: predicated region body
PF: predicated region fallthrough
CT: control target
= control target key end

     0   :  { %s3875_s0 = inlined_call_operand.hbm [shape: bf16[2,16,32], index: 0, kind: input, shape index: {}]   ;;  %s3876_s1 = inlined_call_operand.hbm [shape: bf16[2,8,32], index: 1, kind: input, shape index: {}]   ;;  %s3877_s2 = inlined_call_operand.vmem [shape: f32[1,32], index: 2, kind: input, shape index: {}]   ;;  %s3878_s3 = inlined_call_operand.vmem [shape: f32[1,32], index: 3, kind: input, shape index: {}]   ;;  %s3879_s4 = inlined_call_operand.vmem [shape: f32[1,32], index: 4, kind: input, shape index: {}]   ;;  %s3880_s5 = inlined_call_operand.vmem [shape: f32[1,32], index: 5, kind: input, shape index: {}]   ;;  %s3881_s6 = inlined_call_operand.vmem [shape: bf16[32,32], index: 6, kind: input, shape index: {}]   ;;  %s3882_s7 = inlined_call_operand.hbm [shape: bf16[32,64], index: 7, kind: input, shape index: {}]   ;;  %s3883_s8 = inlined_call_operand.hbm [shape: bf16[32,32], index: 8, kind: input, shape index: {}]   ;;  %s3884_s9 = inlined_call_operand.hbm [shape: bf16[2,8,32], index: 9, kind: output, shape index: {}]  }
   0x1   :  { %3895 = sst [smem:[#allocation20_spill]] %s3875_s0 }
   0x2   :  { %3896 = sst [smem:[#allocation21_spill]] %s3882_s7 }
   0x3   :  { %3897 = sst [smem:[#allocation22_spill]] %s3883_s8 }
   0x4   :  { %14 = vsyncpa [#allocation3], 0 }
   0x5   :  { %16 = vsyncpa [#allocation3 + $0x1], 0 }
   0x6   :  { %17 = vsyncpa [#allocation6], 0 }
   0x7   :  { %19 = vsyncpa [#allocation6 + $0x1], 0 }
   0x8   :  { %20 = vsyncpa [#allocation9], 0 }
   0x9   :  { %21 = vsyncpa [#allocation4], 0 }
   0xa   :  { %23 = vsyncpa [#allocation4 + $0x1], 0  ;;  %s3206_s30 = smov 0   ;;  %s3208_s10 = smov 0  }
   0xb   :  { %s3210_s11 = smov 0   ;;  %s3212_s12 = smov 0  }
   0xc LB: > { %3898 = sst [smem:[#allocation16_spill]] %s3128_s11  ;;  %s3227_s13 = sadd.s32 4294967295, %s3132_s12   ;;  %s3132_s12 = sphi %s3212_s12, %s3925_s12   ;;  %s3128_s11 = sphi %s3210_s11, %s3927_s11   ;;  %s3124_s10 = sphi %s3208_s10, %s3929_s10   ;;  %s3120_s30 = sphi %s3206_s30, %s3928_s30  }
   0xd   : > { %s2566_s14 = sadd.s32 4294967294, %s3132_s12   ;;  %p49_p0 = scmp.ne.s32.totalorder %s3124_s10, %s3120_s30 }
   0xe   : > { %p3885_p1 = scmp.eq.s32.totalorder %s3227_s13, 0  ;;  %p252_p3 = scmp.eq.s32.totalorder %s2566_s14, 1 }
   0xf   : > { %p2567_p5 = scmp.ge.s32.totalorder %s3132_s12, 1  ;;  %p259_p7 = scmp.lt.s32.totalorder %s3132_s12, 3 }
  0x10   : > { %p3236_p4 = por %p3885_p1, %p49_p0  ;;  %p3241_p6 = por %p252_p3, %p49_p0 }
  0x11   : > { %p3246_p8 = pnand %p2567_p5, %p259_p7  ;;  %s3134_s18 = smov [#allocation7]  }
  0x12   : > { %s3899_s15 = scalar_select %p3236_p4, 1, 0 }
  0x13   : > { %s3900_s16 = scalar_select %p3241_p6, 1, 0 }
  0x14   : > { %s3902_s17 = scalar_select %p3246_p8, 1, 0 }
  0x15   : > { %3901 = sst [smem:[#allocation17_spill]] %s3900_s16  ;;  %s286_s19 = sshll.u32 %s3134_s18, 4  ;;  %s3250_s19 = int_to_ptr.vmem [resolvable:$true] %s286_s19 }
  0x16   : > { %p2827_p9 = pneg %p3246_p8  ;;  %s3135_s21 = smov [#allocation8]  }
  0x17   : > { %s299_s22 = sshll.u32 %s3135_s21, 4  ;;  %s3904_s7 = sld [smem:[#allocation21_spill]]  ;;  %s3261_s22 = int_to_ptr.vmem [resolvable:$true] %s299_s22 }
  0x18   : > { %p3257_p11 = pnand %p2827_p9, %p3885_p1 }
  0x1a   : > { %p2940_p13 = pneg %p3257_p11 }
  0x1d   : > { %s2938_s25 = scalar_lea.hbm %s3904_s7, 256 }
  0x1e   : > { %p2939_p12 = scmp.ne.s32.totalorder %s3904_s7, %s2938_s25  ;;  %p2945_p5 = scmp.lt.u32.totalorder %s2938_s25, %s3904_s7 }
  0x20   : > { %p2941_p0 = pnand %p2940_p13, %p2939_p12 }
  0x22   : > { %p2942_p3 = pneg %p2941_p0 }
  0x24   : > { %p2947_p7 = pnand %p2945_p5, %p2942_p3 }
  0x26   : > { %2950 = shalt.err (!%p2947_p7)
}
  0x27   : > { %s2951_s14 = scalar_lea.vmem %s3250_s19, 256  ;;  %p2959_p2 = scmp.lt.s32.totalorder %s3250_s19, %s3250_s19 }
  0x28   : > { %p2952_p9 = scmp.ne.s32.totalorder %s3250_s19, %s2951_s14  ;;  %p2960_p12 = scmp.lt.s32.totalorder %s2951_s14, %s2951_s14 }
  0x2a   : > { %p2954_p10 = pnand %p2952_p9, %p2940_p13  ;;  %p2961_p0 = por %p2960_p12, %p2959_p2 }
  0x2c   : > { %p2955_p1 = pneg %p2954_p10 }
  0x2e   : > { %p2962_p6 = pnand %p2961_p0, %p2955_p1 }
  0x30   : > { %2965 = shalt.err (!%p2962_p6)
}
  0x31   : > { %s3887_s18 = smov 64   ;;  %s3888_s21 = smov 4  }
  0x32   : > { %2830 = dma.hbm_to_vmem [thread:$0]  (!%p3257_p11), %s3904_s7, 256, %s3250_s19, [#allocation6], %s3887_s18, %s3887_s18, %s3888_s21  }
  0x33   : > { %s3905_s8 = sld [smem:[#allocation22_spill]] }
  0x39   : > { %s2966_s27 = scalar_lea.hbm %s3905_s8, 256 }
  0x3a   : > { %p2967_p1 = scmp.ne.s32.totalorder %s3905_s8, %s2966_s27  ;;  %p2973_p10 = scmp.lt.u32.totalorder %s2966_s27, %s3905_s8 }
  0x3c   : > { %p2969_p2 = pnand %p2967_p1, %p2940_p13 }
  0x3e   : > { %p2970_p6 = pneg %p2969_p2 }
  0x40   : > { %p2975_p3 = pnand %p2973_p10, %p2970_p6 }
  0x42   : > { %2978 = shalt.err (!%p2975_p3)
}
  0x43   : > { %s2979_s19 = scalar_lea.vmem %s3261_s22, 256  ;;  %p2987_p12 = scmp.lt.s32.totalorder %s3261_s22, %s3261_s22 }
  0x44   : > { %p2980_p5 = scmp.ne.s32.totalorder %s3261_s22, %s2979_s19  ;;  %p2988_p0 = scmp.lt.s32.totalorder %s2979_s19, %s2979_s19 }
  0x46   : > { %p2982_p7 = pnand %p2980_p5, %p2940_p13  ;;  %p2989_p1 = por %p2988_p0, %p2987_p12 }
  0x48   : > { %p2983_p9 = pneg %p2982_p7 }
  0x4a   : > { %p2990_p2 = pnand %p2989_p1, %p2983_p9 }
  0x4c   : > { %2993 = shalt.err (!%p2990_p2)
}
  0x4d   : > { %2833 = dma.hbm_to_vmem [thread:$0]  (!%p3257_p11), %s3905_s8, 256, %s3261_s22, [#allocation9], %s3887_s18, %s3887_s18, %s3888_s21  }
  0x4e   : > { %s3322_s20 = sadd.s32 1, %s3132_s12   ;;  %s36_s24 = sadd.s32 1, %s3128_s11 }
  0x4f   : > { %3906 = sst [smem:[#allocation18_spill]] %s3322_s20  ;;  %s33_s25 = ssub.s32 %s3132_s12, %s3322_s20 }
  0x50   : > { %p43_p13 = scmp.ne.s32.totalorder %s3128_s11, %s3124_s10  ;;  %p34_p6 = scmp.eq.s32.totalorder %s33_s25, 0 }
  0x51   : > { %p44_p10 = scmp.eq.s32.totalorder %s3132_s12, 0  ;;  %p3907_p3 = scmp.eq.s32.totalorder %s3227_s13, 1 }
  0x52   : > { %p2847_p7 = scmp.lt.s32.totalorder %s3132_s12, 2  ;;  %s3341_s28 = sand.u32 1, %s3128_s11  }
  0x53   : > { %p3332_p5 = por %p3907_p3, %p43_p13  ;;  %p45_p9 = por %p44_p10, %p43_p13 }
  0x54   : > { %s3338_s27 = scalar_select %p34_p6, %s3128_s11, %s36_s24  }
  0x55   : > { %s3908_s26 = scalar_select %p3332_p5, 1, 0 }
  0x56   : > { %3909 = sst [smem:[#allocation19_spill]] %s3338_s27  ;;  %s2571_s22 = sshll.u32 %s3341_s28, 3 }
  0x57   : > { %s2620_s29 = sshll.u32 %s3132_s12, 7  ;;  %s3910_s0 = sld [smem:[#allocation20_spill]] }
  0x58   : > { %s317_s23 = scalar_lea.vmem [#allocation2], %s2571_s22  ;;  %p3352_p11 = pnand %p2847_p7, %p45_p9 }
  0x59   : > { %s324_s24 = sshll.u32 %s317_s23, 4  ;;  %s2574_s21 = sshll.u32 %s3341_s28, 2  ;;  %s3350_s24 = int_to_ptr.vmem [resolvable:$true] %s324_s24 }
  0x5a   : > { %s314_s7 = scalar_lea.sflag [#allocation3], %s3341_s28  ;;  %p2996_p0 = pneg %p3352_p11 }
  0x5d   : > { %s3348_s16 = scalar_lea.hbm %s3910_s0, %s2620_s29  ;;  %s2999_s19 = scalar_lea.hbm %s3910_s0, 256 }
  0x5e   : > { %s2994_s14 = scalar_lea.hbm %s3348_s16, 128  ;;  %p3000_p13 = scmp.lt.u32.totalorder %s3348_s16, %s3910_s0 }
  0x5f   : > { %p2995_p12 = scmp.ne.s32.totalorder %s3348_s16, %s2994_s14  ;;  %p3001_p6 = scmp.lt.u32.totalorder %s2999_s19, %s2994_s14 }
  0x60   : > { %p3003_p3 = scmp.lt.u32.totalorder %s2994_s14, %s3348_s16 }
  0x61   : > { %p2997_p1 = pnand %p2996_p0, %p2995_p12  ;;  %p3002_p10 = por %p3001_p6, %p3000_p13 }
  0x63   : > { %p2998_p2 = pneg %p2997_p1  ;;  %p3004_p7 = por %p3003_p3, %p3002_p10 }
  0x65   : > { %p3005_p9 = pnand %p3004_p7, %p2998_p2 }
  0x67   : > { %3008 = shalt.err (!%p3005_p9)
}
  0x68   : > { %s3009_s18 = scalar_lea.vmem %s3350_s24, 128  ;;  %s3138_s22 = smov [#allocation2]  }
  0x69   : > { %p3010_p12 = scmp.ne.s32.totalorder %s3350_s24, %s3009_s18  ;;  %s3014_s29 = sshll.u32 %s3138_s22, 4  ;;  %s3015_s29 = int_to_ptr.vmem [resolvable:$false] %s3014_s29 }
  0x6a   : > { %s3016_s8 = scalar_lea.vmem %s3015_s29, 256  ;;  %p3017_p4 = scmp.lt.s32.totalorder %s3350_s24, %s3015_s29 }
  0x6b   : > { %p3012_p1 = pnand %p3010_p12, %p2996_p0  ;;  %p3018_p13 = scmp.lt.s32.totalorder %s3016_s8, %s3009_s18 }
  0x6d   : > { %p3013_p5 = pneg %p3012_p1  ;;  %p3019_p6 = por %p3018_p13, %p3017_p4 }
  0x6f   : > { %p3020_p10 = pnand %p3019_p6, %p3013_p5 }
  0x71   : > { %3023 = shalt.err (!%p3020_p10)
}
  0x72   : > { %s3912_s14 = smov 4   ;;  %s3913_s19 = smov 64  }
  0x73   : > { %2837 = dma.hbm_to_vmem [thread:$0]  (!%p3352_p11), %s3348_s16, 128, %s3350_s24, %s314_s7, %s3913_s19, %s3913_s19, %s3912_s14  }
  0x74   : > { %s2575_s23 = sshll.u32 %s3132_s12, 6  ;;  %s338_s8 = scalar_lea.vmem [#allocation5], %s2574_s21 }
  0x75   : > { %s3393_s29 = scalar_lea.hbm %s3876_s1, %s2575_s23  ;;  %s345_s0 = sshll.u32 %s338_s8, 4  ;;  %s346_s0 = int_to_ptr.vmem [resolvable:$true] %s345_s0 }
  0x76   : > { %s3914_s27 = sand.u32 1, %s3132_s12   ;;  %s3024_s20 = scalar_lea.hbm %s3393_s29, 64 }
  0x77   : > { %s335_s11 = scalar_lea.sflag [#allocation6], %s3914_s27  ;;  %p3025_p4 = scmp.ne.s32.totalorder %s3393_s29, %s3024_s20 }
  0x78   : > { %s3029_s24 = scalar_lea.hbm %s3876_s1, 128  ;;  %p3030_p3 = scmp.lt.u32.totalorder %s3393_s29, %s3876_s1 }
  0x79   : > { %p3027_p5 = pnand %p3025_p4, %p2996_p0  ;;  %p3031_p7 = scmp.lt.u32.totalorder %s3029_s24, %s3024_s20 }
  0x7a   : > { %p3033_p12 = scmp.lt.u32.totalorder %s3024_s20, %s3393_s29 }
  0x7b   : > { %p3028_p2 = pneg %p3027_p5  ;;  %p3032_p9 = por %p3031_p7, %p3030_p3 }
  0x7d   : > { %p3034_p1 = por %p3033_p12, %p3032_p9 }
  0x7f   : > { %p3035_p13 = pnand %p3034_p1, %p3028_p2 }
  0x81   : > { %3038 = shalt.err (!%p3035_p13)
}
  0x82   : > { %s3039_s21 = scalar_lea.vmem %s346_s0, 64  ;;  %s3139_s27 = smov [#allocation5]  }
  0x83   : > { %p3040_p6 = scmp.ne.s32.totalorder %s346_s0, %s3039_s21  ;;  %s3044_s19 = sshll.u32 %s3139_s27, 4  ;;  %s3045_s19 = int_to_ptr.vmem [resolvable:$false] %s3044_s19 }
  0x84   : > { %s3046_s23 = scalar_lea.vmem %s3045_s19, 128  ;;  %p3047_p5 = scmp.lt.s32.totalorder %s346_s0, %s3045_s19 }
  0x85   : > { %p3042_p10 = pnand %p3040_p6, %p2996_p0  ;;  %p3048_p8 = scmp.lt.s32.totalorder %s3046_s23, %s3039_s21 }
  0x87   : > { %p3043_p4 = pneg %p3042_p10  ;;  %p3049_p3 = por %p3048_p8, %p3047_p5 }
  0x89   : > { %p3050_p7 = pnand %p3049_p3, %p3043_p4 }
  0x8b   : > { %3053 = shalt.err (!%p3050_p7)
}
  0x8c   : > { %2840 = dma.hbm_to_vmem [thread:$0]  (!%p3352_p11), %s3393_s29, 64, %s346_s0, %s335_s11  }
  0x8d   : > { %p3915_p2 = scmp.ne.s32.totalorder %s3902_s17, 0 }
  0x8e   : > { %s3421_s20 = sand.u32 (!%p3915_p2), 1, %s3124_s10   ;;  %p3916_p0 = scmp.ne.s32.totalorder (!%p3915_p2), %s3899_s15, 0 }
  0x8f   : > { %354 = sbr.rel (%p3915_p2) target bundleno = 1881 (0x759), region = 56  ;;  %s2577_s22 = sshll.u32 (!%p3915_p2), %s3421_s20, 3 }
  0x90   : > { %s357_s18 = scalar_lea.sflag (!%p3915_p2), [#allocation3], %s3421_s20  ;;  %s360_s8 = scalar_lea.vmem (!%p3915_p2), [#allocation2], %s2577_s22 }
  0x96   : > { %3099 = dma.done.wait (%p3916_p0), %s357_s18, 128  }
  0x97   : > { %3101 = vsyncadd (%p3916_p0), %s357_s18, 4294967168  ;;  %s365_s0 = sand.u32 1, %s3227_s13   ;;  %s2578_s11 = sshll.u32 %s3421_s20, 2 }
  0x98   : > { %s366_s17 = scalar_lea.sflag [#allocation6], %s365_s0  ;;  %s369_s25 = scalar_lea.vmem [#allocation5], %s2578_s11 }
  0x99   : > { %3103 = dma.done.wait (%p3916_p0), %s366_s17, 64  }
  0x9a   : > { %3105 = vsyncadd (%p3916_p0), %s366_s17, 4294967232  ;;  %p3917_p8 = scmp.eq.s32.totalorder %s3227_s13, 0 }
  0x9c   : > { %3107 = dma.done.wait (%p3917_p8), [#allocation6], 256   ;;  %p3918_p11 = pmov %p3917_p8 }
  0x9d   : > { %p3919_p9 = pmov %p3917_p8 }
  0x9e   : > { %3109 = vsyncadd (%p3918_p11), [#allocation6], 4294967040 }
  0x9f   : > { %3111 = dma.done.wait (%p3919_p9), [#allocation9], 256   ;;  %p3920_p12 = pmov %p3917_p8 }
  0xa0   : > { %v2622_v0 = vld [vmem:[%s360_s8] sm:$0xff]   ;;  %vm426_vm0 = vcmask 261120   ;;  %v422_v1 = vld [vmem:[%s369_s25] sm:$0xf]  ;;  %v2903_v24 = vld [vmem:[#allocation7] sm:$0xff]   ;;  %v3140_v25 = vmov 0.0  }
  0xa1   : > { %3113 = vsyncadd (%p3920_p12), [#allocation9], 4294967040  ;;  %v2623_v2 = vunpack.c.l.bf16 %v2622_v0  ;;  %v423_v3 = vunpack.c.l.bf16 %v422_v1  ;;  %v2624_v4 = vunpack.c.h.bf16 %v2622_v0  ;;  %v2902_v23 = vld [vmem:[%s3881_s6] sm:$0xff]   ;;  %2669 = vmatprep.subr.bf16.mxu0 %v3140_v25  ;;  %2677 = vmatprep.subr.bf16.mxu1 %v3140_v25  ;;  %v2904_v26 = vld [vmem:[%s3881_s6 + $0x8] sm:$0xff]   ;;  %vm3141_vm1 = vmmov 0   ;;  %s3142_s18 = smov 120  }
  0xa2   : > { %2670 = vmatpush3.bf16.msra.mxu0 %v2902_v23  ;;  %2678 = vmatpush3.bf16.msra.mxu1 %v2903_v24  ;;  %v2905_v27 = vld [vmem:[#allocation7 + $0x8] sm:$0xff]   ;;  %s3143_s8 = smov 112   ;;  %s3144_s0 = smov 104   ;;  %vm1392_vm2 = vcmask 64512   ;;  %vm1845_vm3 = vcmask 1043456   ;;  %vm1749_vm4 = vcmask 130048  }
  0xa3   : > { %v427_v5 = vsel %vm426_vm0, %v2623_v2, 0.0  ;;  %v473_v6 = vsel %vm426_vm0, %v423_v3, 0.0  ;;  %v430_v7 = vsel %vm426_vm0, %v2624_v4, 0.0  ;;  %2671 = vmatprep.subr.bf16.mxu0 %v3140_v25  ;;  %2679 = vmatprep.subr.bf16.mxu1 %v3140_v25  ;;  %v2582_v39 = vld [vmem:[%s3877_s2] ss:$0 sm:$0xff]  ;;  %s3145_s17 = smov 88  }
  0xa4   : > { %428 = vadd.xlane.f32.xlu0 %v427_v5  ;;  %474 = vadd.xlane.f32.xlu1 %v473_v6  ;;  %v2584_v41 = vld [vmem:[%s3879_s4] ss:$0 sm:$0xff]  ;;  %s3146_s25 = smov 96   ;;  %s3147_s15 = smov 72   ;;  %v3149_v6 = vmov 1983009808  }
  0xa5   : > { %2673 = vmatprep.mubr.msk.bf16.mxu0 %vm3141_vm1, %v3140_v25  ;;  %2681 = vmatprep.mubr.msk.bf16.mxu1 %vm3141_vm1, %v3140_v25  ;;  %v2585_v45 = vld [vmem:[%s3880_s5] ss:$0 sm:$0xff]  ;;  %s3148_s29 = smov 80   ;;  %s3152_s7 = smov 8   ;;  %vm2376_vm5 = vcmask 195584   ;;  %vm2438_vm6 = vcmask 257024  }
  0xa6   : > { %2672 = vmatpush3.bf16.msra.mxu0 %v2904_v26  ;;  %2680 = vmatpush3.bf16.msra.mxu1 %v2905_v27  ;;  %v2583_v48 = vld [vmem:[%s3878_s3] ss:$0 sm:$0xff]  ;;  %s3153_s16 = smov 16   ;;  %s3154_s24 = smov 24  }
  0xa7   : > { %2685 = vmatprep.subr.bf16.mxu0 %v3140_v25  ;;  %2693 = vmatprep.subr.bf16.mxu1 %v3140_v25  ;;  %s2617_s28 = sshll.u32 %s3227_s13, 6  ;;  %s416_s14 = scalar_lea.vmem [#allocation10], %s2578_s11 }
  0xa8   : > { %431 = vadd.xlane.f32.xlu0 %v430_v7  ;;  %v671_v7 = vunpack.c.l.s4 %v3149_v6  ;;  %s2454_s21 = sshll.u32 %s416_s14, 4  ;;  %s3831_s23 = scalar_lea.hbm %s3884_s9, %s2617_s28  ;;  %s3833_s21 = int_to_ptr.vmem [resolvable:$true] %s2454_s21 }
  0xa9   : > { %s2441_s13 = scalar_lea.sflag [#allocation4], %s3421_s20  ;;  %s3054_s11 = scalar_lea.vmem %s3833_s21, 64 }
  0xaa   : > { %p3055_p1 = scmp.ne.s32.totalorder %s3833_s21, %s3054_s11  ;;  %p3921_p13 = scmp.ne.s32.totalorder %s3908_s26, 0 }
  0xab   : > { %s3155_s22 = smov [#allocation10]  }
  0xac   : > { %p3056_p6 = pnand %p3055_p1, %p3921_p13 }
  0xae   : > { %p3057_p10 = pneg %p3056_p6 }
 0x131   : > { %v429_v8 = vpop.xlane.xlu0 %428  ;;  %v475_v9 = vpop.xlane.xlu1 %474 }
 0x132   : > { %v434_v10 = vmul.f32 0.03125, %v429_v8  ;;  %v476_v11 = vmul.f32 0.03125, %v475_v9  ;;  %v673_v8 = vlaneseq }
 0x134   : > { %v436_v12 = vsub.f32 %v2623_v2, %v434_v10  ;;  %v477_v13 = vsub.f32 %v423_v3, %v476_v11  ;;  %v672_v11 = vunpack.c.0.s8 %v671_v7 }
 0x135   : > { %v432_v14 = vpop.xlane.xlu0 %431 }
 0x136   : > { %v435_v15 = vmul.f32 0.03125, %v432_v14  ;;  %v438_v16 = vmul.f32 %v436_v12, %v436_v12  ;;  %v478_v17 = vmul.f32 %v477_v13, %v477_v13 }
 0x138   : > { %v437_v18 = vsub.f32 %v2624_v4, %v435_v15  ;;  %v440_v19 = vsel %vm426_vm0, %v438_v16, 0.0  ;;  %v479_v20 = vsel %vm426_vm0, %v478_v17, 0.0 }
 0x139   : > { %441 = vadd.xlane.f32.xlu1 %v440_v19 }
 0x13a   : > { %v439_v21 = vmul.f32 %v437_v18, %v437_v18 }
 0x13c   : > { %v443_v22 = vsel %vm426_vm0, %v439_v21, 0.0 }
 0x13d   : > { %480 = vadd.xlane.f32.xlu1 %v479_v20  ;;  %444 = vadd.xlane.f32.xlu0 %v443_v22 }
 0x1c6   : > { %v442_v28 = vpop.xlane.xlu1 %441 }
 0x1c7   : > { %v446_v29 = vmul.f32 0.03125, %v442_v28 }
 0x1c9   : > { %v448_v30 = vadd.f32 1e-05, %v446_v29 }
 0x1ca   : > { %v481_v31 = vpop.xlane.xlu1 %480  ;;  %v445_v32 = vpop.xlane.xlu0 %444 }
 0x1cb   : > { %2908 = vrsqrt.f32 %v448_v30  ;;  %v482_v33 = vmul.f32 0.03125, %v481_v31  ;;  %v447_v34 = vmul.f32 0.03125, %v445_v32 }
 0x1cd   : > { %v483_v35 = vadd.f32 1e-05, %v482_v33  ;;  %v449_v36 = vadd.f32 1e-05, %v447_v34 }
 0x1cf   : > { %2910 = vrsqrt.f32 %v483_v35 }
 0x1d0   : > { %2912 = vrsqrt.f32 %v449_v36 }
 0x1d5   : > { %v2909_v37 = vpop.eup %2908 }
 0x1d6   : > { %v452_v38 = vmul.f32 %v2909_v37, %v436_v12  ;;  %v674_v12 = vshrl.u32 %v673_v8, 7 }
 0x1d8   : > { %v460_v46 = vmul.f32 %v2582_v39, %v452_v38  ;;  %v3508_v17 = vsub.s32 %v672_v11, %v674_v12 }
 0x1d9   : > { %v2911_v40 = vpop.eup %2910 }
 0x1da   : > { %v2913_v42 = vpop.eup %2912  ;;  %v485_v43 = vmul.f32 %v2911_v40, %v477_v13  ;;  %v468_v51 = vadd.f32 %v2583_v48, %v460_v46  ;;  %v3150_v13 = vmov 1934713408  }
 0x1db   : > { %v453_v44 = vmul.f32 %v2913_v42, %v437_v18  ;;  %v688_v14 = vunpack.c.l.s4 %v3150_v13 }
 0x1dc   : > { %v492_v47 = vmul.f32 %v2584_v41, %v485_v43 }
 0x1dd   : > { %v461_v49 = vmul.f32 %v2582_v39, %v453_v44  ;;  %v689_v18 = vunpack.c.0.s8 %v688_v14 }
 0x1de   : > { %v499_v50 = vadd.f32 %v2585_v45, %v492_v47 }
 0x1df   : > { %v469_v52 = vadd.f32 %v2583_v48, %v461_v49  ;;  %v3512_v23 = vsub.s32 %v689_v18, %v674_v12 }
 0x1e0   : > { %v500_v53 = vpack.c.bf16 %v499_v50, %v499_v50  ;;  %v3151_v50 = vmov 0  }
 0x1e1   : > { %v470_v54 = vpack.c.bf16 %v469_v52, %v468_v51 }
 0x1e2   : > { %2674 = vmatmul.mubr.msk.bf16.vlgmr.msra.gmra.mrb[0].mxu0 %vm426_vm0, %v500_v53 }
 0x1e3   : > { %2682 = vmatmul.mubr.msk.bf16.vlgmr.msra.gmra.mrb[0].mxu1 %vm426_vm0, %v470_v54  ;;  %2686 = vmatpush3.bf16.msra.mxu0 %v2903_v24 }
 0x1e4   : > { %2687 = vmatprep.subr.bf16.mxu0 %v3140_v25  ;;  %2689 = vmatprep.mubr.msk.bf16.mxu0 %vm3141_vm1, %v3140_v25 }
 0x1e5   : > { %2695 = vmatprep.mubr.msk.bf16.mxu1 %vm3141_vm1, %v3140_v25 }
 0x1e7   : > { %2688 = vmatpush3.bf16.msra.mxu0 %v2905_v27 }
 0x1e8   : > { %2699 = vmatprep.subr.bf16.mxu0 %v3140_v25 }
 0x1ea   : > { %2690 = vmatmul.mubr.msk.bf16.vlgmr.msra.gmra.mrb[4].mxu0 %vm426_vm0, %v500_v53 }
 0x1eb   : > { %2701 = vmatprep.mubr.msk.bf16.mxu0 %vm3141_vm1, %v3140_v25 }
 0x2b5   : > { %v554_v55 = vpop.f32.mrb[0].mxu0 }
 0x2b6   : > { %v560_v56 = vpack.c.bf16 %v554_v55, %v554_v55  ;;  %v614_v57 = vpop.f32.mrb[0].mxu1  ;;  %v2675_v58 = vpop.f32.mrb[1].mxu0 }
 0x2b7   : > { %v2683_v59 = vpop.f32.mrb[1].mxu1  ;;  %v557_v60 = vpop.f32.mrb[2].mxu0 }
 0x2b8   : > { %v617_v61 = vpop.f32.mrb[2].mxu1  ;;  %664 = vrot.lane.b32.xlu1 %v560_v56, %s3142_s18  ;;  %v2676_v62 = vpop.f32.mrb[3].mxu0  ;;  %666 = vrot.lane.b32.xlu0 %v560_v56, %s3143_s8  ;;  %v676_v22 = vrot.slane %v560_v56, %v3508_v17 }
 0x2b9   : > { %v3490_v63 = vpack.c.bf16 %v617_v61, %v614_v57  ;;  %v2684_v0 = vpop.f32.mrb[3].mxu1 }
 0x2bb   : > { %v850_v34 = vshrl.u32 %v3490_v63, 16 }
 0x2bc   : > { %834 = vrot.lane.b32.xlu1 %v3490_v63, %s3143_s8  ;;  %832 = vrot.lane.b32.xlu0 %v3490_v63, %s3142_s18 }
 0x2bd   : > { %v656_v1 = vpop.f32.mrb[4].mxu0 }
 0x2be   : > { %v2691_v2 = vpop.f32.mrb[5].mxu0  ;;  %v3498_v5 = vpack.c.bf16 %v656_v1, %v656_v1 }
 0x2bf   : > { %v659_v3 = vpop.f32.mrb[6].mxu0 }
 0x2c0   : > { %v2692_v4 = vpop.f32.mrb[7].mxu0  ;;  %836 = vrot.lane.b32.xlu1 %v3490_v63, %s3144_s0  ;;  %840 = vrot.lane.b32.xlu0 %v3490_v63, %s3145_s17 }
 0x2c4   : > { %838 = vrot.lane.b32.xlu1 %v3490_v63, %s3146_s25  ;;  %844 = vrot.lane.b32.xlu0 %v3490_v63, %s3147_s15 }
 0x2c8   : > { %842 = vrot.lane.b32.xlu1 %v3490_v63, %s3148_s29  ;;  %1179 = vrot.lane.b32.xlu0 %v3498_v5, %s3142_s18  ;;  %s3058_s18 = sshll.u32 %s3155_s22, 4  ;;  %s3059_s18 = int_to_ptr.vmem [resolvable:$false] %s3058_s18 }
 0x2c9   : > { %p3061_p4 = scmp.lt.s32.totalorder %s3833_s21, %s3059_s18 }
 0x2cc   : > { %668 = vrot.lane.b32.xlu1 %v560_v56, %s3144_s0  ;;  %1185 = vrot.lane.b32.xlu0 %v3498_v5, %s3144_s0 }
 0x2d0   : > { %1182 = vrot.lane.b32.xlu1 %v3498_v5, %s3143_s8  ;;  %1191 = vrot.lane.b32.xlu0 %v3498_v5, %s3145_s17  ;;  %s3060_s8 = scalar_lea.vmem %s3059_s18, 128 }
 0x2d1   : > { %p3062_p5 = scmp.lt.s32.totalorder %s3060_s8, %s3054_s11 }
 0x2d3   : > { %p3063_p3 = por %p3062_p5, %p3061_p4 }
 0x2d4   : > { %1188 = vrot.lane.b32.xlu1 %v3498_v5, %s3146_s25  ;;  %1197 = vrot.lane.b32.xlu0 %v3498_v5, %s3147_s15 }
 0x2d5   : > { %p3064_p7 = pnand %p3063_p3, %p3057_p10 }
 0x2d8   : > { %1194 = vrot.lane.b32.xlu1 %v3498_v5, %s3148_s29 }
 0x32a   : > { %v665_v9 = vpop.permute.xlu1 %664  ;;  %v667_v10 = vpop.permute.xlu0 %666 }
 0x32b   : > { %v684_v19 = vrot.slane %v667_v10, %v3508_v17  ;;  %v710_v49 = vrot.slane %v665_v9, %v3508_v17 }
 0x32d   : > { %v685_v24 = vcombine.low %v676_v22, %v684_v19  ;;  %v686_v26 = vcombine.high %v676_v22, %v684_v19 }
 0x32e   : > { %v835_v15 = vpop.permute.xlu1 %834  ;;  %v833_v16 = vpop.permute.xlu0 %832 }
 0x32f   : > { %v851_v29 = vshrl.u32 %v833_v16, 16  ;;  %v3515_v33 = vrot.slane %v685_v24, %v3512_v23  ;;  %v848_v35 = vpack.i.b16 %v833_v16, %v3490_v63  ;;  %v3520_v37 = vrot.slane %v686_v26, %v3512_v23 }
 0x330   : > { %v858_v41 = vshrl.u32 %v835_v15, 16 }
 0x331   : > { %v852_v42 = vpack.i.b16 %v851_v29, %v850_v34  ;;  %v3527_v51 = vcombine.high %v3515_v33, %v3151_v50  ;;  %v3533_v60 = vcombine.high %v3520_v37, %v3151_v50  ;;  %v741_v29 = vshrl.u32 %v3515_v33, 16 }
 0x332   : > { %v837_v20 = vpop.permute.xlu1 %836  ;;  %v841_v21 = vpop.permute.xlu0 %840 }
 0x333   : > { %v867_v30 = vshrl.u32 %v841_v21, 16  ;;  %v859_v38 = vshrl.u32 %v837_v20, 16  ;;  %v856_v45 = vpack.i.b16 %v837_v20, %v835_v15  ;;  %v749_v34 = vshrl.u32 %v3527_v51, 16 }
 0x335   : > { %v860_v54 = vpack.i.b16 %v859_v38, %v858_v41 }
 0x336   : > { %v839_v27 = vpop.permute.xlu1 %838  ;;  %v845_v28 = vpop.permute.xlu0 %844 }
 0x337   : > { %v864_v31 = vpack.i.b16 %v841_v21, %v839_v27  ;;  %v866_v32 = vshrl.u32 %v839_v27, 16  ;;  %v875_v46 = vshrl.u32 %v845_v28, 16 }
 0x339   : > { %v868_v36 = vpack.i.b16 %v867_v30, %v866_v32  ;;  %v878_v43 = vcombine.low %v848_v35, %v864_v31  ;;  %v879_v44 = vcombine.high %v848_v35, %v864_v31  ;;  %v757_v30 = vshrl.u32 %v3520_v37, 16 }
 0x33a   : > { %v843_v39 = vpop.permute.xlu1 %842  ;;  %v3522_v40 = vpop.permute.xlu0 %1179  ;;  %v765_v35 = vshrl.u32 %v3533_v60, 16 }
 0x33b   : > { %v872_v47 = vpack.i.b16 %v845_v28, %v843_v39  ;;  %v874_v48 = vshrl.u32 %v843_v39, 16  ;;  %v946_v52 = vcombine.low %v852_v42, %v868_v36  ;;  %v947_v53 = vcombine.high %v852_v42, %v868_v36 }
 0x33c   : > { %v886_v61 = vrot.slane %v878_v43, %v3508_v17  ;;  %v893_v62 = vrot.slane %v879_v44, %v3508_v17 }
 0x33d   : > { %v876_v55 = vpack.i.b16 %v875_v46, %v874_v48  ;;  %v894_v56 = vcombine.low %v856_v45, %v872_v47  ;;  %v895_v57 = vcombine.high %v856_v45, %v872_v47  ;;  %v954_v4 = vrot.slane %v946_v52, %v3508_v17 }
 0x33e   : > { %v669_v58 = vpop.permute.xlu1 %668  ;;  %v3529_v59 = vpop.permute.xlu0 %1185  ;;  %v961_v6 = vrot.slane %v947_v53, %v3508_v17 }
 0x33f   : > { %v718_v63 = vrot.slane %v669_v58, %v3508_v17  ;;  %v902_v0 = vrot.slane %v894_v56, %v3508_v17  ;;  %v909_v1 = vrot.slane %v895_v57, %v3508_v17  ;;  %v962_v2 = vcombine.low %v860_v54, %v876_v55 }
 0x340   : > { %v963_v3 = vcombine.high %v860_v54, %v876_v55 }
 0x341   : > { %v719_v7 = vcombine.low %v710_v49, %v718_v63  ;;  %v720_v8 = vcombine.high %v710_v49, %v718_v63  ;;  %v910_v9 = vcombine.low %v886_v61, %v902_v0  ;;  %v911_v10 = vcombine.high %v886_v61, %v902_v0 }
 0x342   : > { %v926_v11 = vcombine.low %v893_v62, %v909_v1  ;;  %v927_v12 = vcombine.high %v893_v62, %v909_v1  ;;  %v1183_v13 = vpop.permute.xlu1 %1182  ;;  %v970_v14 = vrot.slane %v962_v2, %v3508_v17  ;;  %v977_v15 = vrot.slane %v963_v3, %v3508_v17  ;;  %v1192_v19 = vpop.permute.xlu0 %1191 }
 0x343   : > { %v3545_v16 = vrot.slane %v719_v7, %v3512_v23  ;;  %v3548_v18 = vrot.slane %v720_v8, %v3512_v23  ;;  %v918_v20 = vrot.slane %v910_v9, %v3512_v23  ;;  %v925_v21 = vrot.slane %v911_v10, %v3512_v23 }
 0x344   : > { %v934_v22 = vrot.slane %v926_v11, %v3512_v23  ;;  %v941_v24 = vrot.slane %v927_v12, %v3512_v23  ;;  %v978_v26 = vcombine.low %v954_v4, %v970_v14  ;;  %v979_v27 = vcombine.high %v954_v4, %v970_v14 }
 0x345   : > { %v994_v28 = vcombine.low %v961_v6, %v977_v15  ;;  %v995_v31 = vcombine.high %v961_v6, %v977_v15  ;;  %v1014_v36 = vcombine.low %v918_v20, %v925_v21  ;;  %v2593_v38 = vcombine.high %v918_v20, %v925_v21 }
 0x346   : > { %v1189_v32 = vpop.permute.xlu1 %1188  ;;  %v1030_v39 = vcombine.low %v934_v22, %v941_v24  ;;  %v735_v41 = vcombine.high %v3545_v16, %v3151_v50  ;;  %v736_v42 = vcombine.high %v3548_v18, %v3151_v50  ;;  %v742_v43 = vshrl.u32 %v3545_v16, 16  ;;  %v1198_v48 = vpop.permute.xlu0 %1197 }
 0x347   : > { %v986_v44 = vrot.slane %v978_v26, %v3512_v23  ;;  %v993_v45 = vrot.slane %v979_v27, %v3512_v23  ;;  %v1002_v46 = vrot.slane %v994_v28, %v3512_v23  ;;  %v2594_v47 = vcombine.high %v934_v22, %v941_v24 }
 0x348   : > { %v1009_v49 = vrot.slane %v995_v31, %v3512_v23  ;;  %v743_v52 = vpack.i.b16 %v742_v43, %v741_v29  ;;  %v747_v53 = vpack.i.b16 %v735_v41, %v3527_v51  ;;  %v750_v54 = vshrl.u32 %v735_v41, 16 }
 0x349   : > { %v758_v55 = vshrl.u32 %v3548_v18, 16  ;;  %v763_v56 = vpack.i.b16 %v736_v42, %v3533_v60  ;;  %v766_v57 = vshrl.u32 %v736_v42, 16  ;;  %v1234_v58 = vcombine.low %v3522_v40, %v1192_v19 }
 0x34a   : > { %v1195_v61 = vpop.permute.xlu1 %1194  ;;  %v739_v62 = vpack.i.b16 %v3545_v16, %v3515_v33  ;;  %v751_v63 = vpack.i.b16 %v750_v54, %v749_v34  ;;  %v1200_v0 = vcombine.low %v3498_v5, %v1189_v32  ;;  %v1242_v1 = vcombine.low %v3529_v59, %v1198_v48 }
 0x34b   : > { %v1082_v2 = vcombine.low %v986_v44, %v993_v45  ;;  %v2595_v3 = vcombine.high %v986_v44, %v993_v45  ;;  %v759_v51 = vpack.i.b16 %v758_v55, %v757_v30  ;;  %v767_v4 = vpack.i.b16 %v766_v57, %v765_v35 }
 0x34c   : > { %v755_v6 = vpack.i.b16 %v3548_v18, %v3520_v37  ;;  %v1241_v60 = vrot.slane %v1234_v58, %v3508_v17  ;;  %v1249_v40 = vrot.slane %v1242_v1, %v3508_v17  ;;  %v1208_v7 = vcombine.low %v1183_v13, %v1195_v61 }
 0x34d   : > { %v3579_v8 = vcombine.low %v747_v53, %v763_v56  ;;  %v794_v33 = vcombine.low %v743_v52, %v759_v51  ;;  %v802_v9 = vcombine.low %v751_v63, %v767_v4  ;;  %v1207_v5 = vrot.slane %v1200_v0, %v3508_v17 }
 0x34e   : > { %v1250_v10 = vcombine.low %v1241_v60, %v1249_v40  ;;  %v1251_v59 = vcombine.high %v1241_v60, %v1249_v40  ;;  %v1215_v11 = vrot.slane %v1208_v7, %v3508_v17  ;;  %v3584_v12 = vrot.slane %v1014_v36, %v3508_v17 }
 0x34f   : > { %v801_v37 = vrot.slane %v794_v33, %v3508_v17  ;;  %v809_v14 = vrot.slane %v802_v9, %v3508_v17  ;;  %v3589_v15 = vrot.slane %v2593_v38, %v3508_v17  ;;  %v3592_v13 = vrot.slane %v1030_v39, %v3508_v17 }
 0x350   : > { %v1258_v16 = vrot.slane %v1250_v10, %v3512_v23  ;;  %v1265_v18 = vrot.slane %v1251_v59, %v3512_v23  ;;  %v1216_v19 = vcombine.low %v1207_v5, %v1215_v11  ;;  %v1217_v20 = vcombine.high %v1207_v5, %v1215_v11 }
 0x351   : > { %v1098_v21 = vcombine.low %v1002_v46, %v1009_v49  ;;  %v3597_v22 = vrot.slane %v2594_v47, %v3508_v17  ;;  %v2596_v24 = vcombine.high %v1002_v46, %v1009_v49  ;;  %v769_v26 = vcombine.low %v739_v62, %v755_v6 }
 0x352   : > { %v784_v27 = vrot.slane %v3579_v8, %v3508_v17  ;;  %v810_v28 = vcombine.low %v801_v37, %v809_v14  ;;  %v1224_v29 = vrot.slane %v1216_v19, %v3512_v23  ;;  %v1231_v30 = vrot.slane %v1217_v20, %v3512_v23 }
 0x353   : > { %v1046_v31 = vcombine.low %v3584_v12, %v3589_v15  ;;  %v1062_v32 = vcombine.low %v3592_v13, %v3597_v22  ;;  %v1266_v34 = vcombine.high %v1258_v16, %v3151_v50  ;;  %v1267_v35 = vcombine.high %v1265_v18, %v3151_v50 }
 0x354   : > { %v3610_v36 = vrot.slane %v1082_v2, %v3508_v17  ;;  %v3613_v38 = vrot.slane %v2595_v3, %v3508_v17  ;;  %v1232_v39 = vcombine.high %v1224_v29, %v3151_v50  ;;  %v1233_v41 = vcombine.high %v1231_v30, %v3151_v50 }
 0x355   : > { %v1270_v42 = vpack.i.b16 %v1258_v16, %v1224_v29  ;;  %v3618_v43 = vrot.slane %v1098_v21, %v3508_v17  ;;  %v1272_v44 = vshrl.u32 %v1224_v29, 16  ;;  %v1286_v45 = vpack.i.b16 %v1265_v18, %v1231_v30 }
 0x356   : > { %v1288_v46 = vshrl.u32 %v1231_v30, 16  ;;  %v3621_v47 = vrot.slane %v2596_v24, %v3508_v17  ;;  %v1278_v48 = vpack.i.b16 %v1266_v34, %v1232_v39  ;;  %v1294_v49 = vpack.i.b16 %v1267_v35, %v1233_v41 }
 0x357   : > { %v1054_v52 = vrot.slane %v1046_v31, %v3512_v23  ;;  %v1070_v53 = vrot.slane %v1062_v32, %v3512_v23  ;;  %v1273_v54 = vshrl.u32 %v1258_v16, 16  ;;  %v1289_v55 = vshrl.u32 %v1265_v18, 16 }
 0x358   : > { %v1280_v56 = vshrl.u32 %v1232_v39, 16  ;;  %v1296_v57 = vshrl.u32 %v1233_v41, 16  ;;  %v1281_v58 = vshrl.u32 %v1266_v34, 16  ;;  %v1308_v61 = vcombine.low %v1278_v48, %v1294_v49 }
 0x359   : > { %v1114_v62 = vcombine.low %v3610_v36, %v3613_v38  ;;  %v1130_v63 = vcombine.low %v3618_v43, %v3621_v47  ;;  %v1297_v0 = vshrl.u32 %v1267_v35, 16  ;;  %v1274_v1 = vpack.i.b16 %v1273_v54, %v1272_v44 }
 0x35a   : > { %v1290_v2 = vpack.i.b16 %v1289_v55, %v1288_v46  ;;  %v1300_v3 = vcombine.low %v1270_v42, %v1286_v45  ;;  %v1078_v51 = vcombine.low %v1054_v52, %v1070_v53  ;;  %v776_v60 = vrot.slane %v769_v26, %v3508_v17 }
 0x35b   : > { %v1122_v4 = vrot.slane %v1114_v62, %v3512_v23  ;;  %v1138_v6 = vrot.slane %v1130_v63, %v3512_v23  ;;  %v1282_v40 = vpack.i.b16 %v1281_v58, %v1280_v56  ;;  %v1298_v7 = vpack.i.b16 %v1297_v0, %v1296_v57 }
 0x35c   : > { %v1315_v8 = vrot.slane %v1308_v61, %v3508_v17  ;;  %v785_v5 = vcombine.low %v776_v60, %v784_v27  ;;  %v1334_v10 = vcombine.low %v1274_v1, %v1290_v2  ;;  %v817_v59 = vrot.slane %v810_v28, %v3512_v23 }
 0x35d   : > { %v1146_v33 = vcombine.low %v1122_v4, %v1138_v6  ;;  %v1147_v9 = vcombine.high %v1122_v4, %v1138_v6  ;;  %v1307_v11 = vrot.slane %v1300_v3, %v3508_v17  ;;  %v1153_v14 = vshrl.u32 %v1078_v51, 16 }
 0x35e   : > { %v1079_v18 = vcombine.high %v1054_v52, %v1070_v53  ;;  %v1342_v20 = vcombine.low %v1282_v40, %v1298_v7  ;;  %v792_v29 = vrot.slane %v785_v5, %v3512_v23  ;;  %v823_v30 = vshrl.u32 %v817_v59, 16 }
 0x35f   : > { %v1152_v37 = vpack.i.b16 %v1146_v33, %v1078_v51  ;;  %v1154_v16 = vshrl.u32 %v1146_v33, 16  ;;  %v1316_v19 = vcombine.low %v1307_v11, %v1315_v8  ;;  %v1160_v26 = vshrl.u32 %v1147_v9, 16 }
 0x360   : > { %v1341_v27 = vrot.slane %v1334_v10, %v3508_v17  ;;  %v1349_v28 = vrot.slane %v1342_v20, %v3508_v17  ;;  %v1159_v32 = vshrl.u32 %v1079_v18, 16  ;;  %v1317_v34 = vcombine.high %v1307_v11, %v1315_v8 }
 0x361   : > { %v1397_v21 = vsel %vm1392_vm2, %v1152_v37, 0  ;;  %v1155_v24 = vpack.i.b16 %v1154_v16, %v1153_v14  ;;  %v1047_v35 = vcombine.high %v3584_v12, %v3589_v15  ;;  %v1158_v39 = vpack.i.b16 %v1147_v9, %v1079_v18 }
 0x362   : > { %2694 = vmatpush3.bf16.xpose.msra.mxu1 %v1397_v21  ;;  %v1324_v41 = vrot.slane %v1316_v19, %v3512_v23  ;;  %v1350_v42 = vcombine.low %v1341_v27, %v1349_v28  ;;  %v1351_v44 = vcombine.high %v1341_v27, %v1349_v28  ;;  %v1161_v45 = vpack.i.b16 %v1160_v26, %v1159_v32 }
 0x363   : > { %v1443_v31 = vsel %vm1392_vm2, %v1155_v24, 0  ;;  %2705 = vmatprep.subr.bf16.mxu1 %v3140_v25  ;;  %v3646_v46 = vrot.slane %v1317_v34, %v3512_v23  ;;  %v1061_v48 = vrot.slane %v1047_v35, %v3512_v23  ;;  %v1063_v49 = vcombine.high %v3592_v13, %v3597_v22 }
 0x364   : > { %2700 = vmatpush3.bf16.xpose.msra.mxu0 %v1443_v31  ;;  %v1358_v52 = vrot.slane %v1350_v42, %v3512_v23  ;;  %v3653_v12 = vrot.slane %v1351_v44, %v3512_v23  ;;  %v1115_v15 = vcombine.high %v3610_v36, %v3613_v38  ;;  %v1131_v53 = vcombine.high %v3618_v43, %v3621_v47 }
 0x365   : > { %2711 = vmatprep.subr.bf16.mxu0 %v3140_v25  ;;  %v3659_v54 = vpack.i.b16 %v817_v59, %v792_v29  ;;  %v822_v55 = vshrl.u32 %v792_v29, 16  ;;  %v1333_v56 = vcombine.high %v3646_v46, %v3151_v50  ;;  %v1077_v57 = vrot.slane %v1063_v49, %v3512_v23 }
 0x366   : > { %v818_v13 = vcombine.high %v817_v59, %v3151_v50  ;;  %v1372_v22 = vshrl.u32 %v1358_v52, 16  ;;  %v1489_v58 = vsel %vm1392_vm2, %v1158_v39, 0  ;;  %v1367_v38 = vcombine.high %v3653_v12, %v3151_v50 }
 0x367   : > { %v824_v36 = vpack.i.b16 %v823_v30, %v822_v55  ;;  %v3670_v43 = vcombine.low %v1061_v48, %v1077_v57  ;;  %v1535_v47 = vsel %vm1392_vm2, %v1161_v45, 0  ;;  %v793_v61 = vcombine.high %v792_v29, %v3151_v50 }
 0x368   : > { %v1371_v62 = vshrl.u32 %v1324_v41, 16  ;;  %v1370_v63 = vpack.i.b16 %v1358_v52, %v1324_v41  ;;  %v1388_v0 = vpack.i.b16 %v1367_v38, %v1333_v56  ;;  %v1389_v1 = vshrl.u32 %v1333_v56, 16 }
 0x369   : > { %2696 = vmatmul.mubr.msk.bf16.vlgmr.msra.gmra.mrb[4].mxu1 %vm1392_vm2, %v3659_v54  ;;  %v1390_v2 = vshrl.u32 %v1367_v38, 16  ;;  %v829_v3 = vshrl.u32 %v818_v13, 16  ;;  %v1129_v4 = vrot.slane %v1115_v15, %v3512_v23  ;;  %v827_v6 = vpack.i.b16 %v818_v13, %v793_v61 }
 0x36a   : > { %2706 = vmatpush3.bf16.xpose.msra.mxu1 %v1489_v58  ;;  %2707 = vmatprep.mubr.msk.bf16.mxu1 %vm3141_vm1, %v3140_v25  ;;  %v1373_v51 = vpack.i.b16 %v1372_v22, %v1371_v62  ;;  %v3683_v60 = vsel %vm1845_vm3, %v1388_v0, 0  ;;  %v1145_v7 = vrot.slane %v1131_v53, %v3512_v23  ;;  %v828_v8 = vshrl.u32 %v793_v61, 16 }
 0x36b   : > { %2702 = vmatmul.mubr.msk.bf16.vlgmr.msra.gmra.mrb[8].mxu0 %vm1392_vm2, %v824_v36  ;;  %2717 = vmatprep.subr.bf16.mxu1 %v3140_v25  ;;  %v1391_v40 = vpack.i.b16 %v1390_v2, %v1389_v1  ;;  %v1332_v33 = vcombine.high %v1324_v41, %v3151_v50  ;;  %v1366_v9 = vcombine.high %v1358_v52, %v3151_v50  ;;  %v1578_v10 = vsel %vm1392_vm2, %v1370_v63, 0 }
 0x36c   : > { %2712 = vmatpush3.bf16.xpose.msra.mxu0 %v1535_v47  ;;  %2713 = vmatprep.mubr.msk.bf16.mxu0 %vm3141_vm1, %v3140_v25  ;;  %v3688_v5 = vcombine.high %v1061_v48, %v1077_v57  ;;  %v3694_v11 = vcombine.low %v1129_v4, %v1145_v7  ;;  %v3696_v37 = vcombine.high %v1129_v4, %v1145_v7  ;;  %v1621_v16 = vsel %vm1392_vm2, %v1373_v51, 0 }
 0x36d   : > { %2723 = vmatprep.subr.bf16.mxu0 %v3140_v25  ;;  %v3692_v59 = vsel %vm1845_vm3, %v1391_v40, 0  ;;  %v830_v14 = vpack.i.b16 %v829_v3, %v828_v8  ;;  %v1166_v18 = vshrl.u32 %v3670_v43, 16  ;;  %v1378_v29 = vshrl.u32 %v1366_v9, 16 }
 0x36e   : > { %v1174_v19 = vshrl.u32 %v3688_v5, 16  ;;  %v1164_v20 = vpack.i.b16 %v3694_v11, %v3670_v43  ;;  %v1167_v21 = vshrl.u32 %v3694_v11, 16  ;;  %v1172_v24 = vpack.i.b16 %v3696_v37, %v3688_v5 }
 0x36f   : > { %v1175_v26 = vshrl.u32 %v3696_v37, 16  ;;  %v1376_v28 = vpack.i.b16 %v1366_v9, %v1332_v33  ;;  %v1377_v31 = vshrl.u32 %v1332_v33, 16  ;;  %v1384_v39 = vshrl.u32 %v3653_v12, 16  ;;  %v2906_v37 = vld [vmem:[#allocation8] sm:$0xff]  }
 0x370   : > { %v3712_v30 = vpack.i.b16 %v1167_v21, %v1166_v18  ;;  %v1382_v41 = vpack.i.b16 %v3653_v12, %v3646_v46  ;;  %v1383_v42 = vshrl.u32 %v3646_v46, 16 }
 0x371   : > { %2708 = vmatmul.mubr.msk.bf16.vlgmr.msra.gmra.mrb[8].mxu1 %vm1392_vm2, %v827_v6  ;;  %v3714_v27 = vpack.i.b16 %v1175_v26, %v1174_v19  ;;  %v1379_v32 = vpack.i.b16 %v1378_v29, %v1377_v31  ;;  %v1664_v34 = vsel %vm1392_vm2, %v1376_v28, 0 }
 0x372   : > { %2718 = vmatpush3.bf16.xpose.msra.mxu1 %v1578_v10  ;;  %2719 = vmatprep.mubr.msk.bf16.mxu1 %vm3141_vm1, %v3140_v25  ;;  %v1385_v44 = vpack.i.b16 %v1384_v39, %v1383_v42  ;;  %v1847_v45 = vsel %vm1845_vm3, %v1382_v41, 0 }
 0x373   : > { %2714 = vmatmul.mubr.msk.bf16.vlgmr.msra.gmra.mrb[12].mxu0 %vm1392_vm2, %v830_v14  ;;  %2729 = vmatprep.subr.bf16.mxu1 %v3140_v25  ;;  %v1707_v35 = vsel %vm1392_vm2, %v1379_v32, 0 }
 0x374   : > { %2724 = vmatpush3.bf16.xpose.msra.mxu0 %v1621_v16  ;;  %2725 = vmatprep.mubr.msk.bf16.mxu0 %vm3141_vm1, %v3140_v25  ;;  %v1893_v48 = vsel %vm1845_vm3, %v1385_v44, 0 }
 0x375   : > { %2735 = vmatprep.subr.bf16.mxu0 %v3140_v25 }
 0x379   : > { %2720 = vmatmul.mubr.msk.bf16.vlgmr.msra.gmra.mrb[12].mxu1 %vm1392_vm2, %v3659_v54 }
 0x37a   : > { %2730 = vmatpush3.bf16.xpose.msra.mxu1 %v1664_v34  ;;  %2731 = vmatprep.mubr.msk.bf16.mxu1 %vm3141_vm1, %v3140_v25 }
 0x37b   : > { %2726 = vmatmul.mubr.msk.bf16.vlgmr.msra.gmra.mrb[16].mxu0 %vm1392_vm2, %v824_v36  ;;  %2741 = vmatprep.subr.bf16.mxu1 %v3140_v25 }
 0x37c   : > { %2736 = vmatpush3.bf16.xpose.msra.mxu0 %v1707_v35  ;;  %2737 = vmatprep.mubr.msk.bf16.mxu0 %vm3141_vm1, %v3140_v25 }
 0x37d   : > { %2747 = vmatprep.subr.bf16.mxu0 %v3140_v25 }
 0x381   : > { %2732 = vmatmul.mubr.msk.bf16.vlgmr.msra.gmra.mrb[16].mxu1 %vm1392_vm2, %v827_v6 }
 0x382   : > { %2742 = vmatpush3.bf16.msra.mxu1 %v1847_v45  ;;  %2743 = vmatprep.mubr.msk.bf16.mxu1 %vm3141_vm1, %v3140_v25 }
 0x383   : > { %2738 = vmatmul.mubr.msk.bf16.vlgmr.msra.gmra.mrb[20].mxu0 %vm1392_vm2, %v830_v14  ;;  %2753 = vmatprep.subr.bf16.mxu1 %v3140_v25 }
 0x384   : > { %2748 = vmatpush3.bf16.msra.mxu0 %v1893_v48  ;;  %2749 = vmatprep.mubr.msk.bf16.mxu0 %vm3141_vm1, %v3140_v25 }
 0x385   : > { %2759 = vmatprep.subr.bf16.mxu0 %v3140_v25 }
 0x43c   : > { %v1433_v46 = vpop.f32.mrb[4].mxu1 }
 0x43d   : > { %v2697_v49 = vpop.f32.mrb[5].mxu1  ;;  %v1750_v52 = vsel %vm1749_vm4, %v1433_v46, -inf }
 0x43e   : > { %v1479_v12 = vpop.f32.mrb[8].mxu0  ;;  %1751 = vmax.xlane.f32.xlu1 %v1750_v52  ;;  %v1436_v15 = vpop.f32.mrb[6].mxu1 }
 0x43f   : > { %v2698_v53 = vpop.f32.mrb[7].mxu1  ;;  %v2703_v54 = vpop.f32.mrb[9].mxu0  ;;  %v1753_v55 = vsel %vm1749_vm4, %v1479_v12, -inf }
 0x440   : > { %1754 = vmax.xlane.f32.xlu0 %v1753_v55  ;;  %v1482_v56 = vpop.f32.mrb[10].mxu0 }
 0x441   : > { %v2704_v57 = vpop.f32.mrb[11].mxu0 }
 0x444   : > { %v1525_v13 = vpop.f32.mrb[8].mxu1 }
 0x445   : > { %v2709_v22 = vpop.f32.mrb[9].mxu1  ;;  %v1756_v58 = vsel %vm1749_vm4, %v1525_v13, -inf }
 0x446   : > { %v3747_v36 = vpop.f32.mrb[12].mxu0  ;;  %1757 = vmax.xlane.f32.xlu1 %v1756_v58  ;;  %v1528_v38 = vpop.f32.mrb[10].mxu1 }
 0x447   : > { %v2710_v47 = vpop.f32.mrb[11].mxu1  ;;  %v2715_v61 = vpop.f32.mrb[13].mxu0  ;;  %v1759_v10 = vsel %vm1749_vm4, %v3747_v36, -inf }
 0x448   : > { %v1574_v62 = vpop.f32.mrb[14].mxu0 }
 0x449   : > { %v2716_v63 = vpop.f32.mrb[15].mxu0 }
 0x44c   : > { %v1614_v0 = vpop.f32.mrb[12].mxu1 }
 0x44d   : > { %v2721_v1 = vpop.f32.mrb[13].mxu1  ;;  %v1762_v2 = vsel %vm1392_vm2, %v1614_v0, -inf }
 0x44e   : > { %v1657_v3 = vpop.f32.mrb[16].mxu0  ;;  %1763 = vmax.xlane.f32.xlu0 %v1762_v2  ;;  %v1617_v51 = vpop.f32.mrb[14].mxu1 }
 0x44f   : > { %v2722_v4 = vpop.f32.mrb[15].mxu1  ;;  %v2727_v6 = vpop.f32.mrb[17].mxu0  ;;  %v1765_v8 = vsel %vm1392_vm2, %v1657_v3, -inf }
 0x450   : > { %v1660_v40 = vpop.f32.mrb[18].mxu0 }
 0x451   : > { %v2728_v7 = vpop.f32.mrb[19].mxu0 }
 0x452   : > { %1766 = vmax.xlane.f32.xlu0 %v1765_v8 }
 0x454   : > { %v1700_v33 = vpop.f32.mrb[16].mxu1 }
 0x455   : > { %v2733_v9 = vpop.f32.mrb[17].mxu1  ;;  %v1768_v14 = vsel %vm1392_vm2, %v1700_v33, -inf }
 0x456   : > { %1760 = vmax.xlane.f32.xlu0 %v1759_v10  ;;  %v1743_v16 = vpop.f32.mrb[20].mxu0  ;;  %1769 = vmax.xlane.f32.xlu1 %v1768_v14  ;;  %v1703_v18 = vpop.f32.mrb[18].mxu1 }
 0x457   : > { %v2734_v19 = vpop.f32.mrb[19].mxu1  ;;  %v2739_v21 = vpop.f32.mrb[21].mxu0  ;;  %v1771_v28 = vsel %vm1392_vm2, %v1743_v16, -inf }
 0x458   : > { %v1746_v26 = vpop.f32.mrb[22].mxu0 }
 0x459   : > { %v2740_v29 = vpop.f32.mrb[23].mxu0 }
 0x45a   : > { %1772 = vmax.xlane.f32.xlu0 %v1771_v28 }
 0x4cb   : > { %v1752_v32 = vpop.xlane.xlu1 %1751 }
 0x4cd   : > { %v1755_v31 = vpop.xlane.xlu0 %1754 }
 0x4d3   : > { %v1758_v42 = vpop.xlane.xlu1 %1757 }
 0x4db   : > { %v1764_v34 = vpop.xlane.xlu0 %1763 }
 0x4dc   : > { %v1774_v35 = vmax.f32 %v1752_v32, %v1764_v34 }
 0x4de   : > { %v1778_v39 = vsub.f32 %v1433_v46, %v1774_v35  ;;  %v1790_v41 = vsub.f32 %v1614_v0, %v1774_v35 }
 0x4df   : > { %v1767_v44 = vpop.xlane.xlu0 %1766 }
 0x4e0   : > { %v1782_v45 = vmul.f32 1.442695, %v1778_v39  ;;  %v1794_v48 = vmul.f32 1.442695, %v1790_v41  ;;  %v1775_v49 = vmax.f32 %v1755_v31, %v1767_v44 }
 0x4e2   : > { %2914 = vpow2.f32 %v1782_v45  ;;  %v1779_v52 = vsub.f32 %v1479_v12, %v1775_v49  ;;  %v1791_v15 = vsub.f32 %v1657_v3, %v1775_v49 }
 0x4e3   : > { %2916 = vpow2.f32 %v1794_v48  ;;  %v1770_v53 = vpop.xlane.xlu1 %1769  ;;  %v1761_v54 = vpop.xlane.xlu0 %1760 }
 0x4e4   : > { %v1784_v55 = vmul.f32 1.442695, %v1779_v52  ;;  %v1796_v56 = vmul.f32 1.442695, %v1791_v15  ;;  %v1776_v57 = vmax.f32 %v1758_v42, %v1770_v53 }
 0x4e6   : > { %2918 = vpow2.f32 %v1784_v55  ;;  %v1780_v22 = vsub.f32 %v1525_v13, %v1776_v57  ;;  %v1792_v58 = vsub.f32 %v1700_v33, %v1776_v57 }
 0x4e7   : > { %2920 = vpow2.f32 %v1796_v56  ;;  %v1773_v46 = vpop.xlane.xlu0 %1772 }
 0x4e8   : > { %v1786_v38 = vmul.f32 1.442695, %v1780_v22  ;;  %v1798_v47 = vmul.f32 1.442695, %v1792_v58  ;;  %v1777_v61 = vmax.f32 %v1761_v54, %v1773_v46 }
 0x4ea   : > { %2922 = vpow2.f32 %v1786_v38  ;;  %v1781_v62 = vsub.f32 %v3747_v36, %v1777_v61  ;;  %v1793_v63 = vsub.f32 %v1743_v16, %v1777_v61 }
 0x4eb   : > { %2924 = vpow2.f32 %v1798_v47 }
 0x4ec   : > { %v2915_v12 = vpop.eup %2914  ;;  %v1788_v0 = vmul.f32 1.442695, %v1781_v62  ;;  %v1800_v1 = vmul.f32 1.442695, %v1793_v63 }
 0x4ed   : > { %v2917_v2 = vpop.eup %2916  ;;  %v1802_v3 = vsel %vm1749_vm4, %v2915_v12, 0.0  ;;  %v1834_v43 = vpack.c.bf16 %v2915_v12, %v2915_v12 }
 0x4ee   : > { %2926 = vpow2.f32 %v1788_v0  ;;  %1803 = vadd.xlane.f32.xlu1 %v1802_v3  ;;  %v1838_v13 = vpack.c.bf16 %v2917_v2, %v2917_v2  ;;  %v1814_v36 = vsel %vm1392_vm2, %v2917_v2, 0.0 }
 0x4ef   : > { %2928 = vpow2.f32 %v1800_v1 }
 0x4f0   : > { %v2919_v51 = vpop.eup %2918  ;;  %2744 = vmatmul.mubr.msk.bf16.vlgmr.msra.gmra.mrb[20].mxu1 %vm1392_vm2, %v1838_v13 }
 0x4f1   : > { %v2921_v4 = vpop.eup %2920  ;;  %2754 = vmatpush3.bf16.msra.mxu1 %v3683_v60  ;;  %v1805_v6 = vsel %vm1749_vm4, %v2919_v51, 0.0  ;;  %2755 = vmatprep.mubr.msk.bf16.mxu1 %vm3141_vm1, %v3140_v25  ;;  %v1835_v11 = vpack.c.bf16 %v2919_v51, %v2919_v51 }
 0x4f2   : > { %1815 = vadd.xlane.f32.xlu1 %v1814_v36  ;;  %1806 = vadd.xlane.f32.xlu0 %v1805_v6  ;;  %v1839_v40 = vpack.c.bf16 %v2921_v4, %v2921_v4  ;;  %v1817_v33 = vsel %vm1392_vm2, %v2921_v4, 0.0 }
 0x4f3   : > { %2765 = vmatprep.subr.bf16.mxu1 %v3140_v25 }
 0x4f4   : > { %v2923_v7 = vpop.eup %2922  ;;  %2750 = vmatmul.mubr.msk.bf16.vlgmr.msra.gmra.mrb[24].mxu0 %vm1392_vm2, %v1839_v40 }
 0x4f5   : > { %v2925_v8 = vpop.eup %2924  ;;  %2760 = vmatpush3.bf16.msra.mxu0 %v3692_v59  ;;  %v1808_v60 = vsel %vm1749_vm4, %v2923_v7, 0.0  ;;  %2761 = vmatprep.mubr.msk.bf16.mxu0 %vm3141_vm1, %v3140_v25 }
 0x4f6   : > { %1809 = vadd.xlane.f32.xlu1 %v1808_v60  ;;  %1818 = vadd.xlane.f32.xlu0 %v1817_v33  ;;  %v1840_v9 = vpack.c.bf16 %v2925_v8, %v2925_v8  ;;  %v1820_v59 = vsel %vm1392_vm2, %v2925_v8, 0.0 }
 0x4f7   : > { %2771 = vmatprep.subr.bf16.mxu0 %v3140_v25 }
 0x4f8   : > { %v2927_v10 = vpop.eup %2926  ;;  %2756 = vmatmul.mubr.msk.bf16.vlgmr.msra.gmra.mrb[24].mxu1 %vm1392_vm2, %v1840_v9 }
 0x4f9   : > { %v2929_v14 = vpop.eup %2928  ;;  %2766 = vmatpush3.bf16.msra.mxu1 %v1164_v20  ;;  %v1811_v16 = vsel %vm1749_vm4, %v2927_v10, 0.0  ;;  %2767 = vmatprep.mubr.msk.bf16.mxu1 %vm3141_vm1, %v3140_v25  ;;  %v1836_v20 = vpack.c.bf16 %v2923_v7, %v2923_v7  ;;  %v1837_v5 = vpack.c.bf16 %v2927_v10, %v2927_v10 }
 0x4fa   : > { %1821 = vadd.xlane.f32.xlu1 %v1820_v59  ;;  %1812 = vadd.xlane.f32.xlu0 %v1811_v16  ;;  %v1841_v18 = vpack.c.bf16 %v2929_v14, %v2929_v14  ;;  %v1823_v19 = vsel %vm1392_vm2, %v2929_v14, 0.0 }
 0x4fb   : > { %2777 = vmatprep.subr.bf16.mxu1 %v3140_v25 }
 0x4fc   : > { %2762 = vmatmul.mubr.msk.bf16.vlgmr.msra.gmra.mrb[28].mxu0 %vm1392_vm2, %v1841_v18 }
 0x4fd   : > { %2772 = vmatpush3.bf16.msra.mxu0 %v3712_v30  ;;  %2773 = vmatprep.mubr.msk.bf16.mxu0 %vm3141_vm1, %v3140_v25 }
 0x4fe   : > { %1824 = vadd.xlane.f32.xlu0 %v1823_v19  ;;  %2783 = vmatprep.subr.bf16.mxu0 %v3140_v25 }
 0x500   : > { %2768 = vmatmul.mubr.msk.bf16.vlgmr.msra.gmra.mrb[20].mxu1 %vm1749_vm4, %v1834_v43 }
 0x501   : > { %2778 = vmatpush3.bf16.msra.mxu1 %v1172_v24  ;;  %2779 = vmatprep.mubr.msk.bf16.mxu1 %vm3141_vm1, %v3140_v25 }
 0x502   : > { %2789 = vmatprep.subr.bf16.mxu1 %v3140_v25 }
 0x504   : > { %2774 = vmatmul.mubr.msk.bf16.vlgmr.msra.gmra.mrb[24].mxu0 %vm1749_vm4, %v1835_v11 }
 0x505   : > { %2784 = vmatpush3.bf16.msra.mxu0 %v3714_v27  ;;  %2785 = vmatprep.mubr.msk.bf16.mxu0 %vm3141_vm1, %v3140_v25 }
 0x508   : > { %2780 = vmatmul.mubr.msk.bf16.vlgmr.msra.gmra.mrb[24].mxu1 %vm1749_vm4, %v1836_v20 }
 0x509   : > { %2793 = vmatprep.mubr.msk.bf16.mxu1 %vm3141_vm1, %v3140_v25  ;;  %2790 = vmatpush3.bf16.msra.mxu1 %v2906_v37 }
 0x50a   : > { %2791 = vmatprep.subr.bf16.mxu1 %v3140_v25 }
 0x50c   : > { %2786 = vmatmul.mubr.msk.bf16.vlgmr.msra.gmra.mrb[28].mxu0 %vm1749_vm4, %v1837_v5 }
 0x57b   : > { %v1804_v24 = vpop.xlane.xlu1 %1803 }
 0x57f   : > { %v1807_v30 = vpop.xlane.xlu0 %1806  ;;  %v1816_v21 = vpop.xlane.xlu1 %1815 }
 0x580   : > { %v1826_v28 = vadd.f32 %v1816_v21, %v1804_v24 }
 0x582   : > { %2930 = vrcp.f32 %v1826_v28 }
 0x583   : > { %v1819_v27 = vpop.xlane.xlu0 %1818  ;;  %v1810_v26 = vpop.xlane.xlu1 %1809 }
 0x584   : > { %v1827_v34 = vadd.f32 %v1819_v27, %v1807_v30 }
 0x587   : > { %v1813_v29 = vpop.xlane.xlu0 %1812  ;;  %v1822_v31 = vpop.xlane.xlu1 %1821 }
 0x588   : > { %v1828_v32 = vadd.f32 %v1822_v31, %v1810_v26 }
 0x58a   : > { %2932 = vrcp.f32 %v1828_v32 }
 0x58b   : > { %v1825_v35 = vpop.xlane.xlu0 %1824  ;;  %2934 = vrcp.f32 %v1827_v34 }
 0x58c   : > { %v1829_v39 = vadd.f32 %v1825_v35, %v1813_v29  ;;  %v2931_v45 = vpop.eup %2930 }
 0x58e   : > { %2936 = vrcp.f32 %v1829_v39 }
 0x594   : > { %v2933_v54 = vpop.eup %2932 }
 0x595   : > { %v2935_v56 = vpop.eup %2934 }
 0x598   : > { %v2937_v62 = vpop.eup %2936 }
 0x5d3   : > { %v2064_v41 = vpop.f32.mrb[20].mxu1 }
 0x5d4   : > { %v2769_v42 = vpop.f32.mrb[21].mxu1  ;;  %v2199_v49 = vmul.f32 %v2931_v45, %v2064_v41 }
 0x5d5   : > { %v2067_v44 = vpop.f32.mrb[22].mxu1 }
 0x5d6   : > { %v2770_v25 = vpop.f32.mrb[23].mxu1  ;;  %v2203_v57 = vpack.c.bf16 %v2199_v49, %v2199_v49 }
 0x5d7   : > { %v2107_v48 = vpop.f32.mrb[24].mxu0 }
 0x5d8   : > { %v2775_v52 = vpop.f32.mrb[25].mxu0  ;;  %v2200_v46 = vmul.f32 %v2935_v56, %v2107_v48  ;;  %v2210_v12 = vrot.slane %v2203_v57, %v3508_v17  ;;  %v2907_v48 = vld [vmem:[#allocation8 + $0x8] sm:$0xff]  }
 0x5d9   : > { %v2110_v15 = vpop.f32.mrb[26].mxu0  ;;  %2792 = vmatpush3.bf16.msra.mxu1 %v2907_v48 }
 0x5da   : > { %v2776_v53 = vpop.f32.mrb[27].mxu0  ;;  %v2237_v3 = vpack.c.bf16 %v2200_v46, %v2200_v46 }
 0x5db   : > { %v2150_v55 = vpop.f32.mrb[24].mxu1 }
 0x5dc   : > { %v2201_v22 = vmul.f32 %v2933_v54, %v2150_v55  ;;  %v2781_v58 = vpop.f32.mrb[25].mxu1  ;;  %v2244_v8 = vrot.slane %v2237_v3, %v3508_v17 }
 0x5dd   : > { %v2153_v38 = vpop.f32.mrb[26].mxu1 }
 0x5de   : > { %v2211_v47 = vpack.c.bf16 %v2201_v22, %v2201_v22  ;;  %v2782_v61 = vpop.f32.mrb[27].mxu1 }
 0x5df   : > { %v2193_v63 = vpop.f32.mrb[28].mxu0 }
 0x5e0   : > { %v2218_v0 = vrot.slane %v2211_v47, %v3508_v17  ;;  %v2202_v1 = vmul.f32 %v2937_v62, %v2193_v63  ;;  %v2787_v2 = vpop.f32.mrb[29].mxu0 }
 0x5e1   : > { %v2196_v13 = vpop.f32.mrb[30].mxu0 }
 0x5e2   : > { %v2219_v51 = vcombine.low %v2210_v12, %v2218_v0  ;;  %v2220_v4 = vcombine.high %v2210_v12, %v2218_v0  ;;  %v2245_v36 = vpack.c.bf16 %v2202_v1, %v2202_v1  ;;  %v2788_v6 = vpop.f32.mrb[31].mxu0 }
 0x5e4   : > { %v2227_v40 = vrot.slane %v2219_v51, %v3512_v23  ;;  %v2252_v7 = vrot.slane %v2245_v36, %v3508_v17  ;;  %v2234_v60 = vrot.slane %v2220_v4, %v3512_v23 }
 0x5e6   : > { %v2253_v33 = vcombine.low %v2244_v8, %v2252_v7  ;;  %v2254_v9 = vcombine.high %v2244_v8, %v2252_v7  ;;  %v2235_v10 = vcombine.high %v2227_v40, %v3151_v50  ;;  %v2236_v16 = vcombine.high %v2234_v60, %v3151_v50 }
 0x5e7   : > { %v2275_v18 = vshrl.u32 %v2227_v40, 16  ;;  %v2291_v37 = vshrl.u32 %v2234_v60, 16 }
 0x5e8   : > { %v2261_v14 = vrot.slane %v2253_v33, %v3512_v23  ;;  %v2268_v59 = vrot.slane %v2254_v9, %v3512_v23  ;;  %v2283_v5 = vshrl.u32 %v2235_v10, 16  ;;  %v2299_v28 = vshrl.u32 %v2236_v16, 16 }
 0x5ea   : > { %v2269_v19 = vcombine.high %v2261_v14, %v3151_v50  ;;  %v2270_v43 = vcombine.high %v2268_v59, %v3151_v50  ;;  %v2273_v11 = vpack.i.b16 %v2261_v14, %v2227_v40  ;;  %v2276_v20 = vshrl.u32 %v2261_v14, 16 }
 0x5eb   : > { %v2289_v24 = vpack.i.b16 %v2268_v59, %v2234_v60  ;;  %v2292_v30 = vshrl.u32 %v2268_v59, 16 }
 0x5ec   : > { %v2277_v21 = vpack.i.b16 %v2276_v20, %v2275_v18  ;;  %v2281_v27 = vpack.i.b16 %v2269_v19, %v2235_v10  ;;  %v2284_v26 = vshrl.u32 %v2269_v19, 16  ;;  %v2297_v29 = vpack.i.b16 %v2270_v43, %v2236_v16 }
 0x5ed   : > { %v2293_v31 = vpack.i.b16 %v2292_v30, %v2291_v37  ;;  %v2300_v32 = vshrl.u32 %v2270_v43, 16  ;;  %v2303_v34 = vcombine.low %v2273_v11, %v2289_v24 }
 0x5ee   : > { %v2285_v35 = vpack.i.b16 %v2284_v26, %v2283_v5  ;;  %v2311_v39 = vcombine.low %v2281_v27, %v2297_v29 }
 0x5ef   : > { %v2301_v41 = vpack.i.b16 %v2300_v32, %v2299_v28  ;;  %v2328_v42 = vcombine.low %v2277_v21, %v2293_v31  ;;  %v2310_v44 = vrot.slane %v2303_v34, %v3508_v17 }
 0x5f0   : > { %v2318_v25 = vrot.slane %v2311_v39, %v3508_v17 }
 0x5f1   : > { %v2336_v45 = vcombine.low %v2285_v35, %v2301_v41  ;;  %v2335_v52 = vrot.slane %v2328_v42, %v3508_v17 }
 0x5f2   : > { %v2319_v49 = vcombine.low %v2310_v44, %v2318_v25 }
 0x5f3   : > { %v2343_v15 = vrot.slane %v2336_v45, %v3508_v17 }
 0x5f4   : > { %v2326_v53 = vrot.slane %v2319_v49, %v3512_v23 }
 0x5f5   : > { %v2344_v54 = vcombine.low %v2335_v52, %v2343_v15 }
 0x5f6   : > { %v2327_v56 = vcombine.high %v2326_v53, %v3151_v50  ;;  %v2356_v57 = vshrl.u32 %v2326_v53, 16 }
 0x5f7   : > { %v2351_v55 = vrot.slane %v2344_v54, %v3512_v23 }
 0x5f8   : > { %v2362_v61 = vshrl.u32 %v2327_v56, 16 }
 0x5f9   : > { %v2357_v22 = vshrl.u32 %v2351_v55, 16  ;;  %v2352_v58 = vcombine.high %v2351_v55, %v3151_v50  ;;  %v2355_v46 = vpack.i.b16 %v2351_v55, %v2326_v53 }
 0x5fb   : > { %v2358_v38 = vpack.i.b16 %v2357_v22, %v2356_v57  ;;  %v2361_v47 = vpack.i.b16 %v2352_v58, %v2327_v56  ;;  %v2363_v62 = vshrl.u32 %v2352_v58, 16 }
 0x5fd   : > { %2365 = vrot.lane.b32.xlu1 %v2358_v38, %s3152_s7  ;;  %2367 = vrot.lane.b32.xlu0 %v2361_v47, %s3153_s16  ;;  %v2364_v17 = vpack.i.b16 %v2363_v62, %v2362_v61 }
 0x601   : > { %2369 = vrot.lane.b32.xlu1 %v2364_v17, %s3154_s24 }
 0x66f   : > { %v2366_v23 = vpop.permute.xlu1 %2365  ;;  %v2368_v12 = vpop.permute.xlu0 %2367 }
 0x670   : > { %v2373_v63 = vsel %vm1392_vm2, %v2355_v46, %v2366_v23 }
 0x671   : > { %v2375_v50 = vsel %vm1749_vm4, %v2373_v63, %v2368_v12 }
 0x673   : > { %v2370_v0 = vpop.permute.xlu1 %2369 }
 0x674   : > { %v2378_v1 = vsel %vm2376_vm5, %v2375_v50, %v2370_v0 }
 0x675   : > { %2794 = vmatmul.mubr.msk.bf16.vlgmr.msra.gmra.mrb[28].mxu1 %vm426_vm0, %v2378_v1 }
 0x748   : > { %v2431_v2 = vpop.f32.mrb[28].mxu1 }
 0x749   : > { %v2437_v3 = vpack.c.bf16 %v2431_v2, %v2431_v2  ;;  %v2795_v13 = vpop.f32.mrb[29].mxu1 }
 0x74a   : > { %v2434_v51 = vpop.f32.mrb[30].mxu1 }
 0x74b   : > { %v2796_v4 = vpop.f32.mrb[31].mxu1  ;;  %2439 = vst.msk [vmem:[%s416_s14] sm:$0xf] %vm2438_vm6, %v2437_v3 }
 0x74c   : > { %3067 = shalt.err (!%p3064_p7)
}
 0x74d   : > { %s3068_s20 = scalar_lea.hbm %s3831_s23, 64  ;;  %s3072_s25 = scalar_lea.hbm %s3884_s9, 128 }
 0x74e   : > { %p3069_p2 = scmp.ne.s32.totalorder %s3831_s23, %s3068_s20  ;;  %p3073_p11 = scmp.lt.u32.totalorder %s3831_s23, %s3884_s9 }
 0x74f   : > { %p3074_p9 = scmp.lt.u32.totalorder %s3072_s25, %s3068_s20  ;;  %p3076_p1 = scmp.lt.u32.totalorder %s3068_s20, %s3831_s23 }
 0x750   : > { %p3070_p0 = pnand %p3069_p2, %p3921_p13 }
 0x751   : > { %p3075_p12 = por %p3074_p9, %p3073_p11 }
 0x752   : > { %p3071_p8 = pneg %p3070_p0 }
 0x753   : > { %p3077_p6 = por %p3076_p1, %p3075_p12 }
 0x755   : > { %p3078_p10 = pnand %p3077_p6, %p3071_p8 }
 0x757   : > { %3081 = shalt.err (!%p3078_p10)
}
 0x758   : > { %2825 = dma.vmem_to_hbm [thread:$0]  (%p3921_p13), %s3833_s21, 64, %s3831_s23, %s2441_s13  }
 0x759 PF: > { %s3922_s7 = sld [smem:[#allocation17_spill]]  ;;  %s2466_s16 = sand.u32 1, %s3120_s30  }
 0x75a   : > { %p3924_p5 = scmp.ge.s32.totalorder %s3132_s12, 2  ;;  %s2467_s24 = scalar_lea.sflag [#allocation4], %s2466_s16 }
 0x75f   : > { %p3923_p4 = scmp.ne.s32.totalorder %s3922_s7, 0 }
 0x761   : > { %p2842_p3 = pnand %p3924_p5, %p3923_p4 }
 0x763   : > { %3115 = dma.done.wait (!%p2842_p3), %s2467_s24, 64  }
 0x764   : > { %3117 = vsyncadd (!%p2842_p3), %s2467_s24, 4294967232  ;;  %s3925_s12 = sld [smem:[#allocation18_spill]]  ;;  %s3926_s28 = sld [smem:[#allocation16_spill]] }
 0x765   : > { %s3927_s11 = sld [smem:[#allocation19_spill]]  ;;  %s3928_s30 = smov %s3124_s10 }
 0x76a   : > { %p26_p7 = scmp.ge.s32.totalorder %s3925_s12, 4   ;;  %s3929_s10 = smov %s3926_s28 }
 0x76c   :  { %28 = sbr.rel (!%p26_p7) target bundleno = 12 (0xc), region = 122 }
 0x773   :  { %2472 = vsyncpa [#allocation3], 1 }
 0x774   :  { %2474 = vsyncpa [#allocation3 + $0x1], 1 }
 0x775   :  { %2475 = vsyncpa [#allocation6], 1 }
 0x776   :  { %2477 = vsyncpa [#allocation6 + $0x1], 1 }
 0x777   :  { %2478 = vsyncpa [#allocation9], 1 }
 0x778   :  { %2479 = vsyncpa [#allocation4], 1 }
 0x779   :  { %2481 = vsyncpa [#allocation4 + $0x1], 1 }

</bundles_post_ra>
